<compile_context>
chip_gen: v7x
topology: tpu7x:2x2x1
jax: 0.10.0
libtpu: 0.0.40
codegen_flags: <defaults>
</compile_context>

<pallas_src>
import jax
import jax.numpy as jnp
from jax.experimental import pallas as pl
from jax.experimental.pallas import tpu as pltpu


def domain_predictor_kernel(x_ref, w1q_ref, s1_ref, b1_ref, w2t_ref, b2_ref,
                            out_ref):
    # Weight-only dequant: int8 -> f32, per-output-column scale (VPU work,
    # hidden under the W1 DMA).
    w1 = w1q_ref[...].astype(jnp.float32) * s1_ref[...]            # (VF, H)

    # fc1 on the MXU with f32 accumulation; bias + ReLU on the VPU.
    h1 = jnp.dot(x_ref[...], w1, preferred_element_type=jnp.float32)
    h1 = jnp.maximum(h1 + b1_ref[...], 0.0)                        # (B, H)

    # fc2: only 2 output classes, so use VPU multiply + XLU lane reduction
    # instead of feeding the MXU a lane-padded (H, 2) RHS.
    w2t = w2t_ref[...]                                             # (2, H)
    p0 = jnp.sum(h1 * w2t[0:1, :], axis=-1, keepdims=True)         # (B, 1)
    p1 = jnp.sum(h1 * w2t[1:2, :], axis=-1, keepdims=True)         # (B, 1)
    z = jnp.concatenate([p0, p1], axis=-1) + b2_ref[...]           # (B, 2)

    # LogSoftmax(dim=1), numerically stable.
    m = jnp.max(z, axis=-1, keepdims=True)
    lse = m + jnp.log(jnp.sum(jnp.exp(z - m), axis=-1, keepdims=True))
    out_ref[...] = (z - lse).astype(out_ref.dtype)


def quantize_w1_int8(w1):
    """Per-output-column symmetric int8 quantization of W1 (VF, H)."""
    amax = jnp.max(jnp.abs(w1), axis=0, keepdims=True)             # (1, H)
    scale = jnp.maximum(amax, 1e-30) / 127.0
    q = jnp.clip(jnp.round(w1 / scale), -127.0, 127.0).astype(jnp.int8)
    return q, scale.astype(jnp.float32)


def domain_predictor(x, w1, b1, w2, b2):
    B, VF = x.shape
    VFw, H = w1.shape
    assert VF == VFw
    assert w2.shape == (H, 2)

    # Stream the only heavy array (W1) as int8 + per-column f32 scales.
    w1_q, w1_scale = quantize_w1_int8(w1)
    w2t = jnp.transpose(w2)            # (2, H)
    b1_2d = b1.reshape(1, H)
    b2_2d = b2.reshape(1, 2)

    cost = pl.CostEstimate(
        flops=2 * B * VF * H + 2 * B * H * 2,
        transcendentals=2 * B,
        bytes_accessed=(x.size * 4 + w1_q.size * 1 + w1_scale.size * 4
                        + b1.size * 4 + w2.size * 4 + b2.size * 4 + B * 2 * 4),
    )

    return pl.pallas_call(
        domain_predictor_kernel,
        out_shape=jax.ShapeDtypeStruct((B, 2), jnp.float32),
        grid_spec=pltpu.PrefetchScalarGridSpec(
            num_scalar_prefetch=0,
            grid=(1,),
            in_specs=[
                pl.BlockSpec((B, VF), lambda k: (0, 0)),    # x
                pl.BlockSpec((VF, H), lambda k: (0, 0)),    # W1 (int8)
                pl.BlockSpec((1, H), lambda k: (0, 0)),     # W1 scales
                pl.BlockSpec((1, H), lambda k: (0, 0)),     # b1
                pl.BlockSpec((2, H), lambda k: (0, 0)),     # W2^T
                pl.BlockSpec((1, 2), lambda k: (0, 0)),     # b2
            ],
            out_specs=pl.BlockSpec((B, 2), lambda k: (0, 0)),
        ),
        compiler_params=pltpu.CompilerParams(
            dimension_semantics=("arbitrary",)),
        cost_estimate=cost,
    )(x, w1_q, w1_scale, b1_2d, w2t, b2_2d)


def reference(x, w1, b1, w2, b2):
    hi = jax.lax.Precision.HIGHEST
    h1 = jnp.maximum(jnp.dot(x, w1, precision=hi) + b1, 0.0)
    z = jnp.dot(h1, w2, precision=hi) + b2
    return jax.nn.log_softmax(z, axis=1)


if __name__ == "__main__":
    # Small, deterministic synthetic setup.
    B = 8          # batch
    VF = 128       # data.vf_size
    H = 4096       # fc1 hidden width (as in the module)

    key = jax.random.PRNGKey(0)
    kx, kw1, kb1, kw2, kb2 = jax.random.split(key, 5)

    x = jax.random.normal(kx, (B, VF), dtype=jnp.float32)

    # PyTorch nn.Linear default init: U(-1/sqrt(fan_in), 1/sqrt(fan_in))
    bound1 = 1.0 / (VF ** 0.5)
    w1 = jax.random.uniform(kw1, (VF, H), jnp.float32, -bound1, bound1)
    b1 = jax.random.uniform(kb1, (H,), jnp.float32, -bound1, bound1)
    bound2 = 1.0 / (H ** 0.5)
    w2 = jax.random.uniform(kw2, (H, 2), jnp.float32, -bound2, bound2)
    b2 = jax.random.uniform(kb2, (2,), jnp.float32, -bound2, bound2)

    out = domain_predictor(x, w1, b1, w2, b2)
    out = jax.block_until_ready(out)
    assert out.shape == (B, 2)

    # Quant-matched check: reference with the same int8-dequantized W1.
    w1_q, w1_scale = quantize_w1_int8(w1)
    w1_deq = w1_q.astype(jnp.float32) * w1_scale
    ref_q = reference(x, w1_deq, b1, w2, b2)
    assert jnp.allclose(out, ref_q, atol=5e-3, rtol=5e-3), (
        f"max abs err vs quant-matched ref {jnp.max(jnp.abs(out - ref_q))}")

    # Semantic check vs the full-f32 PyTorch-equivalent forward.
    ref = reference(x, w1, b1, w2, b2)
    assert jnp.allclose(out, ref, atol=2e-2, rtol=2e-2), (
        f"max abs err vs f32 ref {jnp.max(jnp.abs(out - ref))}")

    print("KERNEL_OK")
</pallas_src>

<mosaic_0001>
module attributes {stable_mosaic.version = 11 : i64} {
  func.func @domain_predictor_kernel(%arg0: i32, %arg1: memref<8x128xf32, #tpu.memory_space<vmem>>, %arg2: memref<128x4096xi8, #tpu.memory_space<vmem>>, %arg3: memref<1x4096xf32, #tpu.memory_space<vmem>>, %arg4: memref<1x4096xf32, #tpu.memory_space<vmem>>, %arg5: memref<2x4096xf32, #tpu.memory_space<vmem>>, %arg6: memref<1x2xf32, #tpu.memory_space<vmem>>, %arg7: memref<8x2xf32, #tpu.memory_space<vmem>>) attributes {dimension_semantics = [#tpu.dimension_semantics<arbitrary>], iteration_bounds = array<i64: 1>, scalar_prefetch = 0 : i64, scratch_operands = 0 : i64, tpu.core_type = #tpu.core_type<tc>, window_params = [{pipeline_mode = #tpu.pipeline_mode<synchronous>, transform_indices = @transform_0, window_bounds = array<i64: 8, 128>}, {pipeline_mode = #tpu.pipeline_mode<synchronous>, transform_indices = @transform_1, window_bounds = array<i64: 128, 4096>}, {pipeline_mode = #tpu.pipeline_mode<synchronous>, transform_indices = @transform_2, window_bounds = array<i64: 1, 4096>}, {pipeline_mode = #tpu.pipeline_mode<synchronous>, transform_indices = @transform_3, window_bounds = array<i64: 1, 4096>}, {pipeline_mode = #tpu.pipeline_mode<synchronous>, transform_indices = @transform_4, window_bounds = array<i64: 2, 4096>}, {pipeline_mode = #tpu.pipeline_mode<synchronous>, transform_indices = @transform_5, window_bounds = array<i64: 1, 2>}, {pipeline_mode = #tpu.pipeline_mode<synchronous>, transform_indices = @transform_6, window_bounds = array<i64: 8, 2>}]} {
    %c0 = arith.constant 0 : index
    %c0_0 = arith.constant 0 : index
    %0 = vector.load %arg2[%c0, %c0_0] : memref<128x4096xi8, #tpu.memory_space<vmem>>, vector<128x4096xi8>
    %1 = arith.sitofp %0 : vector<128x4096xi8> to vector<128x4096xf32>
    %c0_1 = arith.constant 0 : index
    %c0_2 = arith.constant 0 : index
    %2 = vector.load %arg3[%c0_1, %c0_2] : memref<1x4096xf32, #tpu.memory_space<vmem>>, vector<1x4096xf32>
    %3 = vector.broadcast %2 : vector<1x4096xf32> to vector<128x4096xf32>
    %4 = arith.mulf %1, %3 : vector<128x4096xf32>
    %c0_3 = arith.constant 0 : index
    %c0_4 = arith.constant 0 : index
    %5 = vector.load %arg1[%c0_3, %c0_4] : memref<8x128xf32, #tpu.memory_space<vmem>>, vector<8x128xf32>
    %cst = arith.constant dense<0.000000e+00> : vector<8x4096xf32>
    %6 = tpu.matmul %5, %4, %cst {dimension_numbers = #tpu.dot_dimension_numbers<[1], [0], [0], [1], [0, 0, 1, 1], [], []>} : vector<8x128xf32>, vector<128x4096xf32>, vector<8x4096xf32> -> vector<8x4096xf32>
    %c0_5 = arith.constant 0 : index
    %c0_6 = arith.constant 0 : index
    %7 = vector.load %arg4[%c0_5, %c0_6] : memref<1x4096xf32, #tpu.memory_space<vmem>>, vector<1x4096xf32>
    %8 = vector.broadcast %7 : vector<1x4096xf32> to vector<8x4096xf32>
    %9 = arith.addf %6, %8 : vector<8x4096xf32>
    %cst_7 = arith.constant 0.000000e+00 : f32
    %10 = vector.broadcast %cst_7 : f32 to vector<8x4096xf32>
    %11 = arith.maximumf %9, %10 : vector<8x4096xf32>
    %c0_8 = arith.constant 0 : index
    %c0_9 = arith.constant 0 : index
    %12 = vector.load %arg5[%c0_8, %c0_9] : memref<2x4096xf32, #tpu.memory_space<vmem>>, vector<2x4096xf32>
    %13 = vector.extract_strided_slice %12 {offsets = [0, 0], sizes = [1, 4096], strides = [1, 1]} : vector<2x4096xf32> to vector<1x4096xf32>
    %14 = vector.broadcast %13 : vector<1x4096xf32> to vector<8x4096xf32>
    %15 = arith.mulf %11, %14 : vector<8x4096xf32>
    %cst_10 = arith.constant dense<0.000000e+00> : vector<8xf32>
    %16 = vector.multi_reduction <add>, %15, %cst_10 [1] : vector<8x4096xf32> to vector<8xf32>
    %17 = vector.shape_cast %16 : vector<8xf32> to vector<8x1xf32>
    %18 = vector.extract_strided_slice %12 {offsets = [1, 0], sizes = [1, 4096], strides = [1, 1]} : vector<2x4096xf32> to vector<1x4096xf32>
    %19 = vector.broadcast %18 : vector<1x4096xf32> to vector<8x4096xf32>
    %20 = arith.mulf %11, %19 : vector<8x4096xf32>
    %cst_11 = arith.constant dense<0.000000e+00> : vector<8xf32>
    %21 = vector.multi_reduction <add>, %20, %cst_11 [1] : vector<8x4096xf32> to vector<8xf32>
    %22 = vector.shape_cast %21 : vector<8xf32> to vector<8x1xf32>
    %23 = tpu.concatenate %17, %22 in 1 : vector<8x1xf32>, vector<8x1xf32> -> vector<8x2xf32>
    %c0_12 = arith.constant 0 : index
    %c0_13 = arith.constant 0 : index
    %24 = vector.load %arg6[%c0_12, %c0_13] : memref<1x2xf32, #tpu.memory_space<vmem>>, vector<1x2xf32>
    %25 = vector.broadcast %24 : vector<1x2xf32> to vector<8x2xf32>
    %26 = arith.addf %23, %25 : vector<8x2xf32>
    %cst_14 = arith.constant dense<0xFF800000> : vector<8xf32>
    %27 = vector.multi_reduction <maximumf>, %26, %cst_14 [1] : vector<8x2xf32> to vector<8xf32>
    %28 = vector.shape_cast %27 : vector<8xf32> to vector<8x1xf32>
    %29 = vector.broadcast %28 : vector<8x1xf32> to vector<8x2xf32>
    %30 = arith.subf %26, %29 : vector<8x2xf32>
    %31 = math.exp %30 : vector<8x2xf32>
    %cst_15 = arith.constant dense<0.000000e+00> : vector<8xf32>
    %32 = vector.multi_reduction <add>, %31, %cst_15 [1] : vector<8x2xf32> to vector<8xf32>
    %33 = vector.shape_cast %32 : vector<8xf32> to vector<8x1xf32>
    %34 = math.log %33 : vector<8x1xf32>
    %35 = arith.addf %28, %34 : vector<8x1xf32>
    %36 = vector.broadcast %35 : vector<8x1xf32> to vector<8x2xf32>
    %37 = arith.subf %26, %36 : vector<8x2xf32>
    %c0_16 = arith.constant 0 : index
    %c0_17 = arith.constant 0 : index
    %38 = vector.load %arg7[%c0_16, %c0_17] : memref<8x2xf32, #tpu.memory_space<vmem>>, vector<8x2xf32>
    tpu.vector_store %arg7[%c0_16, %c0_17], %37 {strides = array<i32>} : memref<8x2xf32, #tpu.memory_space<vmem>>, vector<8x2xf32>,
    return
  }
  func.func @transform_0(%arg0: i32) -> (i32, i32) {
    %c0_i32 = arith.constant 0 : i32
    %c0_i32_0 = arith.constant 0 : i32
    %c0_i32_1 = arith.constant 0 : i32
    return %c0_i32, %c0_i32_0 : i32, i32
  }
  func.func @transform_1(%arg0: i32) -> (i32, i32) {
    %c0_i32 = arith.constant 0 : i32
    %c0_i32_0 = arith.constant 0 : i32
    %c0_i32_1 = arith.constant 0 : i32
    return %c0_i32, %c0_i32_0 : i32, i32
  }
  func.func @transform_2(%arg0: i32) -> (i32, i32) {
    %c0_i32 = arith.constant 0 : i32
    %c0_i32_0 = arith.constant 0 : i32
    %c0_i32_1 = arith.constant 0 : i32
    return %c0_i32, %c0_i32_0 : i32, i32
  }
  func.func @transform_3(%arg0: i32) -> (i32, i32) {
    %c0_i32 = arith.constant 0 : i32
    %c0_i32_0 = arith.constant 0 : i32
    %c0_i32_1 = arith.constant 0 : i32
    return %c0_i32, %c0_i32_0 : i32, i32
  }
  func.func @transform_4(%arg0: i32) -> (i32, i32) {
    %c0_i32 = arith.constant 0 : i32
    %c0_i32_0 = arith.constant 0 : i32
    %c0_i32_1 = arith.constant 0 : i32
    return %c0_i32, %c0_i32_0 : i32, i32
  }
  func.func @transform_5(%arg0: i32) -> (i32, i32) {
    %c0_i32 = arith.constant 0 : i32
    %c0_i32_0 = arith.constant 0 : i32
    %c0_i32_1 = arith.constant 0 : i32
    return %c0_i32, %c0_i32_0 : i32, i32
  }
  func.func @transform_6(%arg0: i32) -> (i32, i32) {
    %c0_i32 = arith.constant 0 : i32
    %c0_i32_0 = arith.constant 0 : i32
    %c0_i32_1 = arith.constant 0 : i32
    return %c0_i32, %c0_i32_0 : i32, i32
  }
}

</mosaic_0001>

<bundles_post_ra>
// kernel: tpu_custom_call.1
= control target key start
LH: loop header
LB: loop body
LE: loop exit
PB: predicated region body
PF: predicated region fallthrough
CT: control target
= control target key end

     0   :  { %11 = vsyncpa [#allocation3], 0  ;;  %s5976_s0 = inlined_call_operand.hbm [shape: f32[8,128], index: 0, kind: input, shape index: {}]   ;;  %s5977_s1 = inlined_call_operand.hbm [shape: s8[128,4096], index: 1, kind: input, shape index: {}]   ;;  %s5978_s2 = inlined_call_operand.hbm [shape: f32[1,4096], index: 2, kind: input, shape index: {}]   ;;  %s5979_s3 = inlined_call_operand.hbm [shape: f32[1,4096], index: 3, kind: input, shape index: {}]   ;;  %s5980_s4 = inlined_call_operand.hbm [shape: f32[2,4096], index: 4, kind: input, shape index: {}]   ;;  %s5981_s5 = inlined_call_operand.vmem [shape: f32[1,2], index: 5, kind: input, shape index: {}]   ;;  %s5982_s6 = inlined_call_operand.vmem [shape: f32[8,2], index: 6, kind: output, shape index: {}]  }
   0x1   :  { %12 = vsyncpa [#allocation5], 0 }
   0x2   :  { %13 = vsyncpa [#allocation8], 0  ;;  %s4650_s21 = smov [#allocation4]   ;;  %s4534_s25 = scalar_lea.hbm %s5977_s1, 16384 }
   0x3   :  { %s29_s22 = sshll.u32 %s4650_s21, 4  ;;  %p4535_p0 = scmp.ne.s32.totalorder %s5977_s1, %s4534_s25  ;;  %s30_s22 = int_to_ptr.vmem [resolvable:$true] %s29_s22 }
   0x4   :  { %p4538_p1 = scmp.lt.u32.totalorder %s4534_s25, %s5977_s1 }
   0x6   :  { %p4540_p2 = pnand %p4538_p1, %p4535_p0 }
   0x8   :  { %4543 = shalt.err (!%p4540_p2)
}
   0x9   :  { %s4544_s30 = scalar_lea.vmem %s30_s22, 16384  ;;  %p4549_p4 = scmp.lt.s32.totalorder %s30_s22, %s30_s22 }
   0xa   :  { %p4545_p3 = scmp.ne.s32.totalorder %s30_s22, %s4544_s30  ;;  %p4550_p5 = scmp.lt.s32.totalorder %s4544_s30, %s4544_s30 }
   0xc   :  { %p4551_p6 = por %p4550_p5, %p4549_p4 }
   0xe   :  { %p4552_p7 = pnand %p4551_p6, %p4545_p3 }
  0x10   :  { %4555 = shalt.err (!%p4552_p7)
}
  0x11   :  { %s4651_s7 = smov 4096   ;;  %s4652_s8 = smov 256  }
  0x12   :  { %35 = dma.hbm_to_vmem [thread:$0]  %s5977_s1, 16384, %s30_s22, [#allocation5], %s4651_s7, %s4651_s7, %s4652_s8  }
  0x13   :  { %s4653_s11 = smov [#allocation7]   ;;  %s4654_s13 = smov [#allocation2]  }
  0x14   :  { %s52_s12 = sshll.u32 %s4653_s11, 4  ;;  %s20_s14 = sshll.u32 %s4654_s13, 4  ;;  %s53_s12 = int_to_ptr.vmem [resolvable:$true] %s52_s12  ;;  %s21_s14 = int_to_ptr.vmem [resolvable:$true] %s20_s14 }
  0x15   :  { %s4556_s17 = scalar_lea.hbm %s5979_s3, 512 }
  0x16   :  { %p4557_p8 = scmp.ne.s32.totalorder %s5979_s3, %s4556_s17  ;;  %p4560_p9 = scmp.lt.u32.totalorder %s4556_s17, %s5979_s3 }
  0x18   :  { %p4562_p10 = pnand %p4560_p9, %p4557_p8 }
  0x1a   :  { %4565 = shalt.err (!%p4562_p10)
}
  0x1b   :  { %s4566_s1 = scalar_lea.vmem %s53_s12, 512  ;;  %p4571_p12 = scmp.lt.s32.totalorder %s53_s12, %s53_s12 }
  0x1c   :  { %p4567_p11 = scmp.ne.s32.totalorder %s53_s12, %s4566_s1  ;;  %p4572_p13 = scmp.lt.s32.totalorder %s4566_s1, %s4566_s1 }
  0x1e   :  { %p4573_p0 = por %p4572_p13, %p4571_p12 }
  0x20   :  { %p4574_p1 = pnand %p4573_p0, %p4567_p11 }
  0x22   :  { %4577 = shalt.err (!%p4574_p1)
}
  0x23   :  { %55 = dma.hbm_to_vmem [thread:$0]  %s5979_s3, 512, %s53_s12, [#allocation8]  }
  0x24   :  { %s4578_s26 = scalar_lea.hbm %s5976_s0, 128 }
  0x25   :  { %p4579_p2 = scmp.ne.s32.totalorder %s5976_s0, %s4578_s26  ;;  %p4582_p3 = scmp.lt.u32.totalorder %s4578_s26, %s5976_s0 }
  0x27   :  { %p4584_p4 = pnand %p4582_p3, %p4579_p2 }
  0x29   :  { %4587 = shalt.err (!%p4584_p4)
}
  0x2a   :  { %s4588_s7 = scalar_lea.vmem %s21_s14, 128  ;;  %p4593_p6 = scmp.lt.s32.totalorder %s21_s14, %s21_s14 }
  0x2b   :  { %p4589_p5 = scmp.ne.s32.totalorder %s21_s14, %s4588_s7  ;;  %p4594_p7 = scmp.lt.s32.totalorder %s4588_s7, %s4588_s7 }
  0x2d   :  { %p4595_p8 = por %p4594_p7, %p4593_p6 }
  0x2f   :  { %p4596_p9 = pnand %p4595_p8, %p4589_p5 }
  0x31   :  { %4599 = shalt.err (!%p4596_p9)
}
  0x32   :  { %23 = dma.hbm_to_vmem [thread:$0]  %s5976_s0, 128, %s21_s14, [#allocation3]  }
  0x33   :  { %s4655_s9 = smov [#allocation6]   ;;  %s4656_s11 = smov [#allocation9]  }
  0x34   :  { %s42_s10 = sshll.u32 %s4655_s9, 4  ;;  %s62_s12 = sshll.u32 %s4656_s11, 4  ;;  %s43_s10 = int_to_ptr.vmem [resolvable:$true] %s42_s10  ;;  %s63_s12 = int_to_ptr.vmem [resolvable:$true] %s62_s12 }
  0x35   :  { %s4600_s16 = scalar_lea.hbm %s5978_s2, 512 }
  0x36   :  { %p4601_p10 = scmp.ne.s32.totalorder %s5978_s2, %s4600_s16  ;;  %p4604_p11 = scmp.lt.u32.totalorder %s4600_s16, %s5978_s2 }
  0x38   :  { %p4606_p12 = pnand %p4604_p11, %p4601_p10 }
  0x3a   :  { %4609 = shalt.err (!%p4606_p12)
}
  0x3b   :  { %s4610_s0 = scalar_lea.vmem %s43_s10, 512  ;;  %p4615_p0 = scmp.lt.s32.totalorder %s43_s10, %s43_s10 }
  0x3c   :  { %p4611_p13 = scmp.ne.s32.totalorder %s43_s10, %s4610_s0  ;;  %p4616_p1 = scmp.lt.s32.totalorder %s4610_s0, %s4610_s0 }
  0x3e   :  { %p4617_p2 = por %p4616_p1, %p4615_p0 }
  0x40   :  { %p4618_p3 = pnand %p4617_p2, %p4611_p13 }
  0x42   :  { %4621 = shalt.err (!%p4618_p3)
}
  0x43   :  { %45 = dma.hbm_to_vmem [thread:$0]  %s5978_s2, 512, %s43_s10, [#allocation5]  }
  0x44   :  { %s4622_s23 = scalar_lea.hbm %s5980_s4, 1024 }
  0x45   :  { %p4623_p4 = scmp.ne.s32.totalorder %s5980_s4, %s4622_s23  ;;  %p4626_p5 = scmp.lt.u32.totalorder %s4622_s23, %s5980_s4 }
  0x47   :  { %p4628_p6 = pnand %p4626_p5, %p4623_p4 }
  0x49   :  { %4631 = shalt.err (!%p4628_p6)
}
  0x4a   :  { %s4632_s28 = scalar_lea.vmem %s63_s12, 1024  ;;  %p4637_p8 = scmp.lt.s32.totalorder %s63_s12, %s63_s12 }
  0x4b   :  { %p4633_p7 = scmp.ne.s32.totalorder %s63_s12, %s4632_s28  ;;  %p4638_p9 = scmp.lt.s32.totalorder %s4632_s28, %s4632_s28 }
  0x4d   :  { %p4639_p10 = por %p4638_p9, %p4637_p8 }
  0x4f   :  { %p4640_p11 = pnand %p4639_p10, %p4633_p7 }
  0x51   :  { %4643 = shalt.err (!%p4640_p11)
}
  0x52   :  { %65 = dma.hbm_to_vmem [thread:$0]  %s5980_s4, 1024, %s63_s12, [#allocation8]  }
  0x53   :  { %4644 = dma.done.wait [#allocation3], 128  }
  0x54   :  { %4645 = vsyncadd [#allocation3], 4294967168 }
  0x55   :  { %4646 = dma.done.wait [#allocation5], 16896  }
  0x56   :  { %4647 = vsyncadd [#allocation5], 4294950400 }
  0x57   :  { %4648 = dma.done.wait [#allocation8], 1536  }
  0x58   :  { %4649 = vsyncadd [#allocation8], 4294965760  ;;  %v1243_v0 = vlaneseq  ;;  %v4657_v1 = vmov 0.0   ;;  %v84_v8 = vld [vmem:[#allocation4 + $0x8] sm:$0xff]  ;;  %v4765_v9 = vld [vmem:[#allocation6] sm:$0xff]  ;;  %vm3974_vm0 = vcmask 7168  }
  0x59   :  { %2148 = vmatprep.mubr.f32.mxu0 %v4657_v1  ;;  %2219 = vmatprep.mubr.f32.mxu1 %v4657_v1  ;;  %v83_v10 = vld [vmem:[#allocation4] sm:$0xff]  ;;  %v212_v14 = vunpack.c.0.s8 %v84_v8  ;;  %v244_v15 = vunpack.c.1.s8 %v84_v8  ;;  %v86_v18 = vld [vmem:[#allocation4 + $0x18] sm:$0xff]  ;;  %v276_v30 = vunpack.c.2.s8 %v84_v8  ;;  %v85_v31 = vld [vmem:[#allocation4 + $0x10] sm:$0xff]  ;;  %v308_v35 = vunpack.c.3.s8 %v84_v8 }
  0x5a   :  { %v1244_v2 = vshrl.u32 %v1243_v0, 7  ;;  %v211_v17 = vunpack.c.0.s8 %v83_v10  ;;  %v243_v19 = vunpack.c.1.s8 %v83_v10  ;;  %v214_v21 = vunpack.c.0.s8 %v86_v18  ;;  %v4791_v44 = vld [vmem:[#allocation4 + $0x108] sm:$0xff] }
  0x5b   :  { %v246_v22 = vunpack.c.1.s8 %v86_v18  ;;  %v724_v23 = vcvt.s32.f32 %v212_v14  ;;  %v756_v24 = vcvt.s32.f32 %v244_v15  ;;  %v788_v39 = vcvt.s32.f32 %v276_v30 }
  0x5c   :  { %v4755_v3 = vsub.s32 1, %v1244_v2  ;;  %v4757_v4 = vsub.s32 0, %v1244_v2  ;;  %v4759_v5 = vsub.s32 3, %v1244_v2  ;;  %v4761_v6 = vsub.s32 2, %v1244_v2 }
  0x5d   :  { %v4763_v7 = vsub.s32 5, %v1244_v2  ;;  %v4767_v11 = vsub.s32 4, %v1244_v2  ;;  %v4769_v12 = vsub.s32 7, %v1244_v2  ;;  %v4771_v13 = vsub.s32 6, %v1244_v2  ;;  %v115_v2 = vld [vmem:[#allocation4 + $0x100] sm:$0xff] }
  0x5e   :  { %v4775_v16 = vrot.slane %v4765_v9, %v4755_v3  ;;  %v4779_v20 = vrot.slane %v4765_v9, %v4757_v4  ;;  %v723_v25 = vcvt.s32.f32 %v211_v17  ;;  %v4783_v26 = vrot.slane %v4765_v9, %v4759_v5 }
  0x5f   :  { %v755_v27 = vcvt.s32.f32 %v243_v19  ;;  %v726_v28 = vcvt.s32.f32 %v214_v21  ;;  %v758_v29 = vcvt.s32.f32 %v246_v22  ;;  %v820_v41 = vcvt.s32.f32 %v308_v35  ;;  %v118_v22 = vld [vmem:[#allocation4 + $0x118] sm:$0xff] }
  0x60   :  { %v1404_v32 = vmul.f32 %v4775_v16, %v724_v23  ;;  %v1436_v33 = vmul.f32 %v4775_v16, %v756_v24  ;;  %v1403_v34 = vmul.f32 %v4779_v20, %v723_v25  ;;  %v213_v42 = vunpack.c.0.s8 %v85_v31 }
  0x61   :  { %v1435_v36 = vmul.f32 %v4779_v20, %v755_v27  ;;  %v1406_v37 = vmul.f32 %v4783_v26, %v726_v28  ;;  %v1438_v38 = vmul.f32 %v4783_v26, %v758_v29  ;;  %v245_v43 = vunpack.c.1.s8 %v85_v31 }
  0x62   :  { %v4007_v40 = vpack.c.bf16 %v1436_v33, %v1404_v32  ;;  %v1468_v47 = vmul.f32 %v4775_v16, %v788_v39  ;;  %v4796_v48 = vrot.slane %v4765_v9, %v4761_v6  ;;  %v1500_v49 = vmul.f32 %v4775_v16, %v820_v41 }
  0x63   :  { %v4009_v45 = vpack.c.bf16 %v1435_v36, %v1403_v34  ;;  %v4039_v46 = vpack.c.bf16 %v1438_v38, %v1406_v37  ;;  %v725_v50 = vcvt.s32.f32 %v213_v42  ;;  %v757_v51 = vcvt.s32.f32 %v245_v43  ;;  %v4810_v37 = vld [vmem:[#allocation4 + $0x110] sm:$0xff] }
  0x64   :  { %4008 = vmatprep.subr.bf16.mxu0 %v4007_v40  ;;  %v275_v52 = vunpack.c.2.s8 %v83_v10  ;;  %v307_v53 = vunpack.c.3.s8 %v83_v10  ;;  %v278_v54 = vunpack.c.2.s8 %v86_v18  ;;  %v310_v55 = vunpack.c.3.s8 %v86_v18 }
  0x65   :  { %4010 = vmatpush1.bf16.msra.mxu0 %v4009_v45  ;;  %4040 = vmatprep.subr.bf16.mxu1 %v4039_v46  ;;  %v340_v56 = vunpack.c.0.s8 %v4791_v44  ;;  %v4011_v57 = vpack.c.bf16 %v1500_v49, %v1468_v47  ;;  %v1405_v58 = vmul.f32 %v4796_v48, %v725_v50  ;;  %v1437_v59 = vmul.f32 %v4796_v48, %v757_v51 }
  0x66   :  { %v787_v60 = vcvt.s32.f32 %v275_v52  ;;  %v819_v61 = vcvt.s32.f32 %v307_v53  ;;  %v790_v62 = vcvt.s32.f32 %v278_v54  ;;  %v822_v63 = vcvt.s32.f32 %v310_v55 }
  0x67   :  { %v372_v0 = vunpack.c.1.s8 %v4791_v44  ;;  %4012 = vmatprep.subr.bf16.mxu0 %v4011_v57  ;;  %v4041_v8 = vpack.c.bf16 %v1437_v59, %v1405_v58  ;;  %v852_v14 = vcvt.s32.f32 %v340_v56  ;;  %v277_v15 = vunpack.c.2.s8 %v85_v31 }
  0x68   :  { %v1467_v10 = vmul.f32 %v4779_v20, %v787_v60  ;;  %v1499_v17 = vmul.f32 %v4779_v20, %v819_v61  ;;  %v1470_v18 = vmul.f32 %v4783_v26, %v790_v62  ;;  %v1502_v19 = vmul.f32 %v4783_v26, %v822_v63  ;;  %v148_v62 = vld [vmem:[#allocation4 + $0x208] sm:$0xff] }
  0x69   :  { %v884_v21 = vcvt.s32.f32 %v372_v0  ;;  %4042 = vmatpush1.bf16.msra.mxu1 %v4041_v8  ;;  %v1532_v23 = vmul.f32 %v4775_v16, %v852_v14  ;;  %v309_v24 = vunpack.c.3.s8 %v85_v31  ;;  %v789_v25 = vcvt.s32.f32 %v277_v15 }
  0x6a   :  { %v339_v27 = vunpack.c.0.s8 %v115_v2  ;;  %v4013_v28 = vpack.c.bf16 %v1499_v17, %v1467_v10  ;;  %v4043_v29 = vpack.c.bf16 %v1502_v19, %v1470_v18  ;;  %v371_v32 = vunpack.c.1.s8 %v115_v2 }
  0x6b   :  { %v1564_v30 = vmul.f32 %v4775_v16, %v884_v21  ;;  %v821_v33 = vcvt.s32.f32 %v309_v24  ;;  %v1469_v34 = vmul.f32 %v4796_v48, %v789_v25  ;;  %v342_v36 = vunpack.c.0.s8 %v118_v22  ;;  %v147_v25 = vld [vmem:[#allocation4 + $0x200] sm:$0xff] }
  0x6c   :  { %v851_v35 = vcvt.s32.f32 %v339_v27  ;;  %4014 = vmatpush1.bf16.msra.mxu0 %v4013_v28  ;;  %4044 = vmatprep.subr.bf16.mxu1 %v4043_v29  ;;  %v883_v39 = vcvt.s32.f32 %v371_v32  ;;  %v374_v40 = vunpack.c.1.s8 %v118_v22  ;;  %v404_v31 = vunpack.c.2.s8 %v4791_v44 }
  0x6d   :  { %v4015_v38 = vpack.c.bf16 %v1564_v30, %v1532_v23  ;;  %v1501_v41 = vmul.f32 %v4796_v48, %v821_v33  ;;  %v854_v43 = vcvt.s32.f32 %v342_v36  ;;  %v436_v45 = vunpack.c.3.s8 %v4791_v44 }
  0x6e   :  { %v1531_v42 = vmul.f32 %v4779_v20, %v851_v35  ;;  %v1563_v46 = vmul.f32 %v4779_v20, %v883_v39  ;;  %v886_v47 = vcvt.s32.f32 %v374_v40  ;;  %v916_v49 = vcvt.s32.f32 %v404_v31 }
  0x6f   :  { %4016 = vmatprep.subr.bf16.mxu0 %v4015_v38  ;;  %v341_v50 = vunpack.c.0.s8 %v4810_v37  ;;  %v4045_v51 = vpack.c.bf16 %v1501_v41, %v1469_v34  ;;  %v1534_v52 = vmul.f32 %v4783_v26, %v854_v43  ;;  %v948_v53 = vcvt.s32.f32 %v436_v45  ;;  %v150_v34 = vld [vmem:[#allocation4 + $0x218] sm:$0xff] }
  0x70   :  { %v373_v54 = vunpack.c.1.s8 %v4810_v37  ;;  %v4017_v55 = vpack.c.bf16 %v1563_v46, %v1531_v42  ;;  %v1566_v56 = vmul.f32 %v4783_v26, %v886_v47  ;;  %v1596_v57 = vmul.f32 %v4775_v16, %v916_v49  ;;  %v4834_v49 = vld [vmem:[#allocation4 + $0x210] sm:$0xff] }
  0x71   :  { %v853_v58 = vcvt.s32.f32 %v341_v50  ;;  %4046 = vmatpush1.bf16.msra.mxu1 %v4045_v51  ;;  %v1628_v44 = vmul.f32 %v4775_v16, %v948_v53  ;;  %v403_v60 = vunpack.c.2.s8 %v115_v2  ;;  %v435_v61 = vunpack.c.3.s8 %v115_v2 }
  0x72   :  { %v885_v59 = vcvt.s32.f32 %v373_v54  ;;  %4018 = vmatpush1.bf16.msra.mxu0 %v4017_v55  ;;  %v4047_v63 = vpack.c.bf16 %v1566_v56, %v1534_v52  ;;  %v406_v8 = vunpack.c.2.s8 %v118_v22  ;;  %v438_v10 = vunpack.c.3.s8 %v118_v22 }
  0x73   :  { %v1533_v0 = vmul.f32 %v4796_v48, %v853_v58  ;;  %v4019_v14 = vpack.c.bf16 %v1628_v44, %v1596_v57  ;;  %v915_v17 = vcvt.s32.f32 %v403_v60  ;;  %v947_v18 = vcvt.s32.f32 %v435_v61 }
  0x74   :  { %v1565_v15 = vmul.f32 %v4796_v48, %v885_v59  ;;  %4048 = vmatprep.subr.bf16.mxu1 %v4047_v63  ;;  %v918_v19 = vcvt.s32.f32 %v406_v8  ;;  %v950_v21 = vcvt.s32.f32 %v438_v10  ;;  %v468_v23 = vunpack.c.0.s8 %v148_v62 }
  0x75   :  { %v500_v24 = vunpack.c.1.s8 %v148_v62  ;;  %4020 = vmatprep.subr.bf16.mxu0 %v4019_v14  ;;  %v1595_v27 = vmul.f32 %v4779_v20, %v915_v17  ;;  %v1627_v28 = vmul.f32 %v4779_v20, %v947_v18  ;;  %v405_v29 = vunpack.c.2.s8 %v4810_v37 }
  0x76   :  { %v4049_v2 = vpack.c.bf16 %v1565_v15, %v1533_v0  ;;  %v1598_v22 = vmul.f32 %v4783_v26, %v918_v19  ;;  %v1630_v30 = vmul.f32 %v4783_v26, %v950_v21  ;;  %v980_v32 = vcvt.s32.f32 %v468_v23  ;;  %v180_v21 = vld [vmem:[#allocation4 + $0x308] sm:$0xff] }
  0x77   :  { %v1012_v33 = vcvt.s32.f32 %v500_v24  ;;  %v4021_v35 = vpack.c.bf16 %v1627_v28, %v1595_v27  ;;  %v437_v36 = vunpack.c.3.s8 %v4810_v37  ;;  %v917_v38 = vcvt.s32.f32 %v405_v29 }
  0x78   :  { %4050 = vmatpush1.bf16.msra.mxu1 %v4049_v2  ;;  %v467_v39 = vunpack.c.0.s8 %v147_v25  ;;  %v4051_v40 = vpack.c.bf16 %v1630_v30, %v1598_v22  ;;  %v1660_v31 = vmul.f32 %v4775_v16, %v980_v32  ;;  %v499_v42 = vunpack.c.1.s8 %v147_v25 }
  0x79   :  { %v1692_v41 = vmul.f32 %v4775_v16, %v1012_v33  ;;  %4022 = vmatpush1.bf16.msra.mxu0 %v4021_v35  ;;  %v949_v43 = vcvt.s32.f32 %v437_v36  ;;  %v1597_v45 = vmul.f32 %v4796_v48, %v917_v38  ;;  %v470_v47 = vunpack.c.0.s8 %v150_v34  ;;  %v179_v38 = vld [vmem:[#allocation4 + $0x300] sm:$0xff] }
  0x7a   :  { %v979_v46 = vcvt.s32.f32 %v467_v39  ;;  %4052 = vmatprep.subr.bf16.mxu1 %v4051_v40  ;;  %v1011_v51 = vcvt.s32.f32 %v499_v42  ;;  %v502_v37 = vunpack.c.1.s8 %v150_v34  ;;  %v532_v52 = vunpack.c.2.s8 %v148_v62 }
  0x7b   :  { %v4023_v50 = vpack.c.bf16 %v1692_v41, %v1660_v31  ;;  %v1629_v53 = vmul.f32 %v4796_v48, %v949_v43  ;;  %v982_v55 = vcvt.s32.f32 %v470_v47  ;;  %v564_v56 = vunpack.c.3.s8 %v148_v62 }
  0x7c   :  { %v1659_v54 = vmul.f32 %v4779_v20, %v979_v46  ;;  %v1691_v57 = vmul.f32 %v4779_v20, %v1011_v51  ;;  %v1014_v58 = vcvt.s32.f32 %v502_v37  ;;  %v1044_v44 = vcvt.s32.f32 %v532_v52 }
  0x7d   :  { %4024 = vmatprep.subr.bf16.mxu0 %v4023_v50  ;;  %v469_v59 = vunpack.c.0.s8 %v4834_v49  ;;  %v4053_v60 = vpack.c.bf16 %v1629_v53, %v1597_v45  ;;  %v1662_v61 = vmul.f32 %v4783_v26, %v982_v55  ;;  %v1076_v63 = vcvt.s32.f32 %v564_v56  ;;  %v182_v45 = vld [vmem:[#allocation4 + $0x318] sm:$0xff] }
  0x7e   :  { %v501_v0 = vunpack.c.1.s8 %v4834_v49  ;;  %v4025_v8 = vpack.c.bf16 %v1691_v57, %v1659_v54  ;;  %v1694_v10 = vmul.f32 %v4783_v26, %v1014_v58  ;;  %v1724_v14 = vmul.f32 %v4775_v16, %v1044_v44  ;;  %v181_v44 = vld [vmem:[#allocation4 + $0x310] sm:$0xff] }
  0x7f   :  { %v981_v15 = vcvt.s32.f32 %v469_v59  ;;  %4054 = vmatpush1.bf16.msra.mxu1 %v4053_v60  ;;  %v1756_v62 = vmul.f32 %v4775_v16, %v1076_v63  ;;  %v531_v18 = vunpack.c.2.s8 %v147_v25  ;;  %v563_v19 = vunpack.c.3.s8 %v147_v25 }
  0x80   :  { %v1013_v17 = vcvt.s32.f32 %v501_v0  ;;  %4026 = vmatpush1.bf16.msra.mxu0 %v4025_v8  ;;  %v4055_v23 = vpack.c.bf16 %v1694_v10, %v1662_v61  ;;  %v534_v2 = vunpack.c.2.s8 %v150_v34  ;;  %v566_v27 = vunpack.c.3.s8 %v150_v34 }
  0x81   :  { %v1661_v24 = vmul.f32 %v4796_v48, %v981_v15  ;;  %v4027_v28 = vpack.c.bf16 %v1756_v62, %v1724_v14  ;;  %v1043_v22 = vcvt.s32.f32 %v531_v18  ;;  %v1075_v30 = vcvt.s32.f32 %v563_v19 }
  0x82   :  { %v1693_v29 = vmul.f32 %v4796_v48, %v1013_v17  ;;  %4056 = vmatprep.subr.bf16.mxu1 %v4055_v23  ;;  %v1046_v32 = vcvt.s32.f32 %v534_v2  ;;  %v1078_v33 = vcvt.s32.f32 %v566_v27  ;;  %v596_v35 = vunpack.c.0.s8 %v180_v21 }
  0x83   :  { %v628_v36 = vunpack.c.1.s8 %v180_v21  ;;  %4028 = vmatprep.subr.bf16.mxu0 %v4027_v28  ;;  %v1723_v39 = vmul.f32 %v4779_v20, %v1043_v22  ;;  %v1755_v40 = vmul.f32 %v4779_v20, %v1075_v30  ;;  %v533_v31 = vunpack.c.2.s8 %v4834_v49 }
  0x84   :  { %v4057_v25 = vpack.c.bf16 %v1693_v29, %v1661_v24  ;;  %v1726_v34 = vmul.f32 %v4783_v26, %v1046_v32  ;;  %v1758_v41 = vmul.f32 %v4783_v26, %v1078_v33  ;;  %v1108_v42 = vcvt.s32.f32 %v596_v35 }
  0x85   :  { %v1140_v43 = vcvt.s32.f32 %v628_v36  ;;  %v4029_v46 = vpack.c.bf16 %v1755_v40, %v1723_v39  ;;  %v565_v47 = vunpack.c.3.s8 %v4834_v49  ;;  %v1045_v50 = vcvt.s32.f32 %v533_v31  ;;  %v88_v39 = vld [vmem:[#allocation4 + $0x28] sm:$0xff] }
  0x86   :  { %4058 = vmatpush1.bf16.msra.mxu1 %v4057_v25  ;;  %v595_v51 = vunpack.c.0.s8 %v179_v38  ;;  %v4059_v37 = vpack.c.bf16 %v1758_v41, %v1726_v34  ;;  %v1788_v52 = vmul.f32 %v4775_v16, %v1108_v42  ;;  %v627_v54 = vunpack.c.1.s8 %v179_v38 }
  0x87   :  { %v1820_v53 = vmul.f32 %v4775_v16, %v1140_v43  ;;  %4030 = vmatpush1.bf16.msra.mxu0 %v4029_v46  ;;  %v1077_v55 = vcvt.s32.f32 %v565_v47  ;;  %v1725_v56 = vmul.f32 %v4796_v48, %v1045_v50  ;;  %v598_v58 = vunpack.c.0.s8 %v182_v45 }
  0x88   :  { %v1107_v57 = vcvt.s32.f32 %v595_v51  ;;  %4060 = vmatprep.subr.bf16.mxu1 %v4059_v37  ;;  %v1139_v60 = vcvt.s32.f32 %v627_v54  ;;  %v630_v61 = vunpack.c.1.s8 %v182_v45  ;;  %v660_v49 = vunpack.c.2.s8 %v180_v21  ;;  %v4867_v37 = vld [vmem:[#allocation4 + $0x20] sm:$0xff] }
  0x89   :  { %v4031_v59 = vpack.c.bf16 %v1820_v53, %v1788_v52  ;;  %v1757_v63 = vmul.f32 %v4796_v48, %v1077_v55  ;;  %v1110_v8 = vcvt.s32.f32 %v598_v58  ;;  %v692_v10 = vunpack.c.3.s8 %v180_v21 }
  0x8a   :  { %v1787_v0 = vmul.f32 %v4779_v20, %v1107_v57  ;;  %v1819_v14 = vmul.f32 %v4779_v20, %v1139_v60  ;;  %v1142_v15 = vcvt.s32.f32 %v630_v61  ;;  %v1172_v62 = vcvt.s32.f32 %v660_v49 }
  0x8b   :  { %4032 = vmatprep.subr.bf16.mxu0 %v4031_v59  ;;  %v597_v17 = vunpack.c.0.s8 %v181_v44  ;;  %v4061_v18 = vpack.c.bf16 %v1757_v63, %v1725_v56  ;;  %v1790_v19 = vmul.f32 %v4783_v26, %v1110_v8  ;;  %v1204_v23 = vcvt.s32.f32 %v692_v10 }
  0x8c   :  { %v629_v24 = vunpack.c.1.s8 %v181_v44  ;;  %v4033_v2 = vpack.c.bf16 %v1819_v14, %v1787_v0  ;;  %v1822_v27 = vmul.f32 %v4783_v26, %v1142_v15  ;;  %v1852_v28 = vmul.f32 %v4775_v16, %v1172_v62 }
  0x8d   :  { %v1109_v29 = vcvt.s32.f32 %v597_v17  ;;  %4062 = vmatpush1.bf16.msra.mxu1 %v4061_v18  ;;  %v1884_v21 = vmul.f32 %v4775_v16, %v1204_v23  ;;  %v659_v30 = vunpack.c.2.s8 %v179_v38  ;;  %v691_v32 = vunpack.c.3.s8 %v179_v38 }
  0x8e   :  { %v1141_v22 = vcvt.s32.f32 %v629_v24  ;;  %4034 = vmatpush1.bf16.msra.mxu0 %v4033_v2  ;;  %v4063_v33 = vpack.c.bf16 %v1822_v27, %v1790_v19  ;;  %v662_v36 = vunpack.c.2.s8 %v182_v45  ;;  %v694_v25 = vunpack.c.3.s8 %v182_v45 }
  0x8f   :  { %v1789_v35 = vmul.f32 %v4796_v48, %v1109_v29  ;;  %v4035_v40 = vpack.c.bf16 %v1884_v21, %v1852_v28  ;;  %v1171_v34 = vcvt.s32.f32 %v659_v30  ;;  %v1203_v41 = vcvt.s32.f32 %v691_v32 }
  0x90   :  { %v1821_v31 = vmul.f32 %v4796_v48, %v1141_v22  ;;  %4064 = vmatprep.subr.bf16.mxu1 %v4063_v33  ;;  %v1174_v42 = vcvt.s32.f32 %v662_v36  ;;  %v1206_v43 = vcvt.s32.f32 %v694_v25  ;;  %v661_v46 = vunpack.c.2.s8 %v181_v44 }
  0x91   :  { %v693_v16 = vunpack.c.3.s8 %v181_v44  ;;  %4036 = vmatprep.subr.bf16.mxu0 %v4035_v40  ;;  %v1851_v38 = vmul.f32 %v4779_v20, %v1171_v34  ;;  %v1883_v50 = vmul.f32 %v4779_v20, %v1203_v41  ;;  %v216_v51 = vunpack.c.0.s8 %v88_v39  ;;  %v90_v44 = vld [vmem:[#allocation4 + $0x38] sm:$0xff]  ;;  %v120_v34 = vld [vmem:[#allocation4 + $0x128] sm:$0xff] }
  0x92   :  { %v4065_v47 = vpack.c.bf16 %v1821_v31, %v1789_v35  ;;  %v1854_v45 = vmul.f32 %v4783_v26, %v1174_v42  ;;  %v1886_v52 = vmul.f32 %v4783_v26, %v1206_v43  ;;  %v1173_v53 = vcvt.s32.f32 %v661_v46  ;;  %v4878_v26 = vld [vmem:[#allocation2] sm:$0xff] }
  0x93   :  { %v1205_v54 = vcvt.s32.f32 %v693_v16  ;;  %v4037_v55 = vpack.c.bf16 %v1883_v50, %v1851_v38  ;;  %v248_v56 = vunpack.c.1.s8 %v88_v39  ;;  %v728_v57 = vcvt.s32.f32 %v216_v51 }
  0x94   :  { %4066 = vmatpush1.bf16.msra.mxu1 %v4065_v47  ;;  %v4873_v58 = vrot.slane %v4765_v9, %v4763_v7  ;;  %v4067_v59 = vpack.c.bf16 %v1886_v52, %v1854_v45  ;;  %v1853_v20 = vmul.f32 %v4796_v48, %v1173_v53  ;;  %v215_v61 = vunpack.c.0.s8 %v4867_v37 }
  0x95   :  { %v1885_v60 = vmul.f32 %v4796_v48, %v1205_v54  ;;  %4038 = vmatpush1.bf16.msra.mxu0 %v4037_v55  ;;  %v760_v49 = vcvt.s32.f32 %v248_v56  ;;  %v247_v0 = vunpack.c.1.s8 %v4867_v37  ;;  %v4884_v8 = vrot.slane %v4765_v9, %v4767_v11  ;;  %v4886_v48 = vld [vmem:[#allocation4 + $0x30] sm:$0xff] }
  0x96   :  { %v1408_v63 = vmul.f32 %v4873_v58, %v728_v57  ;;  %4068 = vmatprep.subr.bf16.mxu1 %v4067_v59  ;;  %v727_v14 = vcvt.s32.f32 %v215_v61  ;;  %v218_v15 = vunpack.c.0.s8 %v90_v44  ;;  %v250_v62 = vunpack.c.1.s8 %v90_v44  ;;  %v119_v57 = vld [vmem:[#allocation4 + $0x120] sm:$0xff] }
  0x97   :  { %v4069_v10 = vpack.c.bf16 %v1885_v60, %v1853_v20  ;;  %v1440_v17 = vmul.f32 %v4873_v58, %v760_v49  ;;  %v759_v18 = vcvt.s32.f32 %v247_v0  ;;  %v4891_v19 = vrot.slane %v4765_v9, %v4769_v12  ;;  %v122_v0 = vld [vmem:[#allocation4 + $0x138] sm:$0xff] }
  0x98   :  { %v280_v23 = vunpack.c.2.s8 %v88_v39  ;;  %2149 = vmatmul.mubr.f32.vlgmr.msra.gmra.mrb[0].mxu0 %v4878_v26  ;;  %v1407_v24 = vmul.f32 %v4884_v8, %v727_v14  ;;  %v730_v2 = vcvt.s32.f32 %v218_v15  ;;  %v762_v27 = vcvt.s32.f32 %v250_v62 }
  0x99   :  { %4070 = vmatpush1.bf16.msra.mxu1 %v4069_v10  ;;  %v312_v28 = vunpack.c.3.s8 %v88_v39  ;;  %v4071_v29 = vpack.c.bf16 %v1440_v17, %v1408_v63  ;;  %v1439_v21 = vmul.f32 %v4884_v8, %v759_v18  ;;  %v217_v30 = vunpack.c.0.s8 %v4886_v48  ;;  %2290 = vmatprep.mubr.f32.mxu0 %v4657_v1 }
  0x9a   :  { %v792_v22 = vcvt.s32.f32 %v280_v23  ;;  %v1410_v32 = vmul.f32 %v4891_v19, %v730_v2  ;;  %v1442_v33 = vmul.f32 %v4891_v19, %v762_v27  ;;  %v249_v36 = vunpack.c.1.s8 %v4886_v48 }
  0x9b   :  { %v824_v35 = vcvt.s32.f32 %v312_v28  ;;  %4072 = vmatprep.subr.bf16.mxu0 %v4071_v29  ;;  %v4073_v25 = vpack.c.bf16 %v1439_v21, %v1407_v24  ;;  %v729_v40 = vcvt.s32.f32 %v217_v30  ;;  %v4905_v31 = vrot.slane %v4765_v9, %v4771_v13  ;;  %v4922_v21 = vld [vmem:[#allocation4 + $0x130] sm:$0xff] }
  0x9c   :  { %2220 = vmatmul.mubr.f32.vlgmr.msra.gmra.mrb[0].mxu1 %v4878_v26  ;;  %v1472_v39 = vmul.f32 %v4873_v58, %v792_v22  ;;  %v4103_v41 = vpack.c.bf16 %v1442_v33, %v1410_v32  ;;  %v761_v43 = vcvt.s32.f32 %v249_v36  ;;  %v279_v46 = vunpack.c.2.s8 %v4867_v37 }
  0x9d   :  { %v1504_v42 = vmul.f32 %v4873_v58, %v824_v35  ;;  %2361 = vmatprep.mubr.f32.mxu1 %v4657_v1  ;;  %4074 = vmatpush1.bf16.msra.mxu0 %v4073_v25  ;;  %v1409_v16 = vmul.f32 %v4905_v31, %v729_v40  ;;  %v311_v47 = vunpack.c.3.s8 %v4867_v37  ;;  %v282_v38 = vunpack.c.2.s8 %v90_v44 }
  0x9e   :  { %v314_v50 = vunpack.c.3.s8 %v90_v44  ;;  %4104 = vmatprep.subr.bf16.mxu1 %v4103_v41  ;;  %v1441_v9 = vmul.f32 %v4905_v31, %v761_v43  ;;  %v791_v45 = vcvt.s32.f32 %v279_v46  ;;  %v344_v52 = vunpack.c.0.s8 %v120_v34 }
  0x9f   :  { %v4075_v51 = vpack.c.bf16 %v1504_v42, %v1472_v39  ;;  %v823_v53 = vcvt.s32.f32 %v311_v47  ;;  %v794_v54 = vcvt.s32.f32 %v282_v38  ;;  %v376_v56 = vunpack.c.1.s8 %v120_v34 }
  0xa0   :  { %v826_v55 = vcvt.s32.f32 %v314_v50  ;;  %v4105_v59 = vpack.c.bf16 %v1441_v9, %v1409_v16  ;;  %v1471_v20 = vmul.f32 %v4884_v8, %v791_v45  ;;  %v856_v60 = vcvt.s32.f32 %v344_v52 }
  0xa1   :  { %4076 = vmatprep.subr.bf16.mxu0 %v4075_v51  ;;  %v281_v37 = vunpack.c.2.s8 %v4886_v48  ;;  %v1503_v44 = vmul.f32 %v4884_v8, %v823_v53  ;;  %v1474_v61 = vmul.f32 %v4891_v19, %v794_v54  ;;  %v888_v63 = vcvt.s32.f32 %v376_v56  ;;  %v152_v54 = vld [vmem:[#allocation4 + $0x228] sm:$0xff] }
  0xa2   :  { %v1506_v49 = vmul.f32 %v4891_v19, %v826_v55  ;;  %4106 = vmatpush1.bf16.msra.mxu1 %v4105_v59  ;;  %v1536_v10 = vmul.f32 %v4873_v58, %v856_v60  ;;  %v313_v14 = vunpack.c.3.s8 %v4886_v48  ;;  %v343_v62 = vunpack.c.0.s8 %v119_v57 }
  0xa3   :  { %v793_v15 = vcvt.s32.f32 %v281_v37  ;;  %v4077_v17 = vpack.c.bf16 %v1503_v44, %v1471_v20  ;;  %v1568_v23 = vmul.f32 %v4873_v58, %v888_v63  ;;  %v375_v24 = vunpack.c.1.s8 %v119_v57 }
  0xa4   :  { %v4107_v18 = vpack.c.bf16 %v1506_v49, %v1474_v61  ;;  %v825_v2 = vcvt.s32.f32 %v313_v14  ;;  %v855_v28 = vcvt.s32.f32 %v343_v62  ;;  %v346_v29 = vunpack.c.0.s8 %v122_v0 }
  0xa5   :  { %v1473_v27 = vmul.f32 %v4905_v31, %v793_v15  ;;  %4078 = vmatpush1.bf16.msra.mxu0 %v4077_v17  ;;  %v4079_v22 = vpack.c.bf16 %v1568_v23, %v1536_v10  ;;  %v887_v30 = vcvt.s32.f32 %v375_v24  ;;  %v378_v32 = vunpack.c.1.s8 %v122_v0  ;;  %v151_v15 = vld [vmem:[#allocation4 + $0x220] sm:$0xff] }
  0xa6   :  { %4108 = vmatprep.subr.bf16.mxu1 %v4107_v18  ;;  %v408_v48 = vunpack.c.2.s8 %v120_v34  ;;  %v1505_v33 = vmul.f32 %v4905_v31, %v825_v2  ;;  %v1535_v35 = vmul.f32 %v4884_v8, %v855_v28  ;;  %v858_v36 = vcvt.s32.f32 %v346_v29 }
  0xa7   :  { %v440_v25 = vunpack.c.3.s8 %v120_v34  ;;  %4080 = vmatprep.subr.bf16.mxu0 %v4079_v22  ;;  %v1567_v39 = vmul.f32 %v4884_v8, %v887_v30  ;;  %v890_v40 = vcvt.s32.f32 %v378_v32  ;;  %v345_v42 = vunpack.c.0.s8 %v4922_v21 }
  0xa8   :  { %v920_v41 = vcvt.s32.f32 %v408_v48  ;;  %v4109_v43 = vpack.c.bf16 %v1505_v33, %v1473_v27  ;;  %v1538_v46 = vmul.f32 %v4891_v19, %v858_v36  ;;  %v377_v47 = vunpack.c.1.s8 %v4922_v21  ;;  %v154_v27 = vld [vmem:[#allocation4 + $0x238] sm:$0xff] }
  0xa9   :  { %v952_v16 = vcvt.s32.f32 %v440_v25  ;;  %v4081_v38 = vpack.c.bf16 %v1567_v39, %v1535_v35  ;;  %v1570_v50 = vmul.f32 %v4891_v19, %v890_v40  ;;  %v857_v9 = vcvt.s32.f32 %v345_v42 }
  0xaa   :  { %v1600_v51 = vmul.f32 %v4873_v58, %v920_v41  ;;  %4110 = vmatpush1.bf16.msra.mxu1 %v4109_v43  ;;  %v889_v45 = vcvt.s32.f32 %v377_v47  ;;  %v407_v52 = vunpack.c.2.s8 %v119_v57  ;;  %v439_v53 = vunpack.c.3.s8 %v119_v57  ;;  %v4944_v41 = vld [vmem:[#allocation4 + $0x230] sm:$0xff] }
  0xab   :  { %v1632_v34 = vmul.f32 %v4873_v58, %v952_v16  ;;  %4082 = vmatpush1.bf16.msra.mxu0 %v4081_v38  ;;  %v4111_v55 = vpack.c.bf16 %v1570_v50, %v1538_v46  ;;  %v1537_v56 = vmul.f32 %v4905_v31, %v857_v9  ;;  %v410_v59 = vunpack.c.2.s8 %v122_v0 }
  0xac   :  { %v442_v20 = vunpack.c.3.s8 %v122_v0  ;;  %v1569_v37 = vmul.f32 %v4905_v31, %v889_v45  ;;  %v919_v44 = vcvt.s32.f32 %v407_v52  ;;  %v951_v61 = vcvt.s32.f32 %v439_v53 }
  0xad   :  { %v4083_v60 = vpack.c.bf16 %v1632_v34, %v1600_v51  ;;  %4112 = vmatprep.subr.bf16.mxu1 %v4111_v55  ;;  %v922_v49 = vcvt.s32.f32 %v410_v59  ;;  %v472_v10 = vunpack.c.0.s8 %v152_v54  ;;  %v504_v14 = vunpack.c.1.s8 %v152_v54 }
  0xae   :  { %v954_v63 = vcvt.s32.f32 %v442_v20  ;;  %v4113_v57 = vpack.c.bf16 %v1569_v37, %v1537_v56  ;;  %v1599_v62 = vmul.f32 %v4884_v8, %v919_v44  ;;  %v1631_v17 = vmul.f32 %v4884_v8, %v951_v61 }
  0xaf   :  { %4084 = vmatprep.subr.bf16.mxu0 %v4083_v60  ;;  %v409_v18 = vunpack.c.2.s8 %v4922_v21  ;;  %v1602_v0 = vmul.f32 %v4891_v19, %v922_v49  ;;  %v984_v24 = vcvt.s32.f32 %v472_v10  ;;  %v1016_v2 = vcvt.s32.f32 %v504_v14 }
  0xb0   :  { %v1634_v23 = vmul.f32 %v4891_v19, %v954_v63  ;;  %4114 = vmatpush1.bf16.msra.mxu1 %v4113_v57  ;;  %v4085_v28 = vpack.c.bf16 %v1631_v17, %v1599_v62  ;;  %v441_v29 = vunpack.c.3.s8 %v4922_v21  ;;  %v471_v30 = vunpack.c.0.s8 %v151_v15  ;;  %v184_v63 = vld [vmem:[#allocation4 + $0x328] sm:$0xff] }
  0xb1   :  { %v921_v22 = vcvt.s32.f32 %v409_v18  ;;  %v1664_v48 = vmul.f32 %v4873_v58, %v984_v24  ;;  %v1696_v33 = vmul.f32 %v4873_v58, %v1016_v2  ;;  %v503_v35 = vunpack.c.1.s8 %v151_v15 }
  0xb2   :  { %v4115_v32 = vpack.c.bf16 %v1634_v23, %v1602_v0  ;;  %4086 = vmatpush1.bf16.msra.mxu0 %v4085_v28  ;;  %v953_v36 = vcvt.s32.f32 %v441_v29  ;;  %v983_v39 = vcvt.s32.f32 %v471_v30  ;;  %v474_v40 = vunpack.c.0.s8 %v154_v27 }
  0xb3   :  { %v1601_v25 = vmul.f32 %v4905_v31, %v921_v22  ;;  %v4087_v42 = vpack.c.bf16 %v1696_v33, %v1664_v48  ;;  %v1015_v43 = vcvt.s32.f32 %v503_v35  ;;  %v506_v21 = vunpack.c.1.s8 %v154_v27  ;;  %v183_v22 = vld [vmem:[#allocation4 + $0x320] sm:$0xff] }
  0xb4   :  { %4116 = vmatprep.subr.bf16.mxu1 %v4115_v32  ;;  %v536_v46 = vunpack.c.2.s8 %v152_v54  ;;  %v1633_v16 = vmul.f32 %v4905_v31, %v953_v36  ;;  %v1663_v47 = vmul.f32 %v4884_v8, %v983_v39  ;;  %v986_v38 = vcvt.s32.f32 %v474_v40 }
  0xb5   :  { %v568_v50 = vunpack.c.3.s8 %v152_v54  ;;  %4088 = vmatprep.subr.bf16.mxu0 %v4087_v42  ;;  %v1695_v51 = vmul.f32 %v4884_v8, %v1015_v43  ;;  %v1018_v9 = vcvt.s32.f32 %v506_v21  ;;  %v473_v45 = vunpack.c.0.s8 %v4944_v41 }
  0xb6   :  { %v1048_v34 = vcvt.s32.f32 %v536_v46  ;;  %v4117_v52 = vpack.c.bf16 %v1633_v16, %v1601_v25  ;;  %v1666_v53 = vmul.f32 %v4891_v19, %v986_v38  ;;  %v505_v56 = vunpack.c.1.s8 %v4944_v41  ;;  %v186_v25 = vld [vmem:[#allocation4 + $0x338] sm:$0xff] }
  0xb7   :  { %v1080_v55 = vcvt.s32.f32 %v568_v50  ;;  %v4089_v59 = vpack.c.bf16 %v1695_v51, %v1663_v47  ;;  %v1698_v20 = vmul.f32 %v4891_v19, %v1018_v9  ;;  %v985_v37 = vcvt.s32.f32 %v473_v45 }
  0xb8   :  { %v1728_v60 = vmul.f32 %v4873_v58, %v1048_v34  ;;  %4118 = vmatpush1.bf16.msra.mxu1 %v4117_v52  ;;  %v1017_v44 = vcvt.s32.f32 %v505_v56  ;;  %v535_v61 = vunpack.c.2.s8 %v151_v15  ;;  %v567_v49 = vunpack.c.3.s8 %v151_v15  ;;  %v185_v34 = vld [vmem:[#allocation4 + $0x330] sm:$0xff] }
  0xb9   :  { %v1760_v54 = vmul.f32 %v4873_v58, %v1080_v55  ;;  %4090 = vmatpush1.bf16.msra.mxu0 %v4089_v59  ;;  %v4119_v10 = vpack.c.bf16 %v1698_v20, %v1666_v53  ;;  %v1665_v14 = vmul.f32 %v4905_v31, %v985_v37  ;;  %v538_v57 = vunpack.c.2.s8 %v154_v27 }
  0xba   :  { %v570_v62 = vunpack.c.3.s8 %v154_v27  ;;  %v1697_v18 = vmul.f32 %v4905_v31, %v1017_v44  ;;  %v1047_v0 = vcvt.s32.f32 %v535_v61  ;;  %v1079_v23 = vcvt.s32.f32 %v567_v49 }
  0xbb   :  { %v4091_v17 = vpack.c.bf16 %v1760_v54, %v1728_v60  ;;  %4120 = vmatprep.subr.bf16.mxu1 %v4119_v10  ;;  %v1050_v24 = vcvt.s32.f32 %v538_v57  ;;  %v600_v28 = vunpack.c.0.s8 %v184_v63  ;;  %v632_v29 = vunpack.c.1.s8 %v184_v63 }
  0xbc   :  { %v1082_v2 = vcvt.s32.f32 %v570_v62  ;;  %v4121_v15 = vpack.c.bf16 %v1697_v18, %v1665_v14  ;;  %v1727_v30 = vmul.f32 %v4884_v8, %v1047_v0  ;;  %v1759_v32 = vmul.f32 %v4884_v8, %v1079_v23 }
  0xbd   :  { %4092 = vmatprep.subr.bf16.mxu0 %v4091_v17  ;;  %v537_v48 = vunpack.c.2.s8 %v4944_v41  ;;  %v1730_v27 = vmul.f32 %v4891_v19, %v1050_v24  ;;  %v1112_v35 = vcvt.s32.f32 %v600_v28  ;;  %v1144_v36 = vcvt.s32.f32 %v632_v29 }
  0xbe   :  { %v1762_v33 = vmul.f32 %v4891_v19, %v1082_v2  ;;  %4122 = vmatpush1.bf16.msra.mxu1 %v4121_v15  ;;  %v4093_v39 = vpack.c.bf16 %v1759_v32, %v1727_v30  ;;  %v569_v40 = vunpack.c.3.s8 %v4944_v41  ;;  %v599_v43 = vunpack.c.0.s8 %v183_v22  ;;  %v92_v30 = vld [vmem:[#allocation4 + $0x48] sm:$0xff] }
  0xbf   :  { %v1049_v42 = vcvt.s32.f32 %v537_v48  ;;  %v1792_v46 = vmul.f32 %v4873_v58, %v1112_v35  ;;  %v1824_v16 = vmul.f32 %v4873_v58, %v1144_v36  ;;  %v631_v47 = vunpack.c.1.s8 %v183_v22 }
  0xc0   :  { %v4123_v21 = vpack.c.bf16 %v1762_v33, %v1730_v27  ;;  %4094 = vmatpush1.bf16.msra.mxu0 %v4093_v39  ;;  %v1081_v38 = vcvt.s32.f32 %v569_v40  ;;  %v1111_v51 = vcvt.s32.f32 %v599_v43  ;;  %v602_v9 = vunpack.c.0.s8 %v186_v25  ;;  %v4975_v40 = vld [vmem:[#allocation6 + $0x8] sm:$0xff] }
  0xc1   :  { %v1729_v50 = vmul.f32 %v4905_v31, %v1049_v42  ;;  %v4095_v45 = vpack.c.bf16 %v1824_v16, %v1792_v46  ;;  %v1143_v52 = vcvt.s32.f32 %v631_v47  ;;  %v634_v53 = vunpack.c.1.s8 %v186_v25 }
  0xc2   :  { %4124 = vmatprep.subr.bf16.mxu1 %v4123_v21  ;;  %v664_v41 = vunpack.c.2.s8 %v184_v63  ;;  %v1761_v55 = vmul.f32 %v4905_v31, %v1081_v38  ;;  %v1791_v56 = vmul.f32 %v4884_v8, %v1111_v51  ;;  %v1114_v59 = vcvt.s32.f32 %v602_v9  ;;  %v4979_v21 = vld [vmem:[#allocation4 + $0x40] sm:$0xff] }
  0xc3   :  { %v696_v20 = vunpack.c.3.s8 %v184_v63  ;;  %4096 = vmatprep.subr.bf16.mxu0 %v4095_v45  ;;  %v1823_v60 = vmul.f32 %v4884_v8, %v1143_v52  ;;  %v1146_v37 = vcvt.s32.f32 %v634_v53  ;;  %v601_v44 = vunpack.c.0.s8 %v185_v34  ;;  %v94_v45 = vld [vmem:[#allocation4 + $0x58] sm:$0xff] }
  0xc4   :  { %v1176_v54 = vcvt.s32.f32 %v664_v41  ;;  %v4125_v61 = vpack.c.bf16 %v1761_v55, %v1729_v50  ;;  %v1794_v49 = vmul.f32 %v4891_v19, %v1114_v59  ;;  %v633_v14 = vunpack.c.1.s8 %v185_v34 }
  0xc5   :  { %v1208_v10 = vcvt.s32.f32 %v696_v20  ;;  %v4097_v57 = vpack.c.bf16 %v1823_v60, %v1791_v56  ;;  %v1826_v62 = vmul.f32 %v4891_v19, %v1146_v37  ;;  %v1113_v18 = vcvt.s32.f32 %v601_v44  ;;  %v4996_v44 = vld [vmem:[#allocation4 + $0x50] sm:$0xff] }
  0xc6   :  { %v1856_v17 = vmul.f32 %v4873_v58, %v1176_v54  ;;  %4126 = vmatpush1.bf16.msra.mxu1 %v4125_v61  ;;  %v1145_v0 = vcvt.s32.f32 %v633_v14  ;;  %v663_v23 = vunpack.c.2.s8 %v183_v22  ;;  %v695_v24 = vunpack.c.3.s8 %v183_v22 }
  0xc7   :  { %v1888_v63 = vmul.f32 %v4873_v58, %v1208_v10  ;;  %4098 = vmatpush1.bf16.msra.mxu0 %v4097_v57  ;;  %v4127_v2 = vpack.c.bf16 %v1826_v62, %v1794_v49  ;;  %v1793_v28 = vmul.f32 %v4905_v31, %v1113_v18  ;;  %v666_v29 = vunpack.c.2.s8 %v186_v25 }
  0xc8   :  { %v698_v15 = vunpack.c.3.s8 %v186_v25  ;;  %v1825_v48 = vmul.f32 %v4905_v31, %v1145_v0  ;;  %v1175_v27 = vcvt.s32.f32 %v663_v23  ;;  %v1207_v33 = vcvt.s32.f32 %v695_v24 }
  0xc9   :  { %v4099_v32 = vpack.c.bf16 %v1888_v63, %v1856_v17  ;;  %4128 = vmatprep.subr.bf16.mxu1 %v4127_v2  ;;  %v1178_v35 = vcvt.s32.f32 %v666_v29  ;;  %v665_v39 = vunpack.c.2.s8 %v185_v34  ;;  %v697_v58 = vunpack.c.3.s8 %v185_v34 }
  0xca   :  { %v1210_v36 = vcvt.s32.f32 %v698_v15  ;;  %v4129_v22 = vpack.c.bf16 %v1825_v48, %v1793_v28  ;;  %v1855_v42 = vmul.f32 %v4884_v8, %v1175_v27  ;;  %v1887_v43 = vmul.f32 %v4884_v8, %v1207_v33  ;;  %v124_v27 = vld [vmem:[#allocation4 + $0x148] sm:$0xff] }
  0xcb   :  { %4100 = vmatprep.subr.bf16.mxu0 %v4099_v32  ;;  %v220_v25 = vunpack.c.0.s8 %v92_v30  ;;  %v1858_v46 = vmul.f32 %v4891_v19, %v1178_v35  ;;  %v1177_v47 = vcvt.s32.f32 %v665_v39  ;;  %v1209_v38 = vcvt.s32.f32 %v697_v58 }
  0xcc   :  { %v1890_v16 = vmul.f32 %v4891_v19, %v1210_v36  ;;  %4130 = vmatpush1.bf16.msra.mxu1 %v4129_v22  ;;  %v4101_v50 = vpack.c.bf16 %v1887_v43, %v1855_v42  ;;  %v252_v51 = vunpack.c.1.s8 %v92_v30  ;;  %v4985_v34 = vrot.slane %v4975_v40, %v4755_v3 }
  0xcd   :  { %v732_v9 = vcvt.s32.f32 %v220_v25  ;;  %v1857_v8 = vmul.f32 %v4905_v31, %v1177_v47  ;;  %v1889_v53 = vmul.f32 %v4905_v31, %v1209_v38  ;;  %v219_v41 = vunpack.c.0.s8 %v4979_v21 }
  0xce   :  { %v4131_v52 = vpack.c.bf16 %v1890_v16, %v1858_v46  ;;  %4102 = vmatpush1.bf16.msra.mxu0 %v4101_v50  ;;  %v764_v19 = vcvt.s32.f32 %v252_v51  ;;  %v251_v56 = vunpack.c.1.s8 %v4979_v21  ;;  %v4994_v59 = vrot.slane %v4975_v40, %v4757_v4 }
  0xcf   :  { %v1412_v55 = vmul.f32 %v4985_v34, %v732_v9  ;;  %v4133_v20 = vpack.c.bf16 %v1889_v53, %v1857_v8  ;;  %v731_v60 = vcvt.s32.f32 %v219_v41  ;;  %v222_v37 = vunpack.c.0.s8 %v94_v45  ;;  %v123_v9 = vld [vmem:[#allocation4 + $0x140] sm:$0xff] }
  0xd0   :  { %4132 = vmatprep.subr.bf16.mxu1 %v4131_v52  ;;  %v254_v54 = vunpack.c.1.s8 %v94_v45  ;;  %v1444_v31 = vmul.f32 %v4985_v34, %v764_v19  ;;  %v763_v61 = vcvt.s32.f32 %v251_v56  ;;  %v5001_v49 = vrot.slane %v4975_v40, %v4759_v5  ;;  %v126_v56 = vld [vmem:[#allocation4 + $0x158] sm:$0xff] }
  0xd1   :  { %v284_v10 = vunpack.c.2.s8 %v92_v30  ;;  %2291 = vmatmul.mubr.f32.vlgmr.msra.gmra.mrb[2].mxu0 %v4878_v26  ;;  %4134 = vmatpush1.bf16.msra.mxu1 %v4133_v20  ;;  %v1411_v14 = vmul.f32 %v4994_v59, %v731_v60  ;;  %v734_v57 = vcvt.s32.f32 %v222_v37  ;;  %v316_v17 = vunpack.c.3.s8 %v92_v30 }
  0xd2   :  { %v766_v62 = vcvt.s32.f32 %v254_v54  ;;  %v4135_v18 = vpack.c.bf16 %v1444_v31, %v1412_v55  ;;  %v1443_v63 = vmul.f32 %v4994_v59, %v763_v61  ;;  %v221_v23 = vunpack.c.0.s8 %v4996_v44  ;;  %2432 = vmatprep.mubr.f32.mxu0 %v4657_v1 }
  0xd3   :  { %v796_v0 = vcvt.s32.f32 %v284_v10  ;;  %v1414_v24 = vmul.f32 %v5001_v49, %v734_v57  ;;  %v828_v28 = vcvt.s32.f32 %v316_v17  ;;  %v253_v29 = vunpack.c.1.s8 %v4996_v44 }
  0xd4   :  { %v1446_v2 = vmul.f32 %v5001_v49, %v766_v62  ;;  %4136 = vmatprep.subr.bf16.mxu0 %v4135_v18  ;;  %v4137_v15 = vpack.c.bf16 %v1443_v63, %v1411_v14  ;;  %2362 = vmatmul.mubr.f32.vlgmr.msra.gmra.mrb[2].mxu1 %v4878_v26  ;;  %v733_v32 = vcvt.s32.f32 %v221_v23  ;;  %v5015_v48 = vrot.slane %v4975_v40, %v4761_v6  ;;  %v5032_v63 = vld [vmem:[#allocation4 + $0x150] sm:$0xff] }
  0xd5   :  { %v1476_v30 = vmul.f32 %v4985_v34, %v796_v0  ;;  %v1508_v35 = vmul.f32 %v4985_v34, %v828_v28  ;;  %v765_v36 = vcvt.s32.f32 %v253_v29  ;;  %v283_v39 = vunpack.c.2.s8 %v4979_v21  ;;  %2503 = vmatprep.mubr.f32.mxu1 %v4657_v1 }
  0xd6   :  { %v4167_v33 = vpack.c.bf16 %v1446_v2, %v1414_v24  ;;  %4138 = vmatpush1.bf16.msra.mxu0 %v4137_v15  ;;  %v1413_v58 = vmul.f32 %v5015_v48, %v733_v32  ;;  %v315_v26 = vunpack.c.3.s8 %v4979_v21  ;;  %v286_v22 = vunpack.c.2.s8 %v94_v45 }
  0xd7   :  { %v318_v42 = vunpack.c.3.s8 %v94_v45  ;;  %v4139_v43 = vpack.c.bf16 %v1508_v35, %v1476_v30  ;;  %v1445_v25 = vmul.f32 %v5015_v48, %v765_v36  ;;  %v795_v46 = vcvt.s32.f32 %v283_v39 }
  0xd8   :  { %4168 = vmatprep.subr.bf16.mxu1 %v4167_v33  ;;  %v348_v16 = vunpack.c.0.s8 %v124_v27  ;;  %v827_v47 = vcvt.s32.f32 %v315_v26  ;;  %v798_v38 = vcvt.s32.f32 %v286_v22  ;;  %v380_v51 = vunpack.c.1.s8 %v124_v27 }
  0xd9   :  { %v830_v50 = vcvt.s32.f32 %v318_v42  ;;  %4140 = vmatprep.subr.bf16.mxu0 %v4139_v43  ;;  %v4169_v52 = vpack.c.bf16 %v1445_v25, %v1413_v58  ;;  %v1475_v8 = vmul.f32 %v4994_v59, %v795_v46  ;;  %v285_v21 = vunpack.c.2.s8 %v4996_v44 }
  0xda   :  { %v860_v53 = vcvt.s32.f32 %v348_v16  ;;  %v1507_v45 = vmul.f32 %v4994_v59, %v827_v47  ;;  %v1478_v41 = vmul.f32 %v5001_v49, %v798_v38  ;;  %v892_v55 = vcvt.s32.f32 %v380_v51  ;;  %v156_v38 = vld [vmem:[#allocation4 + $0x248] sm:$0xff] }
  0xdb   :  { %v1510_v19 = vmul.f32 %v5001_v49, %v830_v50  ;;  %4170 = vmatpush1.bf16.msra.mxu1 %v4169_v52  ;;  %v317_v60 = vunpack.c.3.s8 %v4996_v44  ;;  %v797_v37 = vcvt.s32.f32 %v285_v21  ;;  %v347_v54 = vunpack.c.0.s8 %v123_v9 }
  0xdc   :  { %v1540_v20 = vmul.f32 %v4985_v34, %v860_v53  ;;  %v4141_v31 = vpack.c.bf16 %v1507_v45, %v1475_v8  ;;  %v1572_v10 = vmul.f32 %v4985_v34, %v892_v55  ;;  %v379_v14 = vunpack.c.1.s8 %v123_v9 }
  0xdd   :  { %v4171_v61 = vpack.c.bf16 %v1510_v19, %v1478_v41  ;;  %v829_v57 = vcvt.s32.f32 %v317_v60  ;;  %v1477_v62 = vmul.f32 %v5015_v48, %v797_v37  ;;  %v859_v17 = vcvt.s32.f32 %v347_v54  ;;  %v155_v37 = vld [vmem:[#allocation4 + $0x240] sm:$0xff] }
  0xde   :  { %v350_v18 = vunpack.c.0.s8 %v126_v56  ;;  %4142 = vmatpush1.bf16.msra.mxu0 %v4141_v31  ;;  %v4143_v0 = vpack.c.bf16 %v1572_v10, %v1540_v20  ;;  %v891_v23 = vcvt.s32.f32 %v379_v14  ;;  %v382_v24 = vunpack.c.1.s8 %v126_v56 }
  0xdf   :  { %4172 = vmatprep.subr.bf16.mxu1 %v4171_v61  ;;  %v412_v44 = vunpack.c.2.s8 %v124_v27  ;;  %v1509_v2 = vmul.f32 %v5015_v48, %v829_v57  ;;  %v1539_v28 = vmul.f32 %v4994_v59, %v859_v17  ;;  %v444_v15 = vunpack.c.3.s8 %v124_v27 }
  0xe0   :  { %v862_v29 = vcvt.s32.f32 %v350_v18  ;;  %4144 = vmatprep.subr.bf16.mxu0 %v4143_v0  ;;  %v1571_v30 = vmul.f32 %v4994_v59, %v891_v23  ;;  %v894_v32 = vcvt.s32.f32 %v382_v24  ;;  %v349_v35 = vunpack.c.0.s8 %v5032_v63 }
  0xe1   :  { %v924_v33 = vcvt.s32.f32 %v412_v44  ;;  %v4173_v36 = vpack.c.bf16 %v1509_v2, %v1477_v62  ;;  %v956_v58 = vcvt.s32.f32 %v444_v15  ;;  %v381_v26 = vunpack.c.1.s8 %v5032_v63  ;;  %v158_v62 = vld [vmem:[#allocation4 + $0x258] sm:$0xff] }
  0xe2   :  { %v1542_v39 = vmul.f32 %v5001_v49, %v862_v29  ;;  %v4145_v22 = vpack.c.bf16 %v1571_v30, %v1539_v28  ;;  %v1574_v42 = vmul.f32 %v5001_v49, %v894_v32  ;;  %v861_v25 = vcvt.s32.f32 %v349_v35 }
  0xe3   :  { %v1604_v43 = vmul.f32 %v4985_v34, %v924_v33  ;;  %4174 = vmatpush1.bf16.msra.mxu1 %v4173_v36  ;;  %v1636_v27 = vmul.f32 %v4985_v34, %v956_v58  ;;  %v893_v46 = vcvt.s32.f32 %v381_v26  ;;  %v411_v16 = vunpack.c.2.s8 %v123_v9  ;;  %v5054_v33 = vld [vmem:[#allocation4 + $0x250] sm:$0xff] }
  0xe4   :  { %v443_v47 = vunpack.c.3.s8 %v123_v9  ;;  %4146 = vmatpush1.bf16.msra.mxu0 %v4145_v22  ;;  %v4175_v50 = vpack.c.bf16 %v1574_v42, %v1542_v39  ;;  %v1541_v51 = vmul.f32 %v5015_v48, %v861_v25  ;;  %v414_v52 = vunpack.c.2.s8 %v126_v56 }
  0xe5   :  { %v446_v8 = vunpack.c.3.s8 %v126_v56  ;;  %v4147_v53 = vpack.c.bf16 %v1636_v27, %v1604_v43  ;;  %v1573_v21 = vmul.f32 %v5015_v48, %v893_v46  ;;  %v923_v45 = vcvt.s32.f32 %v411_v16 }
  0xe6   :  { %v955_v41 = vcvt.s32.f32 %v443_v47  ;;  %4176 = vmatprep.subr.bf16.mxu1 %v4175_v50  ;;  %v926_v19 = vcvt.s32.f32 %v414_v52  ;;  %v476_v20 = vunpack.c.0.s8 %v156_v38  ;;  %v508_v60 = vunpack.c.1.s8 %v156_v38 }
  0xe7   :  { %v958_v55 = vcvt.s32.f32 %v446_v8  ;;  %4148 = vmatprep.subr.bf16.mxu0 %v4147_v53  ;;  %v4177_v9 = vpack.c.bf16 %v1573_v21, %v1541_v51  ;;  %v1603_v54 = vmul.f32 %v4994_v59, %v923_v45  ;;  %v413_v61 = vunpack.c.2.s8 %v5032_v63 }
  0xe8   :  { %v1635_v31 = vmul.f32 %v4994_v59, %v955_v41  ;;  %v1606_v56 = vmul.f32 %v5001_v49, %v926_v19  ;;  %v988_v14 = vcvt.s32.f32 %v476_v20  ;;  %v1020_v57 = vcvt.s32.f32 %v508_v60 }
  0xe9   :  { %v1638_v10 = vmul.f32 %v5001_v49, %v958_v55  ;;  %4178 = vmatpush1.bf16.msra.mxu1 %v4177_v9  ;;  %v445_v18 = vunpack.c.3.s8 %v5032_v63  ;;  %v925_v0 = vcvt.s32.f32 %v413_v61  ;;  %v475_v23 = vunpack.c.0.s8 %v155_v37  ;;  %v188_v55 = vld [vmem:[#allocation4 + $0x348] sm:$0xff] }
  0xea   :  { %v4149_v17 = vpack.c.bf16 %v1635_v31, %v1603_v54  ;;  %v1668_v44 = vmul.f32 %v4985_v34, %v988_v14  ;;  %v1700_v2 = vmul.f32 %v4985_v34, %v1020_v57  ;;  %v507_v28 = vunpack.c.1.s8 %v155_v37 }
  0xeb   :  { %v4179_v24 = vpack.c.bf16 %v1638_v10, %v1606_v56  ;;  %v957_v29 = vcvt.s32.f32 %v445_v18  ;;  %v1605_v15 = vmul.f32 %v5015_v48, %v925_v0  ;;  %v987_v30 = vcvt.s32.f32 %v475_v23  ;;  %v187_v0 = vld [vmem:[#allocation4 + $0x340] sm:$0xff] }
  0xec   :  { %4150 = vmatpush1.bf16.msra.mxu0 %v4149_v17  ;;  %v478_v32 = vunpack.c.0.s8 %v158_v62  ;;  %v4151_v35 = vpack.c.bf16 %v1700_v2, %v1668_v44  ;;  %v1019_v36 = vcvt.s32.f32 %v507_v28  ;;  %v510_v63 = vunpack.c.1.s8 %v158_v62 }
  0xed   :  { %4180 = vmatprep.subr.bf16.mxu1 %v4179_v24  ;;  %v540_v39 = vunpack.c.2.s8 %v156_v38  ;;  %v1637_v58 = vmul.f32 %v5015_v48, %v957_v29  ;;  %v1667_v26 = vmul.f32 %v4994_v59, %v987_v30  ;;  %v572_v42 = vunpack.c.3.s8 %v156_v38 }
  0xee   :  { %v990_v22 = vcvt.s32.f32 %v478_v32  ;;  %4152 = vmatprep.subr.bf16.mxu0 %v4151_v35  ;;  %v1699_v43 = vmul.f32 %v4994_v59, %v1019_v36  ;;  %v1022_v25 = vcvt.s32.f32 %v510_v63  ;;  %v477_v46 = vunpack.c.0.s8 %v5054_v33 }
  0xef   :  { %v1052_v27 = vcvt.s32.f32 %v540_v39  ;;  %v4181_v16 = vpack.c.bf16 %v1637_v58, %v1605_v15  ;;  %v1084_v50 = vcvt.s32.f32 %v572_v42  ;;  %v509_v51 = vunpack.c.1.s8 %v5054_v33  ;;  %v190_v15 = vld [vmem:[#allocation4 + $0x358] sm:$0xff] }
  0xf0   :  { %v1670_v47 = vmul.f32 %v5001_v49, %v990_v22  ;;  %v4153_v52 = vpack.c.bf16 %v1699_v43, %v1667_v26  ;;  %v1702_v8 = vmul.f32 %v5001_v49, %v1022_v25  ;;  %v989_v21 = vcvt.s32.f32 %v477_v46 }
  0xf1   :  { %v1732_v53 = vmul.f32 %v4985_v34, %v1052_v27  ;;  %4182 = vmatpush1.bf16.msra.mxu1 %v4181_v16  ;;  %v1764_v38 = vmul.f32 %v4985_v34, %v1084_v50  ;;  %v1021_v45 = vcvt.s32.f32 %v509_v51  ;;  %v539_v41 = vunpack.c.2.s8 %v155_v37  ;;  %v189_v27 = vld [vmem:[#allocation4 + $0x350] sm:$0xff] }
  0xf2   :  { %v571_v19 = vunpack.c.3.s8 %v155_v37  ;;  %4154 = vmatpush1.bf16.msra.mxu0 %v4153_v52  ;;  %v4183_v20 = vpack.c.bf16 %v1702_v8, %v1670_v47  ;;  %v1669_v60 = vmul.f32 %v5015_v48, %v989_v21  ;;  %v542_v9 = vunpack.c.2.s8 %v158_v62 }
  0xf3   :  { %v574_v54 = vunpack.c.3.s8 %v158_v62  ;;  %v4155_v31 = vpack.c.bf16 %v1764_v38, %v1732_v53  ;;  %v1701_v61 = vmul.f32 %v5015_v48, %v1021_v45  ;;  %v1051_v56 = vcvt.s32.f32 %v539_v41 }
  0xf4   :  { %v1083_v10 = vcvt.s32.f32 %v571_v19  ;;  %4184 = vmatprep.subr.bf16.mxu1 %v4183_v20  ;;  %v1054_v14 = vcvt.s32.f32 %v542_v9  ;;  %v604_v17 = vunpack.c.0.s8 %v188_v55  ;;  %v636_v18 = vunpack.c.1.s8 %v188_v55 }
  0xf5   :  { %v1086_v57 = vcvt.s32.f32 %v574_v54  ;;  %4156 = vmatprep.subr.bf16.mxu0 %v4155_v31  ;;  %v4185_v37 = vpack.c.bf16 %v1701_v61, %v1669_v60  ;;  %v1731_v23 = vmul.f32 %v4994_v59, %v1051_v56  ;;  %v541_v44 = vunpack.c.2.s8 %v5054_v33 }
  0xf6   :  { %v1763_v24 = vmul.f32 %v4994_v59, %v1083_v10  ;;  %v1734_v62 = vmul.f32 %v5001_v49, %v1054_v14  ;;  %v1116_v28 = vcvt.s32.f32 %v604_v17  ;;  %v1148_v29 = vcvt.s32.f32 %v636_v18 }
  0xf7   :  { %v1766_v2 = vmul.f32 %v5001_v49, %v1086_v57  ;;  %4186 = vmatpush1.bf16.msra.mxu1 %v4185_v37  ;;  %v573_v32 = vunpack.c.3.s8 %v5054_v33  ;;  %v1053_v35 = vcvt.s32.f32 %v541_v44  ;;  %v603_v36 = vunpack.c.0.s8 %v187_v0 }
  0xf8   :  { %v4157_v30 = vpack.c.bf16 %v1763_v24, %v1731_v23  ;;  %v1796_v39 = vmul.f32 %v4985_v34, %v1116_v28  ;;  %v1828_v58 = vmul.f32 %v4985_v34, %v1148_v29  ;;  %v635_v26 = vunpack.c.1.s8 %v187_v0  ;;  %v96_v23 = vld [vmem:[#allocation4 + $0x68] sm:$0xff] }
  0xf9   :  { %v4187_v63 = vpack.c.bf16 %v1766_v2, %v1734_v62  ;;  %v1085_v22 = vcvt.s32.f32 %v573_v32  ;;  %v1733_v42 = vmul.f32 %v5015_v48, %v1053_v35  ;;  %v1115_v43 = vcvt.s32.f32 %v603_v36 }
  0xfa   :  { %4158 = vmatpush1.bf16.msra.mxu0 %v4157_v30  ;;  %v606_v25 = vunpack.c.0.s8 %v190_v15  ;;  %v4159_v46 = vpack.c.bf16 %v1828_v58, %v1796_v39  ;;  %v1147_v16 = vcvt.s32.f32 %v635_v26  ;;  %v638_v47 = vunpack.c.1.s8 %v190_v15 }
  0xfb   :  { %4188 = vmatprep.subr.bf16.mxu1 %v4187_v63  ;;  %v668_v33 = vunpack.c.2.s8 %v188_v55  ;;  %v1765_v50 = vmul.f32 %v5015_v48, %v1085_v22  ;;  %v1795_v51 = vmul.f32 %v4994_v59, %v1115_v43  ;;  %v700_v8 = vunpack.c.3.s8 %v188_v55  ;;  %v5087_v63 = vld [vmem:[#allocation4 + $0x60] sm:$0xff] }
  0xfc   :  { %v1118_v52 = vcvt.s32.f32 %v606_v25  ;;  %4160 = vmatprep.subr.bf16.mxu0 %v4159_v46  ;;  %v1827_v53 = vmul.f32 %v4994_v59, %v1147_v16  ;;  %v1150_v21 = vcvt.s32.f32 %v638_v47  ;;  %v605_v45 = vunpack.c.0.s8 %v189_v27 }
  0xfd   :  { %v1180_v38 = vcvt.s32.f32 %v668_v33  ;;  %v4189_v41 = vpack.c.bf16 %v1765_v50, %v1733_v42  ;;  %v1212_v20 = vcvt.s32.f32 %v700_v8  ;;  %v637_v60 = vunpack.c.1.s8 %v189_v27 }
  0xfe   :  { %v1798_v19 = vmul.f32 %v5001_v49, %v1118_v52  ;;  %v4161_v9 = vpack.c.bf16 %v1827_v53, %v1795_v51  ;;  %v1830_v54 = vmul.f32 %v5001_v49, %v1150_v21  ;;  %v1117_v61 = vcvt.s32.f32 %v605_v45 }
  0xff   :  { %v1860_v31 = vmul.f32 %v4985_v34, %v1180_v38  ;;  %4190 = vmatpush1.bf16.msra.mxu1 %v4189_v41  ;;  %v1892_v55 = vmul.f32 %v4985_v34, %v1212_v20  ;;  %v1149_v56 = vcvt.s32.f32 %v637_v60  ;;  %v667_v10 = vunpack.c.2.s8 %v187_v0  ;;  %v5104_v38 = vld [vmem:[#allocation4 + $0x70] sm:$0xff]  ;;  %v5111_v20 = vld [vmem:[#allocation2] sm:$0xff] }
 0x100   :  { %v699_v14 = vunpack.c.3.s8 %v187_v0  ;;  %4162 = vmatpush1.bf16.msra.mxu0 %v4161_v9  ;;  %v4191_v57 = vpack.c.bf16 %v1830_v54, %v1798_v19  ;;  %v1797_v17 = vmul.f32 %v5015_v48, %v1117_v61  ;;  %v670_v18 = vunpack.c.2.s8 %v190_v15 }
 0x101   :  { %v702_v37 = vunpack.c.3.s8 %v190_v15  ;;  %v4163_v24 = vpack.c.bf16 %v1892_v55, %v1860_v31  ;;  %v1829_v44 = vmul.f32 %v5015_v48, %v1149_v56  ;;  %v1179_v62 = vcvt.s32.f32 %v667_v10 }
 0x102   :  { %v1211_v2 = vcvt.s32.f32 %v699_v14  ;;  %4192 = vmatprep.subr.bf16.mxu1 %v4191_v57  ;;  %v1182_v28 = vcvt.s32.f32 %v670_v18  ;;  %v669_v30 = vunpack.c.2.s8 %v189_v27  ;;  %v701_v34 = vunpack.c.3.s8 %v189_v27  ;;  %v98_v27 = vld [vmem:[#allocation4 + $0x78] sm:$0xff] }
 0x103   :  { %v1214_v29 = vcvt.s32.f32 %v702_v37  ;;  %4164 = vmatprep.subr.bf16.mxu0 %v4163_v24  ;;  %v4193_v32 = vpack.c.bf16 %v1829_v44, %v1797_v17  ;;  %v1859_v0 = vmul.f32 %v4994_v59, %v1179_v62  ;;  %v224_v36 = vunpack.c.0.s8 %v96_v23  ;;  %v128_v62 = vld [vmem:[#allocation4 + $0x168] sm:$0xff] }
 0x104   :  { %v1891_v35 = vmul.f32 %v4994_v59, %v1211_v2  ;;  %v1862_v15 = vmul.f32 %v5001_v49, %v1182_v28  ;;  %v1181_v58 = vcvt.s32.f32 %v669_v30  ;;  %v1213_v26 = vcvt.s32.f32 %v701_v34 }
 0x105   :  { %v1894_v39 = vmul.f32 %v5001_v49, %v1214_v29  ;;  %4194 = vmatpush1.bf16.msra.mxu1 %v4193_v32  ;;  %v256_v42 = vunpack.c.1.s8 %v96_v23  ;;  %v736_v43 = vcvt.s32.f32 %v224_v36  ;;  %v5093_v25 = vrot.slane %v4975_v40, %v4763_v7 }
 0x106   :  { %v4165_v22 = vpack.c.bf16 %v1891_v35, %v1859_v0  ;;  %v1861_v59 = vmul.f32 %v5015_v48, %v1181_v58  ;;  %v1893_v16 = vmul.f32 %v5015_v48, %v1213_v26  ;;  %v223_v47 = vunpack.c.0.s8 %v5087_v63 }
 0x107   :  { %v4195_v46 = vpack.c.bf16 %v1894_v39, %v1862_v15  ;;  %v768_v49 = vcvt.s32.f32 %v256_v42  ;;  %v1416_v33 = vmul.f32 %v5093_v25, %v736_v43  ;;  %v255_v50 = vunpack.c.1.s8 %v5087_v63  ;;  %v127_v43 = vld [vmem:[#allocation4 + $0x160] sm:$0xff] }
 0x108   :  { %4166 = vmatpush1.bf16.msra.mxu0 %v4165_v22  ;;  %v5102_v51 = vrot.slane %v4975_v40, %v4767_v11  ;;  %v4197_v52 = vpack.c.bf16 %v1893_v16, %v1861_v59  ;;  %v735_v8 = vcvt.s32.f32 %v223_v47  ;;  %v226_v53 = vunpack.c.0.s8 %v98_v27 }
 0x109   :  { %4196 = vmatprep.subr.bf16.mxu1 %v4195_v46  ;;  %v258_v21 = vunpack.c.1.s8 %v98_v27  ;;  %v1448_v48 = vmul.f32 %v5093_v25, %v768_v49  ;;  %v767_v45 = vcvt.s32.f32 %v255_v50  ;;  %v5109_v41 = vrot.slane %v4975_v40, %v4769_v12  ;;  %v130_v50 = vld [vmem:[#allocation4 + $0x178] sm:$0xff] }
 0x10a   :  { %v288_v19 = vunpack.c.2.s8 %v96_v23  ;;  %4198 = vmatpush1.bf16.msra.mxu1 %v4197_v52  ;;  %v1415_v60 = vmul.f32 %v5102_v51, %v735_v8  ;;  %v738_v9 = vcvt.s32.f32 %v226_v53  ;;  %v320_v31 = vunpack.c.3.s8 %v96_v23 }
 0x10b   :  { %2433 = vmatmul.mubr.f32.vlgmr.msra.gmra.mrb[4].mxu0 %v5111_v20  ;;  %v770_v54 = vcvt.s32.f32 %v258_v21  ;;  %v4199_v61 = vpack.c.bf16 %v1448_v48, %v1416_v33  ;;  %v1447_v55 = vmul.f32 %v5102_v51, %v767_v45  ;;  %v225_v10 = vunpack.c.0.s8 %v5104_v38 }
 0x10c   :  { %v800_v56 = vcvt.s32.f32 %v288_v19  ;;  %2574 = vmatprep.mubr.f32.mxu0 %v4657_v1  ;;  %v1418_v14 = vmul.f32 %v5109_v41, %v738_v9  ;;  %v832_v17 = vcvt.s32.f32 %v320_v31  ;;  %v257_v18 = vunpack.c.1.s8 %v5104_v38 }
 0x10d   :  { %v1450_v57 = vmul.f32 %v5109_v41, %v770_v54  ;;  %4200 = vmatprep.subr.bf16.mxu0 %v4199_v61  ;;  %v4201_v37 = vpack.c.bf16 %v1447_v55, %v1415_v60  ;;  %2504 = vmatmul.mubr.f32.vlgmr.msra.gmra.mrb[4].mxu1 %v5111_v20  ;;  %v737_v24 = vcvt.s32.f32 %v225_v10  ;;  %v5125_v44 = vrot.slane %v4975_v40, %v4771_v13  ;;  %v5142_v55 = vld [vmem:[#allocation4 + $0x170] sm:$0xff] }
 0x10e   :  { %v1480_v23 = vmul.f32 %v5093_v25, %v800_v56  ;;  %v1512_v28 = vmul.f32 %v5093_v25, %v832_v17  ;;  %v769_v29 = vcvt.s32.f32 %v257_v18  ;;  %v287_v30 = vunpack.c.2.s8 %v5087_v63  ;;  %2645 = vmatprep.mubr.f32.mxu1 %v4657_v1 }
 0x10f   :  { %v4231_v2 = vpack.c.bf16 %v1450_v57, %v1418_v14  ;;  %4202 = vmatpush1.bf16.msra.mxu0 %v4201_v37  ;;  %v1417_v34 = vmul.f32 %v5125_v44, %v737_v24  ;;  %v319_v32 = vunpack.c.3.s8 %v5087_v63  ;;  %v290_v0 = vunpack.c.2.s8 %v98_v27 }
 0x110   :  { %v322_v35 = vunpack.c.3.s8 %v98_v27  ;;  %v4203_v36 = vpack.c.bf16 %v1512_v28, %v1480_v23  ;;  %v1449_v40 = vmul.f32 %v5125_v44, %v769_v29  ;;  %v799_v15 = vcvt.s32.f32 %v287_v30 }
 0x111   :  { %4232 = vmatprep.subr.bf16.mxu1 %v4231_v2  ;;  %v352_v39 = vunpack.c.0.s8 %v128_v62  ;;  %v831_v58 = vcvt.s32.f32 %v319_v32  ;;  %v802_v26 = vcvt.s32.f32 %v290_v0  ;;  %v384_v42 = vunpack.c.1.s8 %v128_v62 }
 0x112   :  { %v834_v22 = vcvt.s32.f32 %v322_v35  ;;  %4204 = vmatprep.subr.bf16.mxu0 %v4203_v36  ;;  %v4233_v46 = vpack.c.bf16 %v1449_v40, %v1417_v34  ;;  %v1479_v59 = vmul.f32 %v5102_v51, %v799_v15  ;;  %v289_v63 = vunpack.c.2.s8 %v5104_v38 }
 0x113   :  { %v864_v16 = vcvt.s32.f32 %v352_v39  ;;  %v1511_v27 = vmul.f32 %v5102_v51, %v831_v58  ;;  %v1482_v47 = vmul.f32 %v5109_v41, %v802_v26  ;;  %v896_v33 = vcvt.s32.f32 %v384_v42  ;;  %v160_v26 = vld [vmem:[#allocation4 + $0x268] sm:$0xff] }
 0x114   :  { %v1514_v49 = vmul.f32 %v5109_v41, %v834_v22  ;;  %4234 = vmatpush1.bf16.msra.mxu1 %v4233_v46  ;;  %v321_v8 = vunpack.c.3.s8 %v5104_v38  ;;  %v801_v53 = vcvt.s32.f32 %v289_v63  ;;  %v351_v21 = vunpack.c.0.s8 %v127_v43 }
 0x115   :  { %v1544_v52 = vmul.f32 %v5093_v25, %v864_v16  ;;  %v4205_v48 = vpack.c.bf16 %v1511_v27, %v1479_v59  ;;  %v1576_v19 = vmul.f32 %v5093_v25, %v896_v33  ;;  %v383_v60 = vunpack.c.1.s8 %v127_v43 }
 0x116   :  { %v4235_v45 = vpack.c.bf16 %v1514_v49, %v1482_v47  ;;  %v833_v9 = vcvt.s32.f32 %v321_v8  ;;  %v1481_v54 = vmul.f32 %v5125_v44, %v801_v53  ;;  %v863_v31 = vcvt.s32.f32 %v351_v21  ;;  %v159_v53 = vld [vmem:[#allocation4 + $0x260] sm:$0xff] }
 0x117   :  { %v354_v61 = vunpack.c.0.s8 %v130_v50  ;;  %4206 = vmatpush1.bf16.msra.mxu0 %v4205_v48  ;;  %v4207_v56 = vpack.c.bf16 %v1576_v19, %v1544_v52  ;;  %v895_v10 = vcvt.s32.f32 %v383_v60  ;;  %v386_v14 = vunpack.c.1.s8 %v130_v50 }
 0x118   :  { %4236 = vmatprep.subr.bf16.mxu1 %v4235_v45  ;;  %v416_v38 = vunpack.c.2.s8 %v128_v62  ;;  %v1513_v57 = vmul.f32 %v5125_v44, %v833_v9  ;;  %v1543_v17 = vmul.f32 %v5102_v51, %v863_v31  ;;  %v448_v37 = vunpack.c.3.s8 %v128_v62 }
 0x119   :  { %v866_v18 = vcvt.s32.f32 %v354_v61  ;;  %4208 = vmatprep.subr.bf16.mxu0 %v4207_v56  ;;  %v1575_v23 = vmul.f32 %v5102_v51, %v895_v10  ;;  %v898_v24 = vcvt.s32.f32 %v386_v14  ;;  %v353_v28 = vunpack.c.0.s8 %v5142_v55 }
 0x11a   :  { %v928_v2 = vcvt.s32.f32 %v416_v38  ;;  %v4237_v29 = vpack.c.bf16 %v1513_v57, %v1481_v54  ;;  %v960_v34 = vcvt.s32.f32 %v448_v37  ;;  %v385_v32 = vunpack.c.1.s8 %v5142_v55  ;;  %v162_v54 = vld [vmem:[#allocation4 + $0x278] sm:$0xff] }
 0x11b   :  { %v1546_v30 = vmul.f32 %v5109_v41, %v866_v18  ;;  %v4209_v0 = vpack.c.bf16 %v1575_v23, %v1543_v17  ;;  %v1578_v35 = vmul.f32 %v5109_v41, %v898_v24  ;;  %v865_v40 = vcvt.s32.f32 %v353_v28 }
 0x11c   :  { %v1608_v36 = vmul.f32 %v5093_v25, %v928_v2  ;;  %4238 = vmatpush1.bf16.msra.mxu1 %v4237_v29  ;;  %v1640_v62 = vmul.f32 %v5093_v25, %v960_v34  ;;  %v897_v15 = vcvt.s32.f32 %v385_v32  ;;  %v415_v39 = vunpack.c.2.s8 %v127_v43  ;;  %v5164_v2 = vld [vmem:[#allocation4 + $0x270] sm:$0xff] }
 0x11d   :  { %v447_v58 = vunpack.c.3.s8 %v127_v43  ;;  %4210 = vmatpush1.bf16.msra.mxu0 %v4209_v0  ;;  %v4239_v22 = vpack.c.bf16 %v1578_v35, %v1546_v30  ;;  %v1545_v42 = vmul.f32 %v5125_v44, %v865_v40  ;;  %v418_v46 = vunpack.c.2.s8 %v130_v50 }
 0x11e   :  { %v450_v59 = vunpack.c.3.s8 %v130_v50  ;;  %v4211_v16 = vpack.c.bf16 %v1640_v62, %v1608_v36  ;;  %v1577_v63 = vmul.f32 %v5125_v44, %v897_v15  ;;  %v927_v27 = vcvt.s32.f32 %v415_v39 }
 0x11f   :  { %v959_v47 = vcvt.s32.f32 %v447_v58  ;;  %4240 = vmatprep.subr.bf16.mxu1 %v4239_v22  ;;  %v930_v49 = vcvt.s32.f32 %v418_v46  ;;  %v480_v52 = vunpack.c.0.s8 %v160_v26  ;;  %v512_v8 = vunpack.c.1.s8 %v160_v26 }
 0x120   :  { %v962_v33 = vcvt.s32.f32 %v450_v59  ;;  %4212 = vmatprep.subr.bf16.mxu0 %v4211_v16  ;;  %v4241_v43 = vpack.c.bf16 %v1577_v63, %v1545_v42  ;;  %v1607_v21 = vmul.f32 %v5102_v51, %v927_v27  ;;  %v417_v45 = vunpack.c.2.s8 %v5142_v55 }
 0x121   :  { %v1639_v48 = vmul.f32 %v5102_v51, %v959_v47  ;;  %v1610_v50 = vmul.f32 %v5109_v41, %v930_v49  ;;  %v992_v60 = vcvt.s32.f32 %v480_v52  ;;  %v1024_v9 = vcvt.s32.f32 %v512_v8 }
 0x122   :  { %v1642_v19 = vmul.f32 %v5109_v41, %v962_v33  ;;  %4242 = vmatpush1.bf16.msra.mxu1 %v4241_v43  ;;  %v449_v61 = vunpack.c.3.s8 %v5142_v55  ;;  %v929_v56 = vcvt.s32.f32 %v417_v45  ;;  %v479_v10 = vunpack.c.0.s8 %v159_v53  ;;  %v192_v33 = vld [vmem:[#allocation4 + $0x368] sm:$0xff] }
 0x123   :  { %v4213_v31 = vpack.c.bf16 %v1639_v48, %v1607_v21  ;;  %v1672_v38 = vmul.f32 %v5093_v25, %v992_v60  ;;  %v1704_v57 = vmul.f32 %v5093_v25, %v1024_v9  ;;  %v511_v17 = vunpack.c.1.s8 %v159_v53 }
 0x124   :  { %v4243_v14 = vpack.c.bf16 %v1642_v19, %v1610_v50  ;;  %v961_v18 = vcvt.s32.f32 %v449_v61  ;;  %v1609_v37 = vmul.f32 %v5125_v44, %v929_v56  ;;  %v991_v23 = vcvt.s32.f32 %v479_v10  ;;  %v191_v56 = vld [vmem:[#allocation4 + $0x360] sm:$0xff] }
 0x125   :  { %4214 = vmatpush1.bf16.msra.mxu0 %v4213_v31  ;;  %v482_v24 = vunpack.c.0.s8 %v162_v54  ;;  %v4215_v28 = vpack.c.bf16 %v1704_v57, %v1672_v38  ;;  %v1023_v29 = vcvt.s32.f32 %v511_v17  ;;  %v514_v55 = vunpack.c.1.s8 %v162_v54 }
 0x126   :  { %4244 = vmatprep.subr.bf16.mxu1 %v4243_v14  ;;  %v544_v30 = vunpack.c.2.s8 %v160_v26  ;;  %v1641_v34 = vmul.f32 %v5125_v44, %v961_v18  ;;  %v1671_v32 = vmul.f32 %v5102_v51, %v991_v23  ;;  %v576_v35 = vunpack.c.3.s8 %v160_v26 }
 0x127   :  { %v994_v0 = vcvt.s32.f32 %v482_v24  ;;  %4216 = vmatprep.subr.bf16.mxu0 %v4215_v28  ;;  %v1703_v36 = vmul.f32 %v5102_v51, %v1023_v29  ;;  %v1026_v40 = vcvt.s32.f32 %v514_v55  ;;  %v481_v15 = vunpack.c.0.s8 %v5164_v2 }
 0x128   :  { %v1056_v62 = vcvt.s32.f32 %v544_v30  ;;  %v4245_v39 = vpack.c.bf16 %v1641_v34, %v1609_v37  ;;  %v1088_v22 = vcvt.s32.f32 %v576_v35  ;;  %v513_v42 = vunpack.c.1.s8 %v5164_v2  ;;  %v194_v37 = vld [vmem:[#allocation4 + $0x378] sm:$0xff] }
 0x129   :  { %v1674_v58 = vmul.f32 %v5109_v41, %v994_v0  ;;  %v4217_v46 = vpack.c.bf16 %v1703_v36, %v1671_v32  ;;  %v1706_v59 = vmul.f32 %v5109_v41, %v1026_v40  ;;  %v993_v63 = vcvt.s32.f32 %v481_v15 }
 0x12a   :  { %v1736_v16 = vmul.f32 %v5093_v25, %v1056_v62  ;;  %4246 = vmatpush1.bf16.msra.mxu1 %v4245_v39  ;;  %v1768_v26 = vmul.f32 %v5093_v25, %v1088_v22  ;;  %v1025_v27 = vcvt.s32.f32 %v513_v42  ;;  %v543_v47 = vunpack.c.2.s8 %v159_v53  ;;  %v193_v62 = vld [vmem:[#allocation4 + $0x370] sm:$0xff] }
 0x12b   :  { %v575_v49 = vunpack.c.3.s8 %v159_v53  ;;  %4218 = vmatpush1.bf16.msra.mxu0 %v4217_v46  ;;  %v4247_v52 = vpack.c.bf16 %v1706_v59, %v1674_v58  ;;  %v1673_v8 = vmul.f32 %v5125_v44, %v993_v63  ;;  %v546_v43 = vunpack.c.2.s8 %v162_v54 }
 0x12c   :  { %v578_v21 = vunpack.c.3.s8 %v162_v54  ;;  %v4219_v48 = vpack.c.bf16 %v1768_v26, %v1736_v16  ;;  %v1705_v45 = vmul.f32 %v5125_v44, %v1025_v27  ;;  %v1055_v50 = vcvt.s32.f32 %v543_v47 }
 0x12d   :  { %v1087_v19 = vcvt.s32.f32 %v575_v49  ;;  %4248 = vmatprep.subr.bf16.mxu1 %v4247_v52  ;;  %v1058_v60 = vcvt.s32.f32 %v546_v43  ;;  %v608_v31 = vunpack.c.0.s8 %v192_v33  ;;  %v640_v61 = vunpack.c.1.s8 %v192_v33 }
 0x12e   :  { %v1090_v9 = vcvt.s32.f32 %v578_v21  ;;  %4220 = vmatprep.subr.bf16.mxu0 %v4219_v48  ;;  %v4249_v53 = vpack.c.bf16 %v1705_v45, %v1673_v8  ;;  %v1735_v10 = vmul.f32 %v5102_v51, %v1055_v50  ;;  %v545_v38 = vunpack.c.2.s8 %v5164_v2 }
 0x12f   :  { %v1767_v14 = vmul.f32 %v5102_v51, %v1087_v19  ;;  %v1738_v54 = vmul.f32 %v5109_v41, %v1058_v60  ;;  %v1120_v17 = vcvt.s32.f32 %v608_v31  ;;  %v1152_v18 = vcvt.s32.f32 %v640_v61 }
 0x130   :  { %v1770_v57 = vmul.f32 %v5109_v41, %v1090_v9  ;;  %4250 = vmatpush1.bf16.msra.mxu1 %v4249_v53  ;;  %v577_v24 = vunpack.c.3.s8 %v5164_v2  ;;  %v1057_v28 = vcvt.s32.f32 %v545_v38  ;;  %v607_v29 = vunpack.c.0.s8 %v191_v56 }
 0x131   :  { %v4221_v23 = vpack.c.bf16 %v1767_v14, %v1735_v10  ;;  %v1800_v30 = vmul.f32 %v5093_v25, %v1120_v17  ;;  %v1832_v34 = vmul.f32 %v5093_v25, %v1152_v18  ;;  %v639_v32 = vunpack.c.1.s8 %v191_v56  ;;  %v100_v10 = vld [vmem:[#allocation4 + $0x88] sm:$0xff] }
 0x132   :  { %v4251_v55 = vpack.c.bf16 %v1770_v57, %v1738_v54  ;;  %v1089_v0 = vcvt.s32.f32 %v577_v24  ;;  %v1737_v35 = vmul.f32 %v5125_v44, %v1057_v28  ;;  %v1119_v36 = vcvt.s32.f32 %v607_v29  ;;  %v5195_v24 = vld [vmem:[#allocation6 + $0x10] sm:$0xff] }
 0x133   :  { %4222 = vmatpush1.bf16.msra.mxu0 %v4221_v23  ;;  %v610_v40 = vunpack.c.0.s8 %v194_v37  ;;  %v4223_v15 = vpack.c.bf16 %v1832_v34, %v1800_v30  ;;  %v1151_v39 = vcvt.s32.f32 %v639_v32  ;;  %v642_v58 = vunpack.c.1.s8 %v194_v37 }
 0x134   :  { %4252 = vmatprep.subr.bf16.mxu1 %v4251_v55  ;;  %v672_v2 = vunpack.c.2.s8 %v192_v33  ;;  %v1769_v22 = vmul.f32 %v5125_v44, %v1089_v0  ;;  %v1799_v42 = vmul.f32 %v5102_v51, %v1119_v36  ;;  %v704_v59 = vunpack.c.3.s8 %v192_v33  ;;  %v5199_v55 = vld [vmem:[#allocation4 + $0x80] sm:$0xff] }
 0x135   :  { %v1122_v46 = vcvt.s32.f32 %v610_v40  ;;  %4224 = vmatprep.subr.bf16.mxu0 %v4223_v15  ;;  %v1831_v16 = vmul.f32 %v5102_v51, %v1151_v39  ;;  %v1154_v63 = vcvt.s32.f32 %v642_v58  ;;  %v609_v27 = vunpack.c.0.s8 %v193_v62  ;;  %v102_v15 = vld [vmem:[#allocation4 + $0x98] sm:$0xff] }
 0x136   :  { %v1184_v26 = vcvt.s32.f32 %v672_v2  ;;  %v4253_v47 = vpack.c.bf16 %v1769_v22, %v1737_v35  ;;  %v1216_v52 = vcvt.s32.f32 %v704_v59  ;;  %v641_v8 = vunpack.c.1.s8 %v193_v62 }
 0x137   :  { %v1802_v49 = vmul.f32 %v5109_v41, %v1122_v46  ;;  %v4225_v43 = vpack.c.bf16 %v1831_v16, %v1799_v42  ;;  %v1834_v21 = vmul.f32 %v5109_v41, %v1154_v63  ;;  %v1121_v45 = vcvt.s32.f32 %v609_v27  ;;  %v5216_v27 = vld [vmem:[#allocation4 + $0x90] sm:$0xff] }
 0x138   :  { %v1864_v48 = vmul.f32 %v5093_v25, %v1184_v26  ;;  %4254 = vmatpush1.bf16.msra.mxu1 %v4253_v47  ;;  %v1896_v33 = vmul.f32 %v5093_v25, %v1216_v52  ;;  %v1153_v50 = vcvt.s32.f32 %v641_v8  ;;  %v671_v19 = vunpack.c.2.s8 %v191_v56 }
 0x139   :  { %v703_v60 = vunpack.c.3.s8 %v191_v56  ;;  %4226 = vmatpush1.bf16.msra.mxu0 %v4225_v43  ;;  %v4255_v9 = vpack.c.bf16 %v1834_v21, %v1802_v49  ;;  %v1801_v31 = vmul.f32 %v5125_v44, %v1121_v45  ;;  %v674_v61 = vunpack.c.2.s8 %v194_v37 }
 0x13a   :  { %v706_v53 = vunpack.c.3.s8 %v194_v37  ;;  %v4227_v14 = vpack.c.bf16 %v1896_v33, %v1864_v48  ;;  %v1833_v38 = vmul.f32 %v5125_v44, %v1153_v50  ;;  %v1183_v54 = vcvt.s32.f32 %v671_v19 }
 0x13b   :  { %v1215_v57 = vcvt.s32.f32 %v703_v60  ;;  %4256 = vmatprep.subr.bf16.mxu1 %v4255_v9  ;;  %v1186_v17 = vcvt.s32.f32 %v674_v61  ;;  %v673_v23 = vunpack.c.2.s8 %v193_v62  ;;  %v705_v25 = vunpack.c.3.s8 %v193_v62 }
 0x13c   :  { %v1218_v18 = vcvt.s32.f32 %v706_v53  ;;  %4228 = vmatprep.subr.bf16.mxu0 %v4227_v14  ;;  %v4257_v56 = vpack.c.bf16 %v1833_v38, %v1801_v31  ;;  %v1863_v28 = vmul.f32 %v5102_v51, %v1183_v54  ;;  %v228_v37 = vunpack.c.0.s8 %v100_v10  ;;  %v132_v54 = vld [vmem:[#allocation4 + $0x188] sm:$0xff] }
 0x13d   :  { %v1895_v29 = vmul.f32 %v5102_v51, %v1215_v57  ;;  %v1866_v30 = vmul.f32 %v5109_v41, %v1186_v17  ;;  %v1185_v32 = vcvt.s32.f32 %v673_v23  ;;  %v1217_v0 = vcvt.s32.f32 %v705_v25 }
 0x13e   :  { %v1898_v34 = vmul.f32 %v5109_v41, %v1218_v18  ;;  %4258 = vmatpush1.bf16.msra.mxu1 %v4257_v56  ;;  %v260_v36 = vunpack.c.1.s8 %v100_v10  ;;  %v740_v40 = vcvt.s32.f32 %v228_v37  ;;  %v5205_v62 = vrot.slane %v5195_v24, %v4755_v3 }
 0x13f   :  { %v4229_v35 = vpack.c.bf16 %v1895_v29, %v1863_v28  ;;  %v1865_v51 = vmul.f32 %v5125_v44, %v1185_v32  ;;  %v1897_v58 = vmul.f32 %v5125_v44, %v1217_v0  ;;  %v227_v2 = vunpack.c.0.s8 %v5199_v55 }
 0x140   :  { %v4259_v39 = vpack.c.bf16 %v1898_v34, %v1866_v30  ;;  %v772_v41 = vcvt.s32.f32 %v260_v36  ;;  %v1420_v22 = vmul.f32 %v5205_v62, %v740_v40  ;;  %v259_v42 = vunpack.c.1.s8 %v5199_v55  ;;  %v131_v40 = vld [vmem:[#allocation4 + $0x180] sm:$0xff] }
 0x141   :  { %4230 = vmatpush1.bf16.msra.mxu0 %v4229_v35  ;;  %v5214_v46 = vrot.slane %v5195_v24, %v4757_v4  ;;  %v4261_v59 = vpack.c.bf16 %v1897_v58, %v1865_v51  ;;  %v739_v16 = vcvt.s32.f32 %v227_v2  ;;  %v230_v63 = vunpack.c.0.s8 %v102_v15 }
 0x142   :  { %4260 = vmatprep.subr.bf16.mxu1 %v4259_v39  ;;  %v262_v26 = vunpack.c.1.s8 %v102_v15  ;;  %v1452_v44 = vmul.f32 %v5205_v62, %v772_v41  ;;  %v771_v47 = vcvt.s32.f32 %v259_v42  ;;  %v5221_v49 = vrot.slane %v5195_v24, %v4759_v5  ;;  %v134_v42 = vld [vmem:[#allocation4 + $0x198] sm:$0xff] }
 0x143   :  { %v292_v52 = vunpack.c.2.s8 %v100_v10  ;;  %4262 = vmatpush1.bf16.msra.mxu1 %v4261_v59  ;;  %v1419_v8 = vmul.f32 %v5214_v46, %v739_v16  ;;  %v742_v43 = vcvt.s32.f32 %v230_v63  ;;  %v324_v48 = vunpack.c.3.s8 %v100_v10 }
 0x144   :  { %2575 = vmatmul.mubr.f32.vlgmr.msra.gmra.mrb[6].mxu0 %v5111_v20  ;;  %v774_v21 = vcvt.s32.f32 %v262_v26  ;;  %v4263_v45 = vpack.c.bf16 %v1452_v44, %v1420_v22  ;;  %v1451_v33 = vmul.f32 %v5214_v46, %v771_v47  ;;  %v229_v19 = vunpack.c.0.s8 %v5216_v27 }
 0x145   :  { %v804_v50 = vcvt.s32.f32 %v292_v52  ;;  %2716 = vmatprep.mubr.f32.mxu0 %v4657_v1  ;;  %v1422_v60 = vmul.f32 %v5221_v49, %v742_v43  ;;  %v836_v31 = vcvt.s32.f32 %v324_v48  ;;  %v261_v61 = vunpack.c.1.s8 %v5216_v27 }
 0x146   :  { %v1454_v9 = vmul.f32 %v5221_v49, %v774_v21  ;;  %4264 = vmatprep.subr.bf16.mxu0 %v4263_v45  ;;  %v4265_v53 = vpack.c.bf16 %v1451_v33, %v1419_v8  ;;  %2646 = vmatmul.mubr.f32.vlgmr.msra.gmra.mrb[6].mxu1 %v5111_v20  ;;  %v741_v14 = vcvt.s32.f32 %v229_v19  ;;  %v5235_v38 = vrot.slane %v5195_v24, %v4761_v6  ;;  %v5252_v33 = vld [vmem:[#allocation4 + $0x190] sm:$0xff] }
 0x147   :  { %v1484_v10 = vmul.f32 %v5205_v62, %v804_v50  ;;  %v1516_v17 = vmul.f32 %v5205_v62, %v836_v31  ;;  %v773_v18 = vcvt.s32.f32 %v261_v61  ;;  %v291_v23 = vunpack.c.2.s8 %v5199_v55  ;;  %2787 = vmatprep.mubr.f32.mxu1 %v4657_v1 }
 0x148   :  { %v4295_v57 = vpack.c.bf16 %v1454_v9, %v1422_v60  ;;  %4266 = vmatpush1.bf16.msra.mxu0 %v4265_v53  ;;  %v1421_v25 = vmul.f32 %v5235_v38, %v741_v14  ;;  %v323_v20 = vunpack.c.3.s8 %v5199_v55  ;;  %v294_v56 = vunpack.c.2.s8 %v102_v15 }
 0x149   :  { %v326_v28 = vunpack.c.3.s8 %v102_v15  ;;  %v4267_v29 = vpack.c.bf16 %v1516_v17, %v1484_v10  ;;  %v1453_v37 = vmul.f32 %v5235_v38, %v773_v18  ;;  %v803_v30 = vcvt.s32.f32 %v291_v23 }
 0x14a   :  { %4296 = vmatprep.subr.bf16.mxu1 %v4295_v57  ;;  %v356_v34 = vunpack.c.0.s8 %v132_v54  ;;  %v835_v32 = vcvt.s32.f32 %v323_v20  ;;  %v806_v0 = vcvt.s32.f32 %v294_v56  ;;  %v388_v36 = vunpack.c.1.s8 %v132_v54 }
 0x14b   :  { %v838_v35 = vcvt.s32.f32 %v326_v28  ;;  %4268 = vmatprep.subr.bf16.mxu0 %v4267_v29  ;;  %v4297_v39 = vpack.c.bf16 %v1453_v37, %v1421_v25  ;;  %v1483_v51 = vmul.f32 %v5214_v46, %v803_v30  ;;  %v293_v55 = vunpack.c.2.s8 %v5216_v27 }
 0x14c   :  { %v868_v58 = vcvt.s32.f32 %v356_v34  ;;  %v1515_v15 = vmul.f32 %v5214_v46, %v835_v32  ;;  %v1486_v2 = vmul.f32 %v5221_v49, %v806_v0  ;;  %v900_v22 = vcvt.s32.f32 %v388_v36  ;;  %v164_v0 = vld [vmem:[#allocation4 + $0x288] sm:$0xff] }
 0x14d   :  { %v1518_v41 = vmul.f32 %v5221_v49, %v838_v35  ;;  %4298 = vmatpush1.bf16.msra.mxu1 %v4297_v39  ;;  %v325_v16 = vunpack.c.3.s8 %v5216_v27  ;;  %v805_v63 = vcvt.s32.f32 %v293_v55  ;;  %v355_v26 = vunpack.c.0.s8 %v131_v40 }
 0x14e   :  { %v1548_v59 = vmul.f32 %v5205_v62, %v868_v58  ;;  %v4269_v44 = vpack.c.bf16 %v1515_v15, %v1483_v51  ;;  %v1580_v52 = vmul.f32 %v5205_v62, %v900_v22  ;;  %v387_v8 = vunpack.c.1.s8 %v131_v40 }
 0x14f   :  { %v4299_v47 = vpack.c.bf16 %v1518_v41, %v1486_v2  ;;  %v837_v43 = vcvt.s32.f32 %v325_v16  ;;  %v1485_v21 = vmul.f32 %v5235_v38, %v805_v63  ;;  %v867_v48 = vcvt.s32.f32 %v355_v26  ;;  %v163_v63 = vld [vmem:[#allocation4 + $0x280] sm:$0xff] }
 0x150   :  { %v358_v45 = vunpack.c.0.s8 %v134_v42  ;;  %4270 = vmatpush1.bf16.msra.mxu0 %v4269_v44  ;;  %v4271_v50 = vpack.c.bf16 %v1580_v52, %v1548_v59  ;;  %v899_v19 = vcvt.s32.f32 %v387_v8  ;;  %v390_v60 = vunpack.c.1.s8 %v134_v42 }
 0x151   :  { %4300 = vmatprep.subr.bf16.mxu1 %v4299_v47  ;;  %v420_v27 = vunpack.c.2.s8 %v132_v54  ;;  %v1517_v9 = vmul.f32 %v5235_v38, %v837_v43  ;;  %v1547_v31 = vmul.f32 %v5214_v46, %v867_v48  ;;  %v452_v53 = vunpack.c.3.s8 %v132_v54 }
 0x152   :  { %v870_v61 = vcvt.s32.f32 %v358_v45  ;;  %4272 = vmatprep.subr.bf16.mxu0 %v4271_v50  ;;  %v1579_v10 = vmul.f32 %v5214_v46, %v899_v19  ;;  %v902_v14 = vcvt.s32.f32 %v390_v60  ;;  %v357_v17 = vunpack.c.0.s8 %v5252_v33 }
 0x153   :  { %v932_v57 = vcvt.s32.f32 %v420_v27  ;;  %v4301_v18 = vpack.c.bf16 %v1517_v9, %v1485_v21  ;;  %v964_v25 = vcvt.s32.f32 %v452_v53  ;;  %v389_v20 = vunpack.c.1.s8 %v5252_v33  ;;  %v166_v21 = vld [vmem:[#allocation4 + $0x298] sm:$0xff] }
 0x154   :  { %v1550_v23 = vmul.f32 %v5221_v49, %v870_v61  ;;  %v4273_v56 = vpack.c.bf16 %v1579_v10, %v1547_v31  ;;  %v1582_v28 = vmul.f32 %v5221_v49, %v902_v14  ;;  %v869_v37 = vcvt.s32.f32 %v357_v17 }
 0x155   :  { %v1612_v29 = vmul.f32 %v5205_v62, %v932_v57  ;;  %4302 = vmatpush1.bf16.msra.mxu1 %v4301_v18  ;;  %v1644_v54 = vmul.f32 %v5205_v62, %v964_v25  ;;  %v901_v30 = vcvt.s32.f32 %v389_v20  ;;  %v419_v34 = vunpack.c.2.s8 %v131_v40  ;;  %v5274_v57 = vld [vmem:[#allocation4 + $0x290] sm:$0xff] }
 0x156   :  { %v451_v32 = vunpack.c.3.s8 %v131_v40  ;;  %4274 = vmatpush1.bf16.msra.mxu0 %v4273_v56  ;;  %v4303_v35 = vpack.c.bf16 %v1582_v28, %v1550_v23  ;;  %v1549_v36 = vmul.f32 %v5235_v38, %v869_v37  ;;  %v422_v39 = vunpack.c.2.s8 %v134_v42 }
 0x157   :  { %v454_v51 = vunpack.c.3.s8 %v134_v42  ;;  %v4275_v58 = vpack.c.bf16 %v1644_v54, %v1612_v29  ;;  %v1581_v55 = vmul.f32 %v5235_v38, %v901_v30  ;;  %v931_v15 = vcvt.s32.f32 %v419_v34 }
 0x158   :  { %v963_v2 = vcvt.s32.f32 %v451_v32  ;;  %4304 = vmatprep.subr.bf16.mxu1 %v4303_v35  ;;  %v934_v41 = vcvt.s32.f32 %v422_v39  ;;  %v484_v59 = vunpack.c.0.s8 %v164_v0  ;;  %v516_v16 = vunpack.c.1.s8 %v164_v0 }
 0x159   :  { %v966_v22 = vcvt.s32.f32 %v454_v51  ;;  %4276 = vmatprep.subr.bf16.mxu0 %v4275_v58  ;;  %v4305_v40 = vpack.c.bf16 %v1581_v55, %v1549_v36  ;;  %v1611_v26 = vmul.f32 %v5214_v46, %v931_v15  ;;  %v421_v47 = vunpack.c.2.s8 %v5252_v33 }
 0x15a   :  { %v1643_v44 = vmul.f32 %v5214_v46, %v963_v2  ;;  %v1614_v42 = vmul.f32 %v5221_v49, %v934_v41  ;;  %v996_v8 = vcvt.s32.f32 %v484_v59  ;;  %v1028_v43 = vcvt.s32.f32 %v516_v16 }
 0x15b   :  { %v1646_v52 = vmul.f32 %v5221_v49, %v966_v22  ;;  %4306 = vmatpush1.bf16.msra.mxu1 %v4305_v40  ;;  %v453_v45 = vunpack.c.3.s8 %v5252_v33  ;;  %v933_v50 = vcvt.s32.f32 %v421_v47  ;;  %v483_v19 = vunpack.c.0.s8 %v163_v63  ;;  %v196_v22 = vld [vmem:[#allocation4 + $0x388] sm:$0xff] }
 0x15c   :  { %v4277_v48 = vpack.c.bf16 %v1643_v44, %v1611_v26  ;;  %v1676_v27 = vmul.f32 %v5205_v62, %v996_v8  ;;  %v1708_v9 = vmul.f32 %v5205_v62, %v1028_v43  ;;  %v515_v31 = vunpack.c.1.s8 %v163_v63 }
 0x15d   :  { %v4307_v60 = vpack.c.bf16 %v1646_v52, %v1614_v42  ;;  %v965_v61 = vcvt.s32.f32 %v453_v45  ;;  %v1613_v53 = vmul.f32 %v5235_v38, %v933_v50  ;;  %v995_v10 = vcvt.s32.f32 %v483_v19  ;;  %v195_v50 = vld [vmem:[#allocation4 + $0x380] sm:$0xff] }
 0x15e   :  { %4278 = vmatpush1.bf16.msra.mxu0 %v4277_v48  ;;  %v486_v14 = vunpack.c.0.s8 %v166_v21  ;;  %v4279_v17 = vpack.c.bf16 %v1708_v9, %v1676_v27  ;;  %v1027_v18 = vcvt.s32.f32 %v515_v31  ;;  %v518_v33 = vunpack.c.1.s8 %v166_v21 }
 0x15f   :  { %4308 = vmatprep.subr.bf16.mxu1 %v4307_v60  ;;  %v548_v23 = vunpack.c.2.s8 %v164_v0  ;;  %v1645_v25 = vmul.f32 %v5235_v38, %v965_v61  ;;  %v1675_v20 = vmul.f32 %v5214_v46, %v995_v10  ;;  %v580_v28 = vunpack.c.3.s8 %v164_v0 }
 0x160   :  { %v998_v56 = vcvt.s32.f32 %v486_v14  ;;  %4280 = vmatprep.subr.bf16.mxu0 %v4279_v17  ;;  %v1707_v29 = vmul.f32 %v5214_v46, %v1027_v18  ;;  %v1030_v37 = vcvt.s32.f32 %v518_v33  ;;  %v485_v30 = vunpack.c.0.s8 %v5274_v57 }
 0x161   :  { %v1060_v54 = vcvt.s32.f32 %v548_v23  ;;  %v4309_v34 = vpack.c.bf16 %v1645_v25, %v1613_v53  ;;  %v1092_v35 = vcvt.s32.f32 %v580_v28  ;;  %v517_v36 = vunpack.c.1.s8 %v5274_v57  ;;  %v198_v53 = vld [vmem:[#allocation4 + $0x398] sm:$0xff] }
 0x162   :  { %v1678_v32 = vmul.f32 %v5221_v49, %v998_v56  ;;  %v4281_v39 = vpack.c.bf16 %v1707_v29, %v1675_v20  ;;  %v1710_v51 = vmul.f32 %v5221_v49, %v1030_v37  ;;  %v997_v55 = vcvt.s32.f32 %v485_v30 }
 0x163   :  { %v1740_v58 = vmul.f32 %v5205_v62, %v1060_v54  ;;  %4310 = vmatpush1.bf16.msra.mxu1 %v4309_v34  ;;  %v1772_v0 = vmul.f32 %v5205_v62, %v1092_v35  ;;  %v1029_v15 = vcvt.s32.f32 %v517_v36  ;;  %v547_v2 = vunpack.c.2.s8 %v163_v63  ;;  %v197_v54 = vld [vmem:[#allocation4 + $0x390] sm:$0xff] }
 0x164   :  { %v579_v41 = vunpack.c.3.s8 %v163_v63  ;;  %4282 = vmatpush1.bf16.msra.mxu0 %v4281_v39  ;;  %v4311_v59 = vpack.c.bf16 %v1710_v51, %v1678_v32  ;;  %v1677_v16 = vmul.f32 %v5235_v38, %v997_v55  ;;  %v550_v40 = vunpack.c.2.s8 %v166_v21 }
 0x165   :  { %v582_v26 = vunpack.c.3.s8 %v166_v21  ;;  %v4283_v44 = vpack.c.bf16 %v1772_v0, %v1740_v58  ;;  %v1709_v47 = vmul.f32 %v5235_v38, %v1029_v15  ;;  %v1059_v42 = vcvt.s32.f32 %v547_v2 }
 0x166   :  { %v1091_v52 = vcvt.s32.f32 %v579_v41  ;;  %4312 = vmatprep.subr.bf16.mxu1 %v4311_v59  ;;  %v1062_v8 = vcvt.s32.f32 %v550_v40  ;;  %v612_v48 = vunpack.c.0.s8 %v196_v22  ;;  %v644_v45 = vunpack.c.1.s8 %v196_v22 }
 0x167   :  { %v1094_v43 = vcvt.s32.f32 %v582_v26  ;;  %4284 = vmatprep.subr.bf16.mxu0 %v4283_v44  ;;  %v4313_v63 = vpack.c.bf16 %v1709_v47, %v1677_v16  ;;  %v1739_v19 = vmul.f32 %v5214_v46, %v1059_v42  ;;  %v549_v27 = vunpack.c.2.s8 %v5274_v57 }
 0x168   :  { %v1771_v60 = vmul.f32 %v5214_v46, %v1091_v52  ;;  %v1742_v21 = vmul.f32 %v5221_v49, %v1062_v8  ;;  %v1124_v31 = vcvt.s32.f32 %v612_v48  ;;  %v1156_v61 = vcvt.s32.f32 %v644_v45 }
 0x169   :  { %v1774_v9 = vmul.f32 %v5221_v49, %v1094_v43  ;;  %4314 = vmatpush1.bf16.msra.mxu1 %v4313_v63  ;;  %v581_v14 = vunpack.c.3.s8 %v5274_v57  ;;  %v1061_v17 = vcvt.s32.f32 %v549_v27  ;;  %v611_v18 = vunpack.c.0.s8 %v195_v50 }
 0x16a   :  { %v4285_v10 = vpack.c.bf16 %v1771_v60, %v1739_v19  ;;  %v1804_v23 = vmul.f32 %v5205_v62, %v1124_v31  ;;  %v1836_v25 = vmul.f32 %v5205_v62, %v1156_v61  ;;  %v643_v20 = vunpack.c.1.s8 %v195_v50  ;;  %v104_v19 = vld [vmem:[#allocation4 + $0xa8] sm:$0xff] }
 0x16b   :  { %v4315_v33 = vpack.c.bf16 %v1774_v9, %v1742_v21  ;;  %v1093_v56 = vcvt.s32.f32 %v581_v14  ;;  %v1741_v28 = vmul.f32 %v5235_v38, %v1061_v17  ;;  %v1123_v29 = vcvt.s32.f32 %v611_v18 }
 0x16c   :  { %4286 = vmatpush1.bf16.msra.mxu0 %v4285_v10  ;;  %v614_v37 = vunpack.c.0.s8 %v198_v53  ;;  %v4287_v30 = vpack.c.bf16 %v1836_v25, %v1804_v23  ;;  %v1155_v34 = vcvt.s32.f32 %v643_v20  ;;  %v646_v32 = vunpack.c.1.s8 %v198_v53 }
 0x16d   :  { %4316 = vmatprep.subr.bf16.mxu1 %v4315_v33  ;;  %v676_v57 = vunpack.c.2.s8 %v196_v22  ;;  %v1773_v35 = vmul.f32 %v5235_v38, %v1093_v56  ;;  %v1803_v36 = vmul.f32 %v5214_v46, %v1123_v29  ;;  %v708_v51 = vunpack.c.3.s8 %v196_v22  ;;  %v5307_v33 = vld [vmem:[#allocation4 + $0xa0] sm:$0xff] }
 0x16e   :  { %v1126_v39 = vcvt.s32.f32 %v614_v37  ;;  %4288 = vmatprep.subr.bf16.mxu0 %v4287_v30  ;;  %v1835_v58 = vmul.f32 %v5214_v46, %v1155_v34  ;;  %v1158_v55 = vcvt.s32.f32 %v646_v32  ;;  %v613_v15 = vunpack.c.0.s8 %v197_v54 }
 0x16f   :  { %v1188_v0 = vcvt.s32.f32 %v676_v57  ;;  %v4317_v2 = vpack.c.bf16 %v1773_v35, %v1741_v28  ;;  %v1220_v59 = vcvt.s32.f32 %v708_v51  ;;  %v645_v16 = vunpack.c.1.s8 %v197_v54 }
 0x170   :  { %v1806_v41 = vmul.f32 %v5221_v49, %v1126_v39  ;;  %v4289_v40 = vpack.c.bf16 %v1835_v58, %v1803_v36  ;;  %v1838_v26 = vmul.f32 %v5221_v49, %v1158_v55  ;;  %v1125_v47 = vcvt.s32.f32 %v613_v15 }
 0x171   :  { %v1868_v44 = vmul.f32 %v5205_v62, %v1188_v0  ;;  %4318 = vmatpush1.bf16.msra.mxu1 %v4317_v2  ;;  %v1900_v22 = vmul.f32 %v5205_v62, %v1220_v59  ;;  %v1157_v42 = vcvt.s32.f32 %v645_v16  ;;  %v675_v52 = vunpack.c.2.s8 %v195_v50  ;;  %v5324_v0 = vld [vmem:[#allocation4 + $0xb0] sm:$0xff]  ;;  %v5331_v59 = vld [vmem:[#allocation2] sm:$0xff] }
 0x172   :  { %v707_v8 = vunpack.c.3.s8 %v195_v50  ;;  %4290 = vmatpush1.bf16.msra.mxu0 %v4289_v40  ;;  %v4319_v43 = vpack.c.bf16 %v1838_v26, %v1806_v41  ;;  %v1805_v48 = vmul.f32 %v5235_v38, %v1125_v47  ;;  %v678_v45 = vunpack.c.2.s8 %v198_v53 }
 0x173   :  { %v710_v63 = vunpack.c.3.s8 %v198_v53  ;;  %v4291_v60 = vpack.c.bf16 %v1900_v22, %v1868_v44  ;;  %v1837_v27 = vmul.f32 %v5235_v38, %v1157_v42  ;;  %v1187_v21 = vcvt.s32.f32 %v675_v52 }
 0x174   :  { %v1219_v9 = vcvt.s32.f32 %v707_v8  ;;  %4320 = vmatprep.subr.bf16.mxu1 %v4319_v43  ;;  %v1190_v31 = vcvt.s32.f32 %v678_v45  ;;  %v677_v10 = vunpack.c.2.s8 %v197_v54  ;;  %v709_v62 = vunpack.c.3.s8 %v197_v54  ;;  %v106_v54 = vld [vmem:[#allocation4 + $0xb8] sm:$0xff] }
 0x175   :  { %v1222_v61 = vcvt.s32.f32 %v710_v63  ;;  %4292 = vmatprep.subr.bf16.mxu0 %v4291_v60  ;;  %v4321_v14 = vpack.c.bf16 %v1837_v27, %v1805_v48  ;;  %v1867_v50 = vmul.f32 %v5214_v46, %v1187_v21  ;;  %v232_v18 = vunpack.c.0.s8 %v104_v19  ;;  %v136_v21 = vld [vmem:[#allocation4 + $0x1a8] sm:$0xff] }
 0x176   :  { %v1899_v17 = vmul.f32 %v5214_v46, %v1219_v9  ;;  %v1870_v53 = vmul.f32 %v5221_v49, %v1190_v31  ;;  %v1189_v25 = vcvt.s32.f32 %v677_v10  ;;  %v1221_v20 = vcvt.s32.f32 %v709_v62 }
 0x177   :  { %v1902_v23 = vmul.f32 %v5221_v49, %v1222_v61  ;;  %4322 = vmatpush1.bf16.msra.mxu1 %v4321_v14  ;;  %v264_v28 = vunpack.c.1.s8 %v104_v19  ;;  %v744_v29 = vcvt.s32.f32 %v232_v18  ;;  %v5313_v37 = vrot.slane %v5195_v24, %v4763_v7 }
 0x178   :  { %v4293_v56 = vpack.c.bf16 %v1899_v17, %v1867_v50  ;;  %v1869_v46 = vmul.f32 %v5235_v38, %v1189_v25  ;;  %v1901_v34 = vmul.f32 %v5235_v38, %v1221_v20  ;;  %v231_v32 = vunpack.c.0.s8 %v5307_v33 }
 0x179   :  { %v4323_v30 = vpack.c.bf16 %v1902_v23, %v1870_v53  ;;  %v776_v49 = vcvt.s32.f32 %v264_v28  ;;  %v1424_v57 = vmul.f32 %v5313_v37, %v744_v29  ;;  %v263_v35 = vunpack.c.1.s8 %v5307_v33  ;;  %v5353_v29 = vld [vmem:[#allocation4 + $0x1a0] sm:$0xff] }
 0x17a   :  { %4294 = vmatpush1.bf16.msra.mxu0 %v4293_v56  ;;  %v5322_v36 = vrot.slane %v5195_v24, %v4767_v11  ;;  %v4325_v39 = vpack.c.bf16 %v1901_v34, %v1869_v46  ;;  %v743_v51 = vcvt.s32.f32 %v231_v32  ;;  %v234_v58 = vunpack.c.0.s8 %v106_v54 }
 0x17b   :  { %4324 = vmatprep.subr.bf16.mxu1 %v4323_v30  ;;  %v266_v55 = vunpack.c.1.s8 %v106_v54  ;;  %v1456_v38 = vmul.f32 %v5313_v37, %v776_v49  ;;  %v775_v15 = vcvt.s32.f32 %v263_v35  ;;  %v5329_v2 = vrot.slane %v5195_v24, %v4769_v12  ;;  %v138_v35 = vld [vmem:[#allocation4 + $0x1b8] sm:$0xff] }
 0x17c   :  { %v296_v41 = vunpack.c.2.s8 %v104_v19  ;;  %4326 = vmatpush1.bf16.msra.mxu1 %v4325_v39  ;;  %v1423_v16 = vmul.f32 %v5322_v36, %v743_v51  ;;  %v746_v40 = vcvt.s32.f32 %v234_v58  ;;  %v328_v44 = vunpack.c.3.s8 %v104_v19 }
 0x17d   :  { %2717 = vmatmul.mubr.f32.vlgmr.msra.gmra.mrb[8].mxu0 %v5331_v59  ;;  %v778_v26 = vcvt.s32.f32 %v266_v55  ;;  %v4327_v47 = vpack.c.bf16 %v1456_v38, %v1424_v57  ;;  %v1455_v22 = vmul.f32 %v5322_v36, %v775_v15  ;;  %v233_v52 = vunpack.c.0.s8 %v5324_v0 }
 0x17e   :  { %v808_v42 = vcvt.s32.f32 %v296_v41  ;;  %2858 = vmatprep.mubr.f32.mxu0 %v4657_v1  ;;  %v1426_v8 = vmul.f32 %v5329_v2, %v746_v40  ;;  %v840_v48 = vcvt.s32.f32 %v328_v44  ;;  %v265_v45 = vunpack.c.1.s8 %v5324_v0 }
 0x17f   :  { %v1458_v43 = vmul.f32 %v5329_v2, %v778_v26  ;;  %4328 = vmatprep.subr.bf16.mxu0 %v4327_v47  ;;  %v4329_v63 = vpack.c.bf16 %v1455_v22, %v1423_v16  ;;  %2788 = vmatmul.mubr.f32.vlgmr.msra.gmra.mrb[8].mxu1 %v5331_v59  ;;  %v745_v60 = vcvt.s32.f32 %v233_v52  ;;  %v5345_v27 = vrot.slane %v5195_v24, %v4771_v13  ;;  %v5366_v22 = vld [vmem:[#allocation4 + $0x1b0] sm:$0xff] }
 0x180   :  { %v1488_v19 = vmul.f32 %v5313_v37, %v808_v42  ;;  %v1520_v31 = vmul.f32 %v5313_v37, %v840_v48  ;;  %v777_v61 = vcvt.s32.f32 %v265_v45  ;;  %v295_v10 = vunpack.c.2.s8 %v5307_v33  ;;  %2929 = vmatprep.mubr.f32.mxu1 %v4657_v1 }
 0x181   :  { %v4359_v9 = vpack.c.bf16 %v1458_v43, %v1426_v8  ;;  %4330 = vmatpush1.bf16.msra.mxu0 %v4329_v63  ;;  %v1425_v62 = vmul.f32 %v5345_v27, %v745_v60  ;;  %v327_v14 = vunpack.c.3.s8 %v5307_v33  ;;  %v298_v50 = vunpack.c.2.s8 %v106_v54 }
 0x182   :  { %v330_v17 = vunpack.c.3.s8 %v106_v54  ;;  %v4331_v18 = vpack.c.bf16 %v1520_v31, %v1488_v19  ;;  %v1457_v24 = vmul.f32 %v5345_v27, %v777_v61  ;;  %v807_v53 = vcvt.s32.f32 %v295_v10 }
 0x183   :  { %4360 = vmatprep.subr.bf16.mxu1 %v4359_v9  ;;  %v360_v23 = vunpack.c.0.s8 %v136_v21  ;;  %v839_v25 = vcvt.s32.f32 %v327_v14  ;;  %v810_v20 = vcvt.s32.f32 %v298_v50  ;;  %v392_v28 = vunpack.c.1.s8 %v136_v21 }
 0x184   :  { %v842_v56 = vcvt.s32.f32 %v330_v17  ;;  %4332 = vmatprep.subr.bf16.mxu0 %v4331_v18  ;;  %v4361_v30 = vpack.c.bf16 %v1457_v24, %v1425_v62  ;;  %v1487_v46 = vmul.f32 %v5322_v36, %v807_v53  ;;  %v297_v33 = vunpack.c.2.s8 %v5324_v0 }
 0x185   :  { %v872_v34 = vcvt.s32.f32 %v360_v23  ;;  %v1519_v54 = vmul.f32 %v5322_v36, %v839_v25  ;;  %v1490_v32 = vmul.f32 %v5329_v2, %v810_v20  ;;  %v904_v57 = vcvt.s32.f32 %v392_v28  ;;  %v168_v20 = vld [vmem:[#allocation4 + $0x2a8] sm:$0xff] }
 0x186   :  { %v1522_v49 = vmul.f32 %v5329_v2, %v842_v56  ;;  %4362 = vmatpush1.bf16.msra.mxu1 %v4361_v30  ;;  %v329_v51 = vunpack.c.3.s8 %v5324_v0  ;;  %v809_v58 = vcvt.s32.f32 %v297_v33  ;;  %v359_v55 = vunpack.c.0.s8 %v5353_v29 }
 0x187   :  { %v1552_v39 = vmul.f32 %v5313_v37, %v872_v34  ;;  %v4333_v38 = vpack.c.bf16 %v1519_v54, %v1487_v46  ;;  %v1584_v41 = vmul.f32 %v5313_v37, %v904_v57  ;;  %v391_v16 = vunpack.c.1.s8 %v5353_v29  ;;  %v5380_v34 = vpop.f32.mrb[0].mxu0 }
 0x188   :  { %v4363_v15 = vpack.c.bf16 %v1522_v49, %v1490_v32  ;;  %v841_v40 = vcvt.s32.f32 %v329_v51  ;;  %v1489_v26 = vmul.f32 %v5345_v27, %v809_v58  ;;  %v871_v44 = vcvt.s32.f32 %v359_v55 }
 0x189   :  { %v362_v47 = vunpack.c.0.s8 %v138_v35  ;;  %4334 = vmatpush1.bf16.msra.mxu0 %v4333_v38  ;;  %v4335_v42 = vpack.c.bf16 %v1584_v41, %v1552_v39  ;;  %v903_v0 = vcvt.s32.f32 %v391_v16  ;;  %v394_v52 = vunpack.c.1.s8 %v138_v35 }
 0x18a   :  { %4364 = vmatprep.subr.bf16.mxu1 %v4363_v15  ;;  %v424_v8 = vunpack.c.2.s8 %v136_v21  ;;  %v1521_v43 = vmul.f32 %v5345_v27, %v841_v40  ;;  %v1551_v48 = vmul.f32 %v5322_v36, %v871_v44  ;;  %v456_v63 = vunpack.c.3.s8 %v136_v21  ;;  %v170_v44 = vld [vmem:[#allocation4 + $0x2b8] sm:$0xff] }
 0x18b   :  { %v874_v45 = vcvt.s32.f32 %v362_v47  ;;  %4336 = vmatprep.subr.bf16.mxu0 %v4335_v42  ;;  %v1583_v19 = vmul.f32 %v5322_v36, %v903_v0  ;;  %v906_v60 = vcvt.s32.f32 %v394_v52  ;;  %v361_v31 = vunpack.c.0.s8 %v5366_v22  ;;  %v5390_v47 = vpop.f32.mrb[1].mxu0 }
 0x18c   :  { %v936_v9 = vcvt.s32.f32 %v424_v8  ;;  %v4365_v61 = vpack.c.bf16 %v1521_v43, %v1489_v26  ;;  %v968_v62 = vcvt.s32.f32 %v456_v63  ;;  %v393_v14 = vunpack.c.1.s8 %v5366_v22 }
 0x18d   :  { %v1554_v10 = vmul.f32 %v5329_v2, %v874_v45  ;;  %v4337_v50 = vpack.c.bf16 %v1583_v19, %v1551_v48  ;;  %v1586_v17 = vmul.f32 %v5329_v2, %v906_v60  ;;  %v873_v24 = vcvt.s32.f32 %v361_v31 }
 0x18e   :  { %v1616_v18 = vmul.f32 %v5313_v37, %v936_v9  ;;  %4366 = vmatpush1.bf16.msra.mxu1 %v4365_v61  ;;  %v1648_v21 = vmul.f32 %v5313_v37, %v968_v62  ;;  %v905_v53 = vcvt.s32.f32 %v393_v14  ;;  %v423_v23 = vunpack.c.2.s8 %v5353_v29  ;;  %v5398_v61 = vld [vmem:[#allocation4 + $0x2b0] sm:$0xff] }
 0x18f   :  { %v455_v25 = vunpack.c.3.s8 %v5353_v29  ;;  %4338 = vmatpush1.bf16.msra.mxu0 %v4337_v50  ;;  %v4367_v56 = vpack.c.bf16 %v1586_v17, %v1554_v10  ;;  %v1553_v28 = vmul.f32 %v5345_v27, %v873_v24  ;;  %v426_v30 = vunpack.c.2.s8 %v138_v35  ;;  %v5383_v29 = vld [vmem:[#allocation4 + $0x2a0] sm:$0xff] }
 0x190   :  { %v458_v46 = vunpack.c.3.s8 %v138_v35  ;;  %v4339_v33 = vpack.c.bf16 %v1648_v21, %v1616_v18  ;;  %v1585_v54 = vmul.f32 %v5345_v27, %v905_v53  ;;  %v935_v32 = vcvt.s32.f32 %v423_v23 }
 0x191   :  { %v967_v49 = vcvt.s32.f32 %v455_v25  ;;  %4368 = vmatprep.subr.bf16.mxu1 %v4367_v56  ;;  %v938_v57 = vcvt.s32.f32 %v426_v30  ;;  %v488_v51 = vunpack.c.0.s8 %v168_v20  ;;  %v520_v58 = vunpack.c.1.s8 %v168_v20  ;;  %v5404_v56 = vpop.f32.mrb[0].mxu1 }
 0x192   :  { %v970_v39 = vcvt.s32.f32 %v458_v46  ;;  %4340 = vmatprep.subr.bf16.mxu0 %v4339_v33  ;;  %v4369_v55 = vpack.c.bf16 %v1585_v54, %v1553_v28  ;;  %v1615_v38 = vmul.f32 %v5322_v36, %v935_v32  ;;  %v425_v15 = vunpack.c.2.s8 %v5366_v22 }
 0x193   :  { %v1647_v35 = vmul.f32 %v5322_v36, %v967_v49  ;;  %v1618_v41 = vmul.f32 %v5329_v2, %v938_v57  ;;  %v1000_v40 = vcvt.s32.f32 %v488_v51  ;;  %v1032_v26 = vcvt.s32.f32 %v520_v58 }
 0x194   :  { %v1650_v16 = vmul.f32 %v5329_v2, %v970_v39  ;;  %4370 = vmatpush1.bf16.msra.mxu1 %v4369_v55  ;;  %v457_v0 = vunpack.c.3.s8 %v5366_v22  ;;  %v937_v52 = vcvt.s32.f32 %v425_v15  ;;  %v487_v8 = vunpack.c.0.s8 %v5383_v29  ;;  %v200_v55 = vld [vmem:[#allocation4 + $0x3a8] sm:$0xff] }
 0x195   :  { %v4341_v42 = vpack.c.bf16 %v1647_v35, %v1615_v38  ;;  %v1680_v48 = vmul.f32 %v5313_v37, %v1000_v40  ;;  %v1712_v45 = vmul.f32 %v5313_v37, %v1032_v26  ;;  %v519_v63 = vunpack.c.1.s8 %v5383_v29 }
 0x196   :  { %v4371_v43 = vpack.c.bf16 %v1650_v16, %v1618_v41  ;;  %v969_v19 = vcvt.s32.f32 %v457_v0  ;;  %v1617_v60 = vmul.f32 %v5345_v27, %v937_v52  ;;  %v999_v9 = vcvt.s32.f32 %v487_v8 }
 0x197   :  { %4342 = vmatpush1.bf16.msra.mxu0 %v4341_v42  ;;  %v490_v31 = vunpack.c.0.s8 %v170_v44  ;;  %v4343_v22 = vpack.c.bf16 %v1712_v45, %v1680_v48  ;;  %v1031_v10 = vcvt.s32.f32 %v519_v63  ;;  %v522_v62 = vunpack.c.1.s8 %v170_v44  ;;  %v5415_v48 = vld [vmem:[#allocation4 + $0x3a0] sm:$0xff] }
 0x198   :  { %4372 = vmatprep.subr.bf16.mxu1 %v4371_v43  ;;  %v552_v14 = vunpack.c.2.s8 %v168_v20  ;;  %v1649_v50 = vmul.f32 %v5345_v27, %v969_v19  ;;  %v1679_v17 = vmul.f32 %v5322_v36, %v999_v9  ;;  %v584_v24 = vunpack.c.3.s8 %v168_v20 }
 0x199   :  { %v1002_v18 = vcvt.s32.f32 %v490_v31  ;;  %4344 = vmatprep.subr.bf16.mxu0 %v4343_v22  ;;  %v1711_v21 = vmul.f32 %v5322_v36, %v1031_v10  ;;  %v1034_v53 = vcvt.s32.f32 %v522_v62  ;;  %v489_v25 = vunpack.c.0.s8 %v5398_v61  ;;  %v202_v10 = vld [vmem:[#allocation4 + $0x3b8] sm:$0xff] }
 0x19a   :  { %v1064_v23 = vcvt.s32.f32 %v552_v14  ;;  %v4373_v28 = vpack.c.bf16 %v1649_v50, %v1617_v60  ;;  %v1096_v46 = vcvt.s32.f32 %v584_v24  ;;  %v521_v33 = vunpack.c.1.s8 %v5398_v61 }
 0x19b   :  { %v1682_v30 = vmul.f32 %v5329_v2, %v1002_v18  ;;  %v4345_v54 = vpack.c.bf16 %v1711_v21, %v1679_v17  ;;  %v1714_v32 = vmul.f32 %v5329_v2, %v1034_v53  ;;  %v1001_v49 = vcvt.s32.f32 %v489_v25 }
 0x19c   :  { %v1744_v20 = vmul.f32 %v5313_v37, %v1064_v23  ;;  %4374 = vmatpush1.bf16.msra.mxu1 %v4373_v28  ;;  %v1776_v57 = vmul.f32 %v5313_v37, %v1096_v46  ;;  %v1033_v39 = vcvt.s32.f32 %v521_v33  ;;  %v551_v51 = vunpack.c.2.s8 %v5383_v29  ;;  %v201_v46 = vld [vmem:[#allocation4 + $0x3b0] sm:$0xff] }
 0x19d   :  { %v583_v58 = vunpack.c.3.s8 %v5383_v29  ;;  %4346 = vmatpush1.bf16.msra.mxu0 %v4345_v54  ;;  %v4375_v38 = vpack.c.bf16 %v1714_v32, %v1682_v30  ;;  %v1681_v35 = vmul.f32 %v5345_v27, %v1001_v49  ;;  %v554_v15 = vunpack.c.2.s8 %v170_v44  ;;  %v5417_v29 = vpop.f32.mrb[1].mxu1 }
 0x19e   :  { %v586_v41 = vunpack.c.3.s8 %v170_v44  ;;  %v4347_v16 = vpack.c.bf16 %v1776_v57, %v1744_v20  ;;  %v1713_v40 = vmul.f32 %v5345_v27, %v1033_v39  ;;  %v1063_v26 = vcvt.s32.f32 %v551_v51 }
 0x19f   :  { %v1095_v42 = vcvt.s32.f32 %v583_v58  ;;  %4376 = vmatprep.subr.bf16.mxu1 %v4375_v38  ;;  %v1066_v0 = vcvt.s32.f32 %v554_v15  ;;  %v616_v8 = vunpack.c.0.s8 %v200_v55  ;;  %v648_v43 = vunpack.c.1.s8 %v200_v55 }
 0x1a0   :  { %v1098_v52 = vcvt.s32.f32 %v586_v41  ;;  %4348 = vmatprep.subr.bf16.mxu0 %v4347_v16  ;;  %v4377_v45 = vpack.c.bf16 %v1713_v40, %v1681_v35  ;;  %v1743_v63 = vmul.f32 %v5322_v36, %v1063_v26  ;;  %v553_v19 = vunpack.c.2.s8 %v5398_v61 }
 0x1a1   :  { %v1775_v44 = vmul.f32 %v5322_v36, %v1095_v42  ;;  %v1746_v60 = vmul.f32 %v5329_v2, %v1066_v0  ;;  %v1128_v31 = vcvt.s32.f32 %v616_v8  ;;  %v1160_v22 = vcvt.s32.f32 %v648_v43 }
 0x1a2   :  { %v1778_v9 = vmul.f32 %v5329_v2, %v1098_v52  ;;  %4378 = vmatpush1.bf16.msra.mxu1 %v4377_v45  ;;  %v585_v14 = vunpack.c.3.s8 %v5398_v61  ;;  %v1065_v50 = vcvt.s32.f32 %v553_v19  ;;  %v615_v17 = vunpack.c.0.s8 %v5415_v48 }
 0x1a3   :  { %v4349_v62 = vpack.c.bf16 %v1775_v44, %v1743_v63  ;;  %v1808_v24 = vmul.f32 %v5313_v37, %v1128_v31  ;;  %v1840_v21 = vmul.f32 %v5313_v37, %v1160_v22  ;;  %v647_v53 = vunpack.c.1.s8 %v5415_v48 }
 0x1a4   :  { %v4379_v18 = vpack.c.bf16 %v1778_v9, %v1746_v60  ;;  %v1097_v23 = vcvt.s32.f32 %v585_v14  ;;  %v1745_v25 = vmul.f32 %v5345_v27, %v1065_v50  ;;  %v1127_v28 = vcvt.s32.f32 %v615_v17  ;;  %v108_v9 = vld [vmem:[#allocation4 + $0xc8] sm:$0xff] }
 0x1a5   :  { %4350 = vmatpush1.bf16.msra.mxu0 %v4349_v62  ;;  %v618_v30 = vunpack.c.0.s8 %v202_v10  ;;  %v4351_v33 = vpack.c.bf16 %v1840_v21, %v1808_v24  ;;  %v1159_v61 = vcvt.s32.f32 %v647_v53  ;;  %v650_v54 = vunpack.c.1.s8 %v202_v10  ;;  %v5441_v24 = vld [vmem:[#allocation6 + $0x18] sm:$0xff] }
 0x1a6   :  { %4380 = vmatprep.subr.bf16.mxu1 %v4379_v18  ;;  %v680_v32 = vunpack.c.2.s8 %v200_v55  ;;  %v1777_v20 = vmul.f32 %v5345_v27, %v1097_v23  ;;  %v1807_v49 = vmul.f32 %v5322_v36, %v1127_v28  ;;  %v712_v39 = vunpack.c.3.s8 %v200_v55  ;;  %v5445_v23 = vld [vmem:[#allocation4 + $0xc0] sm:$0xff] }
 0x1a7   :  { %v1130_v57 = vcvt.s32.f32 %v618_v30  ;;  %4352 = vmatprep.subr.bf16.mxu0 %v4351_v33  ;;  %v1839_v51 = vmul.f32 %v5322_v36, %v1159_v61  ;;  %v1162_v58 = vcvt.s32.f32 %v650_v54  ;;  %v617_v35 = vunpack.c.0.s8 %v201_v46 }
 0x1a8   :  { %v1192_v38 = vcvt.s32.f32 %v680_v32  ;;  %v4381_v15 = vpack.c.bf16 %v1777_v20, %v1745_v25  ;;  %v1224_v16 = vcvt.s32.f32 %v712_v39  ;;  %v649_v40 = vunpack.c.1.s8 %v201_v46  ;;  %v5453_v20 = vld [vmem:[#allocation4 + $0xd8] sm:$0xff] }
 0x1a9   :  { %v1810_v41 = vmul.f32 %v5329_v2, %v1130_v57  ;;  %v4353_v26 = vpack.c.bf16 %v1839_v51, %v1807_v49  ;;  %v1842_v42 = vmul.f32 %v5329_v2, %v1162_v58  ;;  %v1129_v52 = vcvt.s32.f32 %v617_v35 }
 0x1aa   :  { %v1872_v0 = vmul.f32 %v5313_v37, %v1192_v38  ;;  %4382 = vmatpush1.bf16.msra.mxu1 %v4381_v15  ;;  %v1904_v55 = vmul.f32 %v5313_v37, %v1224_v16  ;;  %v1161_v8 = vcvt.s32.f32 %v649_v40  ;;  %v679_v43 = vunpack.c.2.s8 %v5415_v48 }
 0x1ab   :  { %v711_v45 = vunpack.c.3.s8 %v5415_v48  ;;  %4354 = vmatpush1.bf16.msra.mxu0 %v4353_v26  ;;  %v4383_v63 = vpack.c.bf16 %v1842_v42, %v1810_v41  ;;  %v1809_v44 = vmul.f32 %v5345_v27, %v1129_v52  ;;  %v682_v19 = vunpack.c.2.s8 %v202_v10 }
 0x1ac   :  { %v714_v60 = vunpack.c.3.s8 %v202_v10  ;;  %v4355_v31 = vpack.c.bf16 %v1904_v55, %v1872_v0  ;;  %v1841_v22 = vmul.f32 %v5345_v27, %v1161_v8  ;;  %v1191_v62 = vcvt.s32.f32 %v679_v43 }
 0x1ad   :  { %v1223_v14 = vcvt.s32.f32 %v711_v45  ;;  %4384 = vmatprep.subr.bf16.mxu1 %v4383_v63  ;;  %v1194_v50 = vcvt.s32.f32 %v682_v19  ;;  %v681_v17 = vunpack.c.2.s8 %v201_v46  ;;  %v713_v18 = vunpack.c.3.s8 %v201_v46  ;;  %v5475_v45 = vpop.f32.mrb[2].mxu0  ;;  %v5477_v63 = vpop.f32.mrb[2].mxu1 }
 0x1ae   :  { %v1226_v37 = vcvt.s32.f32 %v714_v60  ;;  %4356 = vmatprep.subr.bf16.mxu0 %v4355_v31  ;;  %v4385_v48 = vpack.c.bf16 %v1841_v22, %v1809_v44  ;;  %v1871_v21 = vmul.f32 %v5322_v36, %v1191_v62  ;;  %v236_v10 = vunpack.c.0.s8 %v108_v9  ;;  %v5482_v22 = vpop.f32.mrb[3].mxu0 }
 0x1af   :  { %v1903_v53 = vmul.f32 %v5322_v36, %v1223_v14  ;;  %v1874_v25 = vmul.f32 %v5329_v2, %v1194_v50  ;;  %v1193_v30 = vcvt.s32.f32 %v681_v17  ;;  %v1225_v33 = vcvt.s32.f32 %v713_v18 }
 0x1b0   :  { %v1906_v28 = vmul.f32 %v5329_v2, %v1226_v37  ;;  %4386 = vmatpush1.bf16.msra.mxu1 %v4385_v48  ;;  %v268_v46 = vunpack.c.1.s8 %v108_v9  ;;  %v748_v54 = vcvt.s32.f32 %v236_v10  ;;  %v5451_v32 = vrot.slane %v5441_v24, %v4755_v3 }
 0x1b1   :  { %v4357_v61 = vpack.c.bf16 %v1903_v53, %v1871_v21  ;;  %v1873_v49 = vmul.f32 %v5345_v27, %v1193_v30  ;;  %v1905_v57 = vmul.f32 %v5345_v27, %v1225_v33  ;;  %v235_v39 = vunpack.c.0.s8 %v5445_v23  ;;  %v5466_v27 = vld [vmem:[#allocation4 + $0xd0] sm:$0xff]  ;;  %v5493_v21 = vld [vmem:[#allocation4 + $0x1c8] sm:$0xff]  ;;  %v5498_v30 = vpop.f32.mrb[3].mxu1 }
 0x1b2   :  { %v4387_v36 = vpack.c.bf16 %v1906_v28, %v1874_v25  ;;  %v780_v2 = vcvt.s32.f32 %v268_v46  ;;  %v1428_v51 = vmul.f32 %v5451_v32, %v748_v54  ;;  %v267_v58 = vunpack.c.1.s8 %v5445_v23 }
 0x1b3   :  { %4358 = vmatpush1.bf16.msra.mxu0 %v4357_v61  ;;  %v5462_v38 = vrot.slane %v5441_v24, %v4757_v4  ;;  %v4389_v35 = vpack.c.bf16 %v1905_v57, %v1873_v49  ;;  %v747_v15 = vcvt.s32.f32 %v235_v39  ;;  %v238_v41 = vunpack.c.0.s8 %v5453_v20 }
 0x1b4   :  { %4388 = vmatprep.subr.bf16.mxu1 %v4387_v36  ;;  %v270_v16 = vunpack.c.1.s8 %v5453_v20  ;;  %v1460_v40 = vmul.f32 %v5451_v32, %v780_v2  ;;  %v779_v26 = vcvt.s32.f32 %v267_v58  ;;  %v5471_v42 = vrot.slane %v5441_v24, %v4759_v5 }
 0x1b5   :  { %v300_v0 = vunpack.c.2.s8 %v108_v9  ;;  %4390 = vmatpush1.bf16.msra.mxu1 %v4389_v35  ;;  %v1427_v52 = vmul.f32 %v5462_v38, %v747_v15  ;;  %v750_v55 = vcvt.s32.f32 %v238_v41  ;;  %v332_v43 = vunpack.c.3.s8 %v108_v9  ;;  %v139_v35 = vld [vmem:[#allocation4 + $0x1c0] sm:$0xff] }
 0x1b6   :  { %2859 = vmatmul.mubr.f32.vlgmr.msra.gmra.mrb[10].mxu0 %v5331_v59  ;;  %v782_v8 = vcvt.s32.f32 %v270_v16  ;;  %v4391_v44 = vpack.c.bf16 %v1460_v40, %v1428_v51  ;;  %v1459_v19 = vmul.f32 %v5462_v38, %v779_v26  ;;  %v237_v31 = vunpack.c.0.s8 %v5466_v27 }
 0x1b7   :  { %v812_v60 = vcvt.s32.f32 %v300_v0  ;;  %3000 = vmatprep.mubr.f32.mxu0 %v4657_v1  ;;  %v1430_v62 = vmul.f32 %v5471_v42, %v750_v55  ;;  %v844_v50 = vcvt.s32.f32 %v332_v43  ;;  %v269_v9 = vunpack.c.1.s8 %v5466_v27 }
 0x1b8   :  { %v1462_v14 = vmul.f32 %v5471_v42, %v782_v8  ;;  %4392 = vmatprep.subr.bf16.mxu0 %v4391_v44  ;;  %v4393_v37 = vpack.c.bf16 %v1459_v19, %v1427_v52  ;;  %2930 = vmatmul.mubr.f32.vlgmr.msra.gmra.mrb[10].mxu1 %v5331_v59  ;;  %v749_v18 = vcvt.s32.f32 %v237_v31  ;;  %v5491_v48 = vrot.slane %v5441_v24, %v4761_v6  ;;  %v142_v52 = vld [vmem:[#allocation4 + $0x1d8] sm:$0xff] }
 0x1b9   :  { %v1492_v17 = vmul.f32 %v5451_v32, %v812_v60  ;;  %v1524_v10 = vmul.f32 %v5451_v32, %v844_v50  ;;  %v781_v25 = vcvt.s32.f32 %v269_v9  ;;  %v299_v28 = vunpack.c.2.s8 %v5445_v23  ;;  %3071 = vmatprep.mubr.f32.mxu1 %v4657_v1 }
 0x1ba   :  { %v4423_v53 = vpack.c.bf16 %v1462_v14, %v1430_v62  ;;  %4394 = vmatpush1.bf16.msra.mxu0 %v4393_v37  ;;  %v1429_v59 = vmul.f32 %v5491_v48, %v749_v18  ;;  %v331_v33 = vunpack.c.3.s8 %v5445_v23  ;;  %v302_v61 = vunpack.c.2.s8 %v5453_v20 }
 0x1bb   :  { %v334_v46 = vunpack.c.3.s8 %v5453_v20  ;;  %v4395_v54 = vpack.c.bf16 %v1524_v10, %v1492_v17  ;;  %v1461_v36 = vmul.f32 %v5491_v48, %v781_v25  ;;  %v811_v49 = vcvt.s32.f32 %v299_v28  ;;  %v5516_v17 = vld [vmem:[#allocation4 + $0x1d0] sm:$0xff] }
 0x1bc   :  { %4424 = vmatprep.subr.bf16.mxu1 %v4423_v53  ;;  %v364_v57 = vunpack.c.0.s8 %v5493_v21  ;;  %v843_v39 = vcvt.s32.f32 %v331_v33  ;;  %v814_v2 = vcvt.s32.f32 %v302_v61  ;;  %v396_v58 = vunpack.c.1.s8 %v5493_v21 }
 0x1bd   :  { %v846_v51 = vcvt.s32.f32 %v334_v46  ;;  %4396 = vmatprep.subr.bf16.mxu0 %v4395_v54  ;;  %v4425_v15 = vpack.c.bf16 %v1461_v36, %v1429_v59  ;;  %v1491_v23 = vmul.f32 %v5462_v38, %v811_v49  ;;  %v301_v20 = vunpack.c.2.s8 %v5466_v27 }
 0x1be   :  { %v876_v41 = vcvt.s32.f32 %v364_v57  ;;  %v1523_v16 = vmul.f32 %v5462_v38, %v843_v39  ;;  %v1494_v40 = vmul.f32 %v5471_v42, %v814_v2  ;;  %v908_v0 = vcvt.s32.f32 %v396_v58 }
 0x1bf   :  { %v1526_v26 = vmul.f32 %v5471_v42, %v846_v51  ;;  %4426 = vmatpush1.bf16.msra.mxu1 %v4425_v15  ;;  %v333_v8 = vunpack.c.3.s8 %v5466_v27  ;;  %v813_v43 = vcvt.s32.f32 %v301_v20  ;;  %v363_v44 = vunpack.c.0.s8 %v139_v35 }
 0x1c0   :  { %v1556_v55 = vmul.f32 %v5451_v32, %v876_v41  ;;  %v4397_v19 = vpack.c.bf16 %v1523_v16, %v1491_v23  ;;  %v1588_v31 = vmul.f32 %v5451_v32, %v908_v0  ;;  %v395_v62 = vunpack.c.1.s8 %v139_v35 }
 0x1c1   :  { %v4427_v60 = vpack.c.bf16 %v1526_v26, %v1494_v40  ;;  %v845_v14 = vcvt.s32.f32 %v333_v8  ;;  %v1493_v50 = vmul.f32 %v5491_v48, %v813_v43  ;;  %v875_v9 = vcvt.s32.f32 %v363_v44  ;;  %v172_v40 = vld [vmem:[#allocation4 + $0x2c8] sm:$0xff] }
 0x1c2   :  { %v366_v37 = vunpack.c.0.s8 %v142_v52  ;;  %4398 = vmatpush1.bf16.msra.mxu0 %v4397_v19  ;;  %v4399_v18 = vpack.c.bf16 %v1588_v31, %v1556_v55  ;;  %v907_v53 = vcvt.s32.f32 %v395_v62  ;;  %v398_v10 = vunpack.c.1.s8 %v142_v52 }
 0x1c3   :  { %4428 = vmatprep.subr.bf16.mxu1 %v4427_v60  ;;  %v428_v27 = vunpack.c.2.s8 %v5493_v21  ;;  %v1525_v25 = vmul.f32 %v5491_v48, %v845_v14  ;;  %v1555_v28 = vmul.f32 %v5462_v38, %v875_v9  ;;  %v460_v33 = vunpack.c.3.s8 %v5493_v21  ;;  %v171_v9 = vld [vmem:[#allocation4 + $0x2c0] sm:$0xff] }
 0x1c4   :  { %v878_v59 = vcvt.s32.f32 %v366_v37  ;;  %4400 = vmatprep.subr.bf16.mxu0 %v4399_v18  ;;  %v1587_v61 = vmul.f32 %v5462_v38, %v907_v53  ;;  %v910_v46 = vcvt.s32.f32 %v398_v10  ;;  %v365_v36 = vunpack.c.0.s8 %v5516_v17 }
 0x1c5   :  { %v940_v54 = vcvt.s32.f32 %v428_v27  ;;  %v4429_v49 = vpack.c.bf16 %v1525_v25, %v1493_v50  ;;  %v972_v39 = vcvt.s32.f32 %v460_v33  ;;  %v397_v2 = vunpack.c.1.s8 %v5516_v17 }
 0x1c6   :  { %v1558_v57 = vmul.f32 %v5471_v42, %v878_v59  ;;  %v4401_v51 = vpack.c.bf16 %v1587_v61, %v1555_v28  ;;  %v1590_v58 = vmul.f32 %v5471_v42, %v910_v46  ;;  %v877_v23 = vcvt.s32.f32 %v365_v36  ;;  %v174_v28 = vld [vmem:[#allocation4 + $0x2d8] sm:$0xff] }
 0x1c7   :  { %v1620_v15 = vmul.f32 %v5451_v32, %v940_v54  ;;  %4430 = vmatpush1.bf16.msra.mxu1 %v4429_v49  ;;  %v1652_v21 = vmul.f32 %v5451_v32, %v972_v39  ;;  %v909_v41 = vcvt.s32.f32 %v397_v2  ;;  %v427_v20 = vunpack.c.2.s8 %v139_v35 }
 0x1c8   :  { %v459_v16 = vunpack.c.3.s8 %v139_v35  ;;  %4402 = vmatpush1.bf16.msra.mxu0 %v4401_v51  ;;  %v4431_v26 = vpack.c.bf16 %v1590_v58, %v1558_v57  ;;  %v1557_v0 = vmul.f32 %v5491_v48, %v877_v23  ;;  %v430_v55 = vunpack.c.2.s8 %v142_v52 }
 0x1c9   :  { %v462_v8 = vunpack.c.3.s8 %v142_v52  ;;  %v4403_v43 = vpack.c.bf16 %v1652_v21, %v1620_v15  ;;  %v1589_v44 = vmul.f32 %v5491_v48, %v909_v41  ;;  %v939_v19 = vcvt.s32.f32 %v427_v20  ;;  %v5540_v15 = vld [vmem:[#allocation4 + $0x2d0] sm:$0xff] }
 0x1ca   :  { %v971_v60 = vcvt.s32.f32 %v459_v16  ;;  %4432 = vmatprep.subr.bf16.mxu1 %v4431_v26  ;;  %v942_v31 = vcvt.s32.f32 %v430_v55  ;;  %v492_v14 = vunpack.c.0.s8 %v172_v40  ;;  %v524_v50 = vunpack.c.1.s8 %v172_v40 }
 0x1cb   :  { %v974_v62 = vcvt.s32.f32 %v462_v8  ;;  %4404 = vmatprep.subr.bf16.mxu0 %v4403_v43  ;;  %v4433_v35 = vpack.c.bf16 %v1589_v44, %v1557_v0  ;;  %v1619_v37 = vmul.f32 %v5462_v38, %v939_v19  ;;  %v429_v53 = vunpack.c.2.s8 %v5516_v17 }
 0x1cc   :  { %v1651_v18 = vmul.f32 %v5462_v38, %v971_v60  ;;  %v1622_v52 = vmul.f32 %v5471_v42, %v942_v31  ;;  %v1004_v27 = vcvt.s32.f32 %v492_v14  ;;  %v1036_v25 = vcvt.s32.f32 %v524_v50 }
 0x1cd   :  { %v1654_v10 = vmul.f32 %v5471_v42, %v974_v62  ;;  %4434 = vmatpush1.bf16.msra.mxu1 %v4433_v35  ;;  %v461_v33 = vunpack.c.3.s8 %v5516_v17  ;;  %v941_v61 = vcvt.s32.f32 %v429_v53  ;;  %v491_v46 = vunpack.c.0.s8 %v171_v9 }
 0x1ce   :  { %v4405_v59 = vpack.c.bf16 %v1651_v18, %v1619_v37  ;;  %v1684_v36 = vmul.f32 %v5451_v32, %v1004_v27  ;;  %v1716_v49 = vmul.f32 %v5451_v32, %v1036_v25  ;;  %v523_v57 = vunpack.c.1.s8 %v171_v9 }
 0x1cf   :  { %v4435_v54 = vpack.c.bf16 %v1654_v10, %v1622_v52  ;;  %v973_v39 = vcvt.s32.f32 %v461_v33  ;;  %v1621_v2 = vmul.f32 %v5491_v48, %v941_v61  ;;  %v1003_v51 = vcvt.s32.f32 %v491_v46  ;;  %v204_v10 = vld [vmem:[#allocation4 + $0x3c8] sm:$0xff] }
 0x1d0   :  { %4406 = vmatpush1.bf16.msra.mxu0 %v4405_v59  ;;  %v494_v58 = vunpack.c.0.s8 %v174_v28  ;;  %v4407_v23 = vpack.c.bf16 %v1716_v49, %v1684_v36  ;;  %v1035_v21 = vcvt.s32.f32 %v523_v57  ;;  %v526_v17 = vunpack.c.1.s8 %v174_v28 }
 0x1d1   :  { %4436 = vmatprep.subr.bf16.mxu1 %v4435_v54  ;;  %v556_v41 = vunpack.c.2.s8 %v172_v40  ;;  %v1653_v20 = vmul.f32 %v5491_v48, %v973_v39  ;;  %v1683_v16 = vmul.f32 %v5462_v38, %v1003_v51  ;;  %v588_v0 = vunpack.c.3.s8 %v172_v40  ;;  %v5553_v51 = vld [vmem:[#allocation4 + $0x3c0] sm:$0xff] }
 0x1d2   :  { %v1006_v26 = vcvt.s32.f32 %v494_v58  ;;  %4408 = vmatprep.subr.bf16.mxu0 %v4407_v23  ;;  %v1715_v55 = vmul.f32 %v5462_v38, %v1035_v21  ;;  %v1038_v8 = vcvt.s32.f32 %v526_v17  ;;  %v493_v44 = vunpack.c.0.s8 %v5540_v15 }
 0x1d3   :  { %v1068_v43 = vcvt.s32.f32 %v556_v41  ;;  %v4437_v19 = vpack.c.bf16 %v1653_v20, %v1621_v2  ;;  %v1100_v31 = vcvt.s32.f32 %v588_v0  ;;  %v525_v62 = vunpack.c.1.s8 %v5540_v15 }
 0x1d4   :  { %v1686_v60 = vmul.f32 %v5471_v42, %v1006_v26  ;;  %v4409_v14 = vpack.c.bf16 %v1715_v55, %v1683_v16  ;;  %v1718_v50 = vmul.f32 %v5471_v42, %v1038_v8  ;;  %v1005_v37 = vcvt.s32.f32 %v493_v44  ;;  %v206_v16 = vld [vmem:[#allocation4 + $0x3d8] sm:$0xff] }
 0x1d5   :  { %v1748_v35 = vmul.f32 %v5451_v32, %v1068_v43  ;;  %4438 = vmatpush1.bf16.msra.mxu1 %v4437_v19  ;;  %v1780_v40 = vmul.f32 %v5451_v32, %v1100_v31  ;;  %v1037_v18 = vcvt.s32.f32 %v525_v62  ;;  %v555_v53 = vunpack.c.2.s8 %v171_v9 }
 0x1d6   :  { %v587_v52 = vunpack.c.3.s8 %v171_v9  ;;  %4410 = vmatpush1.bf16.msra.mxu0 %v4409_v14  ;;  %v4439_v27 = vpack.c.bf16 %v1718_v50, %v1686_v60  ;;  %v1685_v25 = vmul.f32 %v5491_v48, %v1005_v37  ;;  %v558_v59 = vunpack.c.2.s8 %v174_v28 }
 0x1d7   :  { %v590_v33 = vunpack.c.3.s8 %v174_v28  ;;  %v4411_v61 = vpack.c.bf16 %v1780_v40, %v1748_v35  ;;  %v1717_v46 = vmul.f32 %v5491_v48, %v1037_v18  ;;  %v1067_v54 = vcvt.s32.f32 %v555_v53  ;;  %v205_v35 = vld [vmem:[#allocation4 + $0x3d0] sm:$0xff] }
 0x1d8   :  { %v1099_v36 = vcvt.s32.f32 %v587_v52  ;;  %4440 = vmatprep.subr.bf16.mxu1 %v4439_v27  ;;  %v1070_v49 = vcvt.s32.f32 %v558_v59  ;;  %v620_v39 = vunpack.c.0.s8 %v204_v10  ;;  %v652_v2 = vunpack.c.1.s8 %v204_v10 }
 0x1d9   :  { %v1102_v57 = vcvt.s32.f32 %v590_v33  ;;  %4412 = vmatprep.subr.bf16.mxu0 %v4411_v61  ;;  %v4441_v9 = vpack.c.bf16 %v1717_v46, %v1685_v25  ;;  %v1747_v58 = vmul.f32 %v5462_v38, %v1067_v54  ;;  %v557_v28 = vunpack.c.2.s8 %v5540_v15 }
 0x1da   :  { %v1779_v23 = vmul.f32 %v5462_v38, %v1099_v36  ;;  %v1750_v21 = vmul.f32 %v5471_v42, %v1070_v49  ;;  %v1132_v41 = vcvt.s32.f32 %v620_v39  ;;  %v1164_v20 = vcvt.s32.f32 %v652_v2 }
 0x1db   :  { %v1782_v17 = vmul.f32 %v5471_v42, %v1102_v57  ;;  %4442 = vmatpush1.bf16.msra.mxu1 %v4441_v9  ;;  %v589_v0 = vunpack.c.3.s8 %v5540_v15  ;;  %v1069_v55 = vcvt.s32.f32 %v557_v28  ;;  %v619_v8 = vunpack.c.0.s8 %v5553_v51 }
 0x1dc   :  { %v4413_v26 = vpack.c.bf16 %v1779_v23, %v1747_v58  ;;  %v1812_v44 = vmul.f32 %v5451_v32, %v1132_v41  ;;  %v1844_v19 = vmul.f32 %v5451_v32, %v1164_v20  ;;  %v651_v60 = vunpack.c.1.s8 %v5553_v51 }
 0x1dd   :  { %v4443_v43 = vpack.c.bf16 %v1782_v17, %v1750_v21  ;;  %v1101_v31 = vcvt.s32.f32 %v589_v0  ;;  %v1749_v62 = vmul.f32 %v5491_v48, %v1069_v55  ;;  %v1131_v14 = vcvt.s32.f32 %v619_v8 }
 0x1de   :  { %4414 = vmatpush1.bf16.msra.mxu0 %v4413_v26  ;;  %v622_v50 = vunpack.c.0.s8 %v206_v16  ;;  %v5566_v37 = vpop.f32.mrb[4].mxu0  ;;  %v4415_v15 = vpack.c.bf16 %v1844_v19, %v1812_v44  ;;  %v1163_v40 = vcvt.s32.f32 %v651_v60  ;;  %v654_v18 = vunpack.c.1.s8 %v206_v16  ;;  %v112_v44 = vld [vmem:[#allocation4 + $0xe8] sm:$0xff] }
 0x1df   :  { %4444 = vmatprep.subr.bf16.mxu1 %v4443_v43  ;;  %v684_v53 = vunpack.c.2.s8 %v204_v10  ;;  %v5568_v52 = vpop.f32.mrb[5].mxu0  ;;  %v1781_v27 = vmul.f32 %v5491_v48, %v1101_v31  ;;  %v1811_v25 = vmul.f32 %v5462_v38, %v1131_v14  ;;  %v716_v33 = vunpack.c.3.s8 %v204_v10 }
 0x1e0   :  { %v1134_v59 = vcvt.s32.f32 %v622_v50  ;;  %4416 = vmatprep.subr.bf16.mxu0 %v4415_v15  ;;  %v1843_v61 = vmul.f32 %v5462_v38, %v1163_v40  ;;  %v1166_v46 = vcvt.s32.f32 %v654_v18  ;;  %v621_v36 = vunpack.c.0.s8 %v205_v35  ;;  %v5573_v49 = vpop.f32.mrb[4].mxu1 }
 0x1e1   :  { %v1196_v54 = vcvt.s32.f32 %v684_v53  ;;  %v4445_v57 = vpack.c.bf16 %v1781_v27, %v1749_v62  ;;  %v1228_v2 = vcvt.s32.f32 %v716_v33  ;;  %v653_v9 = vunpack.c.1.s8 %v205_v35  ;;  %v5576_v58 = vpop.f32.mrb[5].mxu1  ;;  %v5587_v27 = vld [vmem:[#allocation4 + $0xe0] sm:$0xff] }
 0x1e2   :  { %v1814_v39 = vmul.f32 %v5471_v42, %v1134_v59  ;;  %v4417_v23 = vpack.c.bf16 %v1843_v61, %v1811_v25  ;;  %v1846_v28 = vmul.f32 %v5471_v42, %v1166_v46  ;;  %v1133_v21 = vcvt.s32.f32 %v621_v36  ;;  %v114_v36 = vld [vmem:[#allocation4 + $0xf8] sm:$0xff] }
 0x1e3   :  { %v1876_v10 = vmul.f32 %v5451_v32, %v1196_v54  ;;  %4446 = vmatpush1.bf16.msra.mxu1 %v4445_v57  ;;  %v1908_v17 = vmul.f32 %v5451_v32, %v1228_v2  ;;  %v1165_v41 = vcvt.s32.f32 %v653_v9  ;;  %v683_v20 = vunpack.c.2.s8 %v5553_v51 }
 0x1e4   :  { %v715_v26 = vunpack.c.3.s8 %v5553_v51  ;;  %4418 = vmatpush1.bf16.msra.mxu0 %v4417_v23  ;;  %v4447_v0 = vpack.c.bf16 %v1846_v28, %v1814_v39  ;;  %v1813_v55 = vmul.f32 %v5491_v48, %v1133_v21  ;;  %v686_v8 = vunpack.c.2.s8 %v206_v16 }
 0x1e5   :  { %v718_v43 = vunpack.c.3.s8 %v206_v16  ;;  %v4419_v19 = vpack.c.bf16 %v1908_v17, %v1876_v10  ;;  %v1845_v60 = vmul.f32 %v5491_v48, %v1165_v41  ;;  %v1195_v31 = vcvt.s32.f32 %v683_v20  ;;  %v5604_v20 = vld [vmem:[#allocation4 + $0xf0] sm:$0xff] }
 0x1e6   :  { %v1227_v62 = vcvt.s32.f32 %v715_v26  ;;  %4448 = vmatprep.subr.bf16.mxu1 %v4447_v0  ;;  %v1198_v14 = vcvt.s32.f32 %v686_v8  ;;  %v685_v50 = vunpack.c.2.s8 %v205_v35  ;;  %v717_v15 = vunpack.c.3.s8 %v205_v35  ;;  %v5611_v8 = vld [vmem:[#allocation2] sm:$0xff] }
 0x1e7   :  { %v1230_v32 = vcvt.s32.f32 %v718_v43  ;;  %4420 = vmatprep.subr.bf16.mxu0 %v4419_v19  ;;  %v4449_v40 = vpack.c.bf16 %v1845_v60, %v1813_v55  ;;  %v1875_v51 = vmul.f32 %v5462_v38, %v1195_v31  ;;  %v240_v53 = vunpack.c.0.s8 %v112_v44 }
 0x1e8   :  { %v1907_v18 = vmul.f32 %v5462_v38, %v1227_v62  ;;  %v1878_v16 = vmul.f32 %v5471_v42, %v1198_v14  ;;  %v1197_v59 = vcvt.s32.f32 %v685_v50  ;;  %v1229_v33 = vcvt.s32.f32 %v717_v15 }
 0x1e9   :  { %v1910_v25 = vmul.f32 %v5471_v42, %v1230_v32  ;;  %4450 = vmatpush1.bf16.msra.mxu1 %v4449_v40  ;;  %v272_v46 = vunpack.c.1.s8 %v112_v44  ;;  %v752_v54 = vcvt.s32.f32 %v240_v53  ;;  %v5593_v35 = vrot.slane %v5441_v24, %v4763_v7 }
 0x1ea   :  { %v4421_v61 = vpack.c.bf16 %v1907_v18, %v1875_v51  ;;  %v1877_v38 = vmul.f32 %v5491_v48, %v1197_v59  ;;  %v1909_v39 = vmul.f32 %v5491_v48, %v1229_v33  ;;  %v239_v2 = vunpack.c.0.s8 %v5587_v27  ;;  %v144_v59 = vld [vmem:[#allocation4 + $0x1e8] sm:$0xff] }
 0x1eb   :  { %v4451_v57 = vpack.c.bf16 %v1910_v25, %v1878_v16  ;;  %v784_v42 = vcvt.s32.f32 %v272_v46  ;;  %v1432_v9 = vmul.f32 %v5593_v35, %v752_v54  ;;  %v271_v23 = vunpack.c.1.s8 %v5587_v27 }
 0x1ec   :  { %4422 = vmatpush1.bf16.msra.mxu0 %v4421_v61  ;;  %v5602_v28 = vrot.slane %v5441_v24, %v4767_v11  ;;  %v4453_v10 = vpack.c.bf16 %v1909_v39, %v1877_v38  ;;  %v751_v21 = vcvt.s32.f32 %v239_v2  ;;  %v242_v17 = vunpack.c.0.s8 %v114_v36 }
 0x1ed   :  { %4452 = vmatprep.subr.bf16.mxu1 %v4451_v57  ;;  %v274_v41 = vunpack.c.1.s8 %v114_v36  ;;  %v1464_v48 = vmul.f32 %v5593_v35, %v784_v42  ;;  %v783_v26 = vcvt.s32.f32 %v271_v23  ;;  %v5609_v0 = vrot.slane %v5441_v24, %v4769_v12 }
 0x1ee   :  { %v304_v55 = vunpack.c.2.s8 %v112_v44  ;;  %4454 = vmatpush1.bf16.msra.mxu1 %v4453_v10  ;;  %v1431_v43 = vmul.f32 %v5602_v28, %v751_v21  ;;  %v754_v19 = vcvt.s32.f32 %v242_v17  ;;  %v336_v31 = vunpack.c.3.s8 %v112_v44 }
 0x1ef   :  { %3001 = vmatmul.mubr.f32.vlgmr.msra.gmra.mrb[12].mxu0 %v5611_v8  ;;  %v786_v60 = vcvt.s32.f32 %v274_v41  ;;  %v4455_v62 = vpack.c.bf16 %v1464_v48, %v1432_v9  ;;  %v1463_v14 = vmul.f32 %v5602_v28, %v783_v26  ;;  %v241_v50 = vunpack.c.0.s8 %v5604_v20  ;;  %v143_v48 = vld [vmem:[#allocation4 + $0x1e0] sm:$0xff] }
 0x1f0   :  { %v816_v32 = vcvt.s32.f32 %v304_v55  ;;  %3142 = vmatprep.mubr.f32.mxu0 %v4657_v1  ;;  %v1434_v15 = vmul.f32 %v5609_v0, %v754_v19  ;;  %v848_v51 = vcvt.s32.f32 %v336_v31  ;;  %v273_v18 = vunpack.c.1.s8 %v5604_v20  ;;  %v146_v31 = vld [vmem:[#allocation4 + $0x1f8] sm:$0xff] }
 0x1f1   :  { %v1466_v40 = vmul.f32 %v5609_v0, %v786_v60  ;;  %4456 = vmatprep.subr.bf16.mxu0 %v4455_v62  ;;  %v4457_v53 = vpack.c.bf16 %v1463_v14, %v1431_v43  ;;  %3072 = vmatmul.mubr.f32.vlgmr.msra.gmra.mrb[12].mxu1 %v5611_v8  ;;  %v753_v16 = vcvt.s32.f32 %v241_v50  ;;  %v5625_v25 = vrot.slane %v5441_v24, %v4771_v13 }
 0x1f2   :  { %v1496_v44 = vmul.f32 %v5593_v35, %v816_v32  ;;  %v1528_v61 = vmul.f32 %v5593_v35, %v848_v51  ;;  %v785_v46 = vcvt.s32.f32 %v273_v18  ;;  %v303_v54 = vunpack.c.2.s8 %v5587_v27  ;;  %3213 = vmatprep.mubr.f32.mxu1 %v4657_v1 }
 0x1f3   :  { %v4487_v33 = vpack.c.bf16 %v1466_v40, %v1434_v15  ;;  %4458 = vmatpush1.bf16.msra.mxu0 %v4457_v53  ;;  %v1433_v57 = vmul.f32 %v5625_v25, %v753_v16  ;;  %v335_v38 = vunpack.c.3.s8 %v5587_v27  ;;  %v306_v39 = vunpack.c.2.s8 %v114_v36 }
 0x1f4   :  { %v338_v2 = vunpack.c.3.s8 %v114_v36  ;;  %v4459_v42 = vpack.c.bf16 %v1528_v61, %v1496_v44  ;;  %v1465_v24 = vmul.f32 %v5625_v25, %v785_v46  ;;  %v815_v9 = vcvt.s32.f32 %v303_v54  ;;  %v5642_v61 = vld [vmem:[#allocation4 + $0x1f0] sm:$0xff] }
 0x1f5   :  { %4488 = vmatprep.subr.bf16.mxu1 %v4487_v33  ;;  %v368_v23 = vunpack.c.0.s8 %v144_v59  ;;  %v847_v10 = vcvt.s32.f32 %v335_v38  ;;  %v818_v21 = vcvt.s32.f32 %v306_v39  ;;  %v400_v41 = vunpack.c.1.s8 %v144_v59 }
 0x1f6   :  { %v850_v17 = vcvt.s32.f32 %v338_v2  ;;  %4460 = vmatprep.subr.bf16.mxu0 %v4459_v42  ;;  %v4489_v1 = vpack.c.bf16 %v1465_v24, %v1433_v57  ;;  %v1495_v26 = vmul.f32 %v5602_v28, %v815_v9  ;;  %v305_v27 = vunpack.c.2.s8 %v5604_v20 }
 0x1f7   :  { %v880_v55 = vcvt.s32.f32 %v368_v23  ;;  %v1527_v36 = vmul.f32 %v5602_v28, %v847_v10  ;;  %v1498_v43 = vmul.f32 %v5609_v0, %v818_v21  ;;  %v912_v60 = vcvt.s32.f32 %v400_v41 }
 0x1f8   :  { %v1530_v19 = vmul.f32 %v5609_v0, %v850_v17  ;;  %4490 = vmatpush1.bf16.msra.mxu1 %v4489_v1  ;;  %v337_v14 = vunpack.c.3.s8 %v5604_v20  ;;  %v817_v32 = vcvt.s32.f32 %v305_v27  ;;  %v367_v50 = vunpack.c.0.s8 %v143_v48 }
 0x1f9   :  { %v1560_v62 = vmul.f32 %v5593_v35, %v880_v55  ;;  %v4461_v15 = vpack.c.bf16 %v1527_v36, %v1495_v26  ;;  %v1592_v51 = vmul.f32 %v5593_v35, %v912_v60  ;;  %v399_v18 = vunpack.c.1.s8 %v143_v48 }
 0x1fa   :  { %v4491_v40 = vpack.c.bf16 %v1530_v19, %v1498_v43  ;;  %v849_v53 = vcvt.s32.f32 %v337_v14  ;;  %v1497_v44 = vmul.f32 %v5625_v25, %v817_v32  ;;  %v879_v16 = vcvt.s32.f32 %v367_v50 }
 0x1fb   :  { %v370_v33 = vunpack.c.0.s8 %v146_v31  ;;  %4462 = vmatpush1.bf16.msra.mxu0 %v4461_v15  ;;  %v4463_v46 = vpack.c.bf16 %v1592_v51, %v1560_v62  ;;  %v911_v54 = vcvt.s32.f32 %v399_v18  ;;  %v402_v57 = vunpack.c.1.s8 %v146_v31  ;;  %v5653_v62 = vld [vmem:[#allocation4 + $0x2e8] sm:$0xff] }
 0x1fc   :  { %4492 = vmatprep.subr.bf16.mxu1 %v4491_v40  ;;  %v432_v20 = vunpack.c.2.s8 %v144_v59  ;;  %v1529_v38 = vmul.f32 %v5625_v25, %v849_v53  ;;  %v1559_v39 = vmul.f32 %v5602_v28, %v879_v16  ;;  %v464_v42 = vunpack.c.3.s8 %v144_v59 }
 0x1fd   :  { %v882_v2 = vcvt.s32.f32 %v370_v33  ;;  %4464 = vmatprep.subr.bf16.mxu0 %v4463_v46  ;;  %v1591_v24 = vmul.f32 %v5602_v28, %v911_v54  ;;  %v914_v9 = vcvt.s32.f32 %v402_v57  ;;  %v369_v10 = vunpack.c.0.s8 %v5642_v61  ;;  %v5659_v46 = vld [vmem:[#allocation4 + $0x2e0] sm:$0xff] }
 0x1fe   :  { %v944_v23 = vcvt.s32.f32 %v432_v20  ;;  %v4493_v21 = vpack.c.bf16 %v1529_v38, %v1497_v44  ;;  %v976_v41 = vcvt.s32.f32 %v464_v42  ;;  %v401_v1 = vunpack.c.1.s8 %v5642_v61 }
 0x1ff   :  { %v1562_v17 = vmul.f32 %v5609_v0, %v882_v2  ;;  %v4465_v26 = vpack.c.bf16 %v1591_v24, %v1559_v39  ;;  %v1594_v55 = vmul.f32 %v5609_v0, %v914_v9  ;;  %v881_v36 = vcvt.s32.f32 %v369_v10  ;;  %v5666_v24 = vld [vmem:[#allocation7] sm:$0xff] }
 0x200   :  { %v1624_v27 = vmul.f32 %v5593_v35, %v944_v23  ;;  %4494 = vmatpush1.bf16.msra.mxu1 %v4493_v21  ;;  %v1656_v59 = vmul.f32 %v5593_v35, %v976_v41  ;;  %v913_v43 = vcvt.s32.f32 %v401_v1  ;;  %v431_v19 = vunpack.c.2.s8 %v143_v48 }
 0x201   :  { %v463_v60 = vunpack.c.3.s8 %v143_v48  ;;  %4466 = vmatpush1.bf16.msra.mxu0 %v4465_v26  ;;  %v4495_v14 = vpack.c.bf16 %v1594_v55, %v1562_v17  ;;  %v1561_v32 = vmul.f32 %v5625_v25, %v881_v36  ;;  %v434_v50 = vunpack.c.2.s8 %v146_v31  ;;  %v5670_v17 = vld [vmem:[#allocation9] sm:$0xff] }
 0x202   :  { %v466_v15 = vunpack.c.3.s8 %v146_v31  ;;  %v4467_v40 = vpack.c.bf16 %v1656_v59, %v1624_v27  ;;  %v1593_v51 = vmul.f32 %v5625_v25, %v913_v43  ;;  %v943_v18 = vcvt.s32.f32 %v431_v19  ;;  %v5675_v27 = vld [vmem:[#allocation4 + $0x2f8] sm:$0xff] }
 0x203   :  { %v975_v53 = vcvt.s32.f32 %v463_v60  ;;  %4496 = vmatprep.subr.bf16.mxu1 %v4495_v14  ;;  %v946_v44 = vcvt.s32.f32 %v434_v50  ;;  %v496_v33 = vunpack.c.0.s8 %v5653_v62  ;;  %v528_v48 = vunpack.c.1.s8 %v5653_v62 }
 0x204   :  { %v978_v16 = vcvt.s32.f32 %v466_v15  ;;  %4468 = vmatprep.subr.bf16.mxu0 %v4467_v40  ;;  %v4497_v54 = vpack.c.bf16 %v1593_v51, %v1561_v32  ;;  %v1623_v57 = vmul.f32 %v5602_v28, %v943_v18  ;;  %v433_v20 = vunpack.c.2.s8 %v5642_v61 }
 0x205   :  { %v1655_v31 = vmul.f32 %v5602_v28, %v975_v53  ;;  %v1626_v38 = vmul.f32 %v5609_v0, %v946_v44  ;;  %v1008_v2 = vcvt.s32.f32 %v496_v33  ;;  %v1040_v42 = vcvt.s32.f32 %v528_v48 }
 0x206   :  { %v1658_v39 = vmul.f32 %v5609_v0, %v978_v16  ;;  %4498 = vmatpush1.bf16.msra.mxu1 %v4497_v54  ;;  %v465_v23 = vunpack.c.3.s8 %v5642_v61  ;;  %v945_v10 = vcvt.s32.f32 %v433_v20  ;;  %v495_v21 = vunpack.c.0.s8 %v5659_v46 }
 0x207   :  { %v4469_v9 = vpack.c.bf16 %v1655_v31, %v1623_v57  ;;  %v1688_v1 = vmul.f32 %v5593_v35, %v1008_v2  ;;  %v1720_v26 = vmul.f32 %v5593_v35, %v1040_v42  ;;  %v527_v55 = vunpack.c.1.s8 %v5659_v46 }
 0x208   :  { %v4499_v41 = vpack.c.bf16 %v1658_v39, %v1626_v38  ;;  %v977_v36 = vcvt.s32.f32 %v465_v23  ;;  %v1625_v59 = vmul.f32 %v5625_v25, %v945_v10  ;;  %v1007_v43 = vcvt.s32.f32 %v495_v21  ;;  %v5698_v39 = vld [vmem:[#allocation4 + $0x2f0] sm:$0xff] }
 0x209   :  { %4470 = vmatpush1.bf16.msra.mxu0 %v4469_v9  ;;  %v1927_v61 = vrot.slane %v5666_v24, %v4757_v4  ;;  %v4471_v19 = vpack.c.bf16 %v1720_v26, %v1688_v1  ;;  %v1039_v60 = vcvt.s32.f32 %v527_v55  ;;  %v3271_v14 = vrot.slane %v5670_v17, %v4757_v4 }
 0x20a   :  { %4500 = vmatprep.subr.bf16.mxu1 %v4499_v41  ;;  %v3624_v32 = vrot.slane %v5670_v17, %v4755_v3  ;;  %v1657_v50 = vmul.f32 %v5625_v25, %v977_v36  ;;  %v1687_v15 = vmul.f32 %v5602_v28, %v1007_v43  ;;  %v498_v51 = vunpack.c.0.s8 %v5675_v27 }
 0x20b   :  { %v2151_v40 = vadd.f32 %v5380_v34, %v1927_v61  ;;  %4472 = vmatprep.subr.bf16.mxu0 %v4471_v19  ;;  %v1719_v18 = vmul.f32 %v5602_v28, %v1039_v60  ;;  %v3431_v53 = vrot.slane %v3271_v14, %v4757_v4  ;;  %v530_v16 = vunpack.c.1.s8 %v5675_v27 }
 0x20c   :  { %v3784_v44 = vrot.slane %v3624_v32, %v4755_v3  ;;  %v4501_v33 = vpack.c.bf16 %v1657_v50, %v1625_v59  ;;  %v1010_v54 = vcvt.s32.f32 %v498_v51  ;;  %v1931_v57 = vrot.slane %v5666_v24, %v4755_v3 }
 0x20d   :  { %v3220_v48 = vmax.f32 %v2151_v40, 0.0  ;;  %v4473_v31 = vpack.c.bf16 %v1719_v18, %v1687_v15  ;;  %v1042_v20 = vcvt.s32.f32 %v530_v16  ;;  %v3275_v34 = vrot.slane %v5670_v17, %v4761_v6 }
 0x20e   :  { %v3628_v38 = vrot.slane %v5670_v17, %v4759_v5  ;;  %4502 = vmatpush1.bf16.msra.mxu1 %v4501_v33  ;;  %v1690_v9 = vmul.f32 %v5609_v0, %v1010_v54  ;;  %v2153_v23 = vadd.f32 %v5390_v47, %v1931_v57  ;;  %v560_v1 = vunpack.c.2.s8 %v5653_v62 }
 0x20f   :  { %v3556_v2 = vmul.f32 %v3431_v53, %v3220_v48  ;;  %v3909_v42 = vmul.f32 %v3784_v44, %v3220_v48  ;;  %4474 = vmatpush1.bf16.msra.mxu0 %v4473_v31  ;;  %v1722_v10 = vmul.f32 %v5609_v0, %v1042_v20  ;;  %v3435_v21 = vrot.slane %v3275_v34, %v4757_v4 }
 0x210   :  { %v3788_v41 = vrot.slane %v3628_v38, %v4755_v3  ;;  %v3221_v26 = vmax.f32 %v2153_v23, 0.0  ;;  %v592_v55 = vunpack.c.3.s8 %v5653_v62  ;;  %v497_v36 = vunpack.c.0.s8 %v5698_v39 }
 0x211   :  { %v529_v59 = vunpack.c.1.s8 %v5698_v39  ;;  %v4503_v43 = vpack.c.bf16 %v1722_v10, %v1690_v9  ;;  %v1072_v61 = vcvt.s32.f32 %v560_v1  ;;  %v559_v47 = vunpack.c.2.s8 %v5659_v46  ;;  %v5728_v10 = vld [vmem:[#allocation4 + $0x3e8] sm:$0xff] }
 0x212   :  { %v591_v19 = vunpack.c.3.s8 %v5659_v46  ;;  %v3557_v60 = vmul.f32 %v3435_v21, %v3221_v26  ;;  %v3910_v14 = vmul.f32 %v3788_v41, %v3221_v26  ;;  %v1104_v32 = vcvt.s32.f32 %v592_v55 }
 0x213   :  { %v1009_v50 = vcvt.s32.f32 %v497_v36  ;;  %4504 = vmatprep.subr.bf16.mxu1 %v4503_v43  ;;  %v1752_v15 = vmul.f32 %v5593_v35, %v1072_v61  ;;  %v1041_v40 = vcvt.s32.f32 %v529_v59  ;;  %v1071_v51 = vcvt.s32.f32 %v559_v47 }
 0x214   :  { %v1103_v62 = vcvt.s32.f32 %v591_v19  ;;  %v3588_v18 = vadd.f32 %v3557_v60, %v3556_v2  ;;  %v3941_v53 = vadd.f32 %v3910_v14, %v3909_v42  ;;  %v1784_v44 = vmul.f32 %v5593_v35, %v1104_v32 }
 0x215   :  { %v1689_v16 = vmul.f32 %v5625_v25, %v1009_v50  ;;  %v1721_v33 = vmul.f32 %v5625_v25, %v1041_v40  ;;  %v1751_v46 = vmul.f32 %v5602_v28, %v1071_v51  ;;  %v1935_v54 = vrot.slane %v5666_v24, %v4761_v6 }
 0x216   :  { %v1783_v48 = vmul.f32 %v5602_v28, %v1103_v62  ;;  %v4475_v57 = vpack.c.bf16 %v1784_v44, %v1752_v15  ;;  %v3279_v31 = vrot.slane %v5670_v17, %v4767_v11  ;;  %v3632_v20 = vrot.slane %v5670_v17, %v4763_v7 }
 0x217   :  { %v562_v34 = vunpack.c.2.s8 %v5675_v27  ;;  %v5724_v38 = vpop.f32.mrb[6].mxu0  ;;  %v4505_v2 = vpack.c.bf16 %v1721_v33, %v1689_v16  ;;  %v2222_v9 = vadd.f32 %v5404_v56, %v1935_v54  ;;  %v594_v23 = vunpack.c.3.s8 %v5675_v27  ;;  %v207_v16 = vld [vmem:[#allocation4 + $0x3e0] sm:$0xff]  ;;  %v210_v54 = vld [vmem:[#allocation4 + $0x3f8] sm:$0xff] }
 0x218   :  { %v4477_v42 = vpack.c.bf16 %v1783_v48, %v1751_v46  ;;  %v5730_v21 = vpop.f32.mrb[7].mxu0  ;;  %4476 = vmatprep.subr.bf16.mxu0 %v4475_v57  ;;  %v3439_v41 = vrot.slane %v3279_v31, %v4757_v4  ;;  %v3792_v1 = vrot.slane %v3632_v20, %v4755_v3  ;;  %v1939_v55 = vrot.slane %v5666_v24, %v4759_v5 }
 0x219   :  { %v1074_v26 = vcvt.s32.f32 %v562_v34  ;;  %4506 = vmatpush1.bf16.msra.mxu1 %v4505_v2  ;;  %v3222_v36 = vmax.f32 %v2222_v9, 0.0  ;;  %v1106_v59 = vcvt.s32.f32 %v594_v23  ;;  %v3283_v56 = vrot.slane %v5670_v17, %v4771_v13  ;;  %v5740_v43 = vpop.f32.mrb[6].mxu1 }
 0x21a   :  { %4478 = vmatpush1.bf16.msra.mxu0 %v4477_v42  ;;  %v3636_v27 = vrot.slane %v5670_v17, %v4769_v12  ;;  %v2224_v47 = vadd.f32 %v5417_v29, %v1939_v55  ;;  %v624_v19 = vunpack.c.0.s8 %v5728_v10  ;;  %v656_v60 = vunpack.c.1.s8 %v5728_v10  ;;  %v5746_v14 = vpop.f32.mrb[7].mxu1 }
 0x21b   :  { %v1754_v61 = vmul.f32 %v5609_v0, %v1074_v26  ;;  %v3558_v32 = vmul.f32 %v3439_v41, %v3222_v36  ;;  %v3911_v50 = vmul.f32 %v3792_v1, %v3222_v36  ;;  %v1786_v15 = vmul.f32 %v5609_v0, %v1106_v59  ;;  %v209_v26 = vld [vmem:[#allocation4 + $0x3f0] sm:$0xff] }
 0x21c   :  { %v3443_v40 = vrot.slane %v3283_v56, %v4757_v4  ;;  %v3223_v51 = vmax.f32 %v2224_v47, 0.0  ;;  %v3796_v17 = vrot.slane %v3636_v27, %v4755_v3  ;;  %v1136_v62 = vcvt.s32.f32 %v624_v19 }
 0x21d   :  { %v1168_v44 = vcvt.s32.f32 %v656_v60  ;;  %v3589_v33 = vadd.f32 %v3588_v18, %v3558_v32  ;;  %v3942_v29 = vadd.f32 %v3941_v53, %v3911_v50  ;;  %v4507_v46 = vpack.c.bf16 %v1786_v15, %v1754_v61 }
 0x21e   :  { %v561_v48 = vunpack.c.2.s8 %v5698_v39  ;;  %v3559_v57 = vmul.f32 %v3443_v40, %v3223_v51  ;;  %v3912_v31 = vmul.f32 %v3796_v17, %v3223_v51  ;;  %v1816_v20 = vmul.f32 %v5593_v35, %v1136_v62 }
 0x21f   :  { %v1848_v34 = vmul.f32 %v5593_v35, %v1168_v44  ;;  %4508 = vmatprep.subr.bf16.mxu1 %v4507_v46  ;;  %v593_v2 = vunpack.c.3.s8 %v5698_v39  ;;  %v623_v9 = vunpack.c.0.s8 %v207_v16  ;;  %v655_v23 = vunpack.c.1.s8 %v207_v16 }
 0x220   :  { %v1073_v42 = vcvt.s32.f32 %v561_v48  ;;  %v5755_v41 = vadd.f32 %v3589_v33, %v3559_v57  ;;  %v5757_v18 = vadd.f32 %v3942_v29, %v3912_v31  ;;  %v626_v1 = vunpack.c.0.s8 %v210_v54 }
 0x221   :  { %v4479_v53 = vpack.c.bf16 %v1848_v34, %v1816_v20  ;;  %v1105_v55 = vcvt.s32.f32 %v593_v2  ;;  %v1135_v59 = vcvt.s32.f32 %v623_v9  ;;  %v1167_v56 = vcvt.s32.f32 %v655_v23 }
 0x222   :  { %v1753_v36 = vmul.f32 %v5625_v25, %v1073_v42  ;;  %v658_v27 = vunpack.c.1.s8 %v210_v54  ;;  %v1138_v61 = vcvt.s32.f32 %v626_v1  ;;  %v688_v39 = vunpack.c.2.s8 %v5728_v10 }
 0x223   :  { %4480 = vmatprep.subr.bf16.mxu0 %v4479_v53  ;;  %v720_v47 = vunpack.c.3.s8 %v5728_v10  ;;  %v1785_v19 = vmul.f32 %v5625_v25, %v1105_v55  ;;  %v1815_v60 = vmul.f32 %v5602_v28, %v1135_v59  ;;  %v1847_v32 = vmul.f32 %v5602_v28, %v1167_v56  ;;  %v3253_v56 = vld [vmem:[#allocation9 + $0x8] sm:$0xff] }
 0x224   :  { %v625_v50 = vunpack.c.0.s8 %v209_v26  ;;  %v1170_v15 = vcvt.s32.f32 %v658_v27  ;;  %v1818_v40 = vmul.f32 %v5609_v0, %v1138_v61  ;;  %v1200_v51 = vcvt.s32.f32 %v688_v39 }
 0x225   :  { %v1232_v17 = vcvt.s32.f32 %v720_v47  ;;  %v4509_v62 = vpack.c.bf16 %v1785_v19, %v1753_v36  ;;  %v4481_v44 = vpack.c.bf16 %v1847_v32, %v1815_v60  ;;  %v657_v33 = vunpack.c.1.s8 %v209_v26 }
 0x226   :  { %v1137_v29 = vcvt.s32.f32 %v625_v50  ;;  %v1850_v46 = vmul.f32 %v5609_v0, %v1170_v15  ;;  %v1880_v10 = vmul.f32 %v5593_v35, %v1200_v51  ;;  %v687_v57 = vunpack.c.2.s8 %v207_v16 }
 0x227   :  { %v1912_v48 = vmul.f32 %v5593_v35, %v1232_v17  ;;  %4510 = vmatpush1.bf16.msra.mxu1 %v4509_v62  ;;  %4482 = vmatpush1.bf16.msra.mxu0 %v4481_v44  ;;  %v1169_v31 = vcvt.s32.f32 %v657_v33  ;;  %v719_v34 = vunpack.c.3.s8 %v207_v16  ;;  %v690_v2 = vunpack.c.2.s8 %v210_v54 }
 0x228   :  { %v1817_v20 = vmul.f32 %v5625_v25, %v1137_v29  ;;  %v4511_v42 = vpack.c.bf16 %v1850_v46, %v1818_v40  ;;  %v1199_v23 = vcvt.s32.f32 %v687_v57  ;;  %v722_v53 = vunpack.c.3.s8 %v210_v54 }
 0x229   :  { %v4483_v9 = vpack.c.bf16 %v1912_v48, %v1880_v10  ;;  %v1849_v1 = vmul.f32 %v5625_v25, %v1169_v31  ;;  %v1231_v55 = vcvt.s32.f32 %v719_v34  ;;  %v1202_v36 = vcvt.s32.f32 %v690_v2 }
 0x22a   :  { %v689_v59 = vunpack.c.2.s8 %v209_v26  ;;  %4512 = vmatprep.subr.bf16.mxu1 %v4511_v42  ;;  %v1879_v35 = vmul.f32 %v5602_v28, %v1199_v23  ;;  %v1234_v27 = vcvt.s32.f32 %v722_v53  ;;  %v721_v61 = vunpack.c.3.s8 %v209_v26  ;;  %v5798_v23 = vld [vmem:[#allocation7 + $0x8] sm:$0xff] }
 0x22b   :  { %4484 = vmatprep.subr.bf16.mxu0 %v4483_v9  ;;  %v1943_v16 = vrot.slane %v5666_v24, %v4767_v11  ;;  %v4513_v39 = vpack.c.bf16 %v1849_v1, %v1817_v20  ;;  %v1911_v47 = vmul.f32 %v5602_v28, %v1231_v55  ;;  %v1882_v54 = vmul.f32 %v5609_v0, %v1202_v36 }
 0x22c   :  { %v1201_v19 = vcvt.s32.f32 %v689_v59  ;;  %v1914_v60 = vmul.f32 %v5609_v0, %v1234_v27  ;;  %v1233_v32 = vcvt.s32.f32 %v721_v61  ;;  %v3287_v15 = vrot.slane %v3253_v56, %v4757_v4  ;;  %v3254_v61 = vld [vmem:[#allocation9 + $0x10] sm:$0xff] }
 0x22d   :  { %v2293_v50 = vadd.f32 %v5475_v45, %v1943_v16  ;;  %4514 = vmatpush1.bf16.msra.mxu1 %v4513_v39  ;;  %v4485_v40 = vpack.c.bf16 %v1911_v47, %v1879_v35  ;;  %v3640_v51 = vrot.slane %v3253_v56, %v4755_v3  ;;  %v1947_v17 = vrot.slane %v5666_v24, %v4763_v7 }
 0x22e   :  { %v1881_v26 = vmul.f32 %v5625_v25, %v1201_v19  ;;  %v4515_v28 = vpack.c.bf16 %v1914_v60, %v1882_v54  ;;  %v1913_v62 = vmul.f32 %v5625_v25, %v1233_v32  ;;  %v3447_v0 = vrot.slane %v3287_v15, %v4757_v4 }
 0x22f   :  { %v3224_v44 = vmax.f32 %v2293_v50, 0.0  ;;  %4486 = vmatpush1.bf16.msra.mxu0 %v4485_v40  ;;  %v3800_v45 = vrot.slane %v3640_v51, %v4755_v3  ;;  %v2295_v33 = vadd.f32 %v5482_v22, %v1947_v17  ;;  %v3291_v29 = vrot.slane %v3253_v56, %v4761_v6 }
 0x230   :  { %v3644_v46 = vrot.slane %v3253_v56, %v4759_v5  ;;  %4516 = vmatprep.subr.bf16.mxu1 %v4515_v28  ;;  %v4517_v10 = vpack.c.bf16 %v1913_v62, %v1881_v26  ;;  %v1951_v57 = vrot.slane %v5666_v24, %v4771_v13  ;;  %v3295_v25 = vrot.slane %v3253_v56, %v4767_v11 }
 0x231   :  { %v3560_v48 = vmul.f32 %v3447_v0, %v3224_v44  ;;  %v3913_v31 = vmul.f32 %v3800_v45, %v3224_v44  ;;  %v3225_v20 = vmax.f32 %v2295_v33, 0.0  ;;  %v3451_v34 = vrot.slane %v3291_v29, %v4757_v4 }
 0x232   :  { %v3804_v2 = vrot.slane %v3644_v46, %v4755_v3  ;;  %3143 = vmatmul.mubr.f32.vlgmr.msra.gmra.mrb[14].mxu0 %v5611_v8  ;;  %4518 = vmatpush1.bf16.msra.mxu1 %v4517_v10  ;;  %v2364_v42 = vadd.f32 %v5477_v63, %v1951_v57  ;;  %v3455_v9 = vrot.slane %v3295_v25, %v4757_v4  ;;  %vm3984_vm1 = vcmask 15360  }
 0x233   :  { %v3591_v22 = vadd.f32 %v5755_v41, %v3560_v48  ;;  %v3944_v53 = vadd.f32 %v5757_v18, %v3913_v31  ;;  %v3561_v1 = vmul.f32 %v3451_v34, %v3225_v20  ;;  %v3648_v36 = vrot.slane %v3253_v56, %v4763_v7 }
 0x234   :  { %v3914_v55 = vmul.f32 %v3804_v2, %v3225_v20  ;;  %v3226_v59 = vmax.f32 %v2364_v42, 0.0  ;;  %v1955_v35 = vrot.slane %v5666_v24, %v4769_v12  ;;  %v3299_v27 = vrot.slane %v3253_v56, %v4771_v13 }
 0x235   :  { %v3652_v41 = vrot.slane %v3253_v56, %v4769_v12  ;;  %3214 = vmatmul.mubr.f32.vlgmr.msra.gmra.mrb[14].mxu1 %v5611_v8  ;;  %v3592_v63 = vadd.f32 %v3591_v22, %v3561_v1  ;;  %v3808_v39 = vrot.slane %v3648_v36, %v4755_v3  ;;  %v1959_v18 = vrot.slane %v5798_v23, %v4757_v4 }
 0x236   :  { %v3945_v16 = vadd.f32 %v3944_v53, %v3914_v55  ;;  %v3562_v47 = vmul.f32 %v3455_v9, %v3226_v59  ;;  %v2366_v54 = vadd.f32 %v5498_v30, %v1955_v35  ;;  %v3459_v19 = vrot.slane %v3299_v27, %v4757_v4 }
 0x237   :  { %v3812_v24 = vrot.slane %v3652_v41, %v4755_v3  ;;  %v3915_v60 = vmul.f32 %v3808_v39, %v3226_v59  ;;  %v2435_v56 = vadd.f32 %v5566_v37, %v1959_v18  ;;  %v3303_v32 = vrot.slane %v3254_v61, %v4757_v4  ;;  %v3255_v59 = vld [vmem:[#allocation9 + $0x18] sm:$0xff] }
 0x238   :  { %v3656_v8 = vrot.slane %v3254_v61, %v4755_v3  ;;  %v3593_v50 = vadd.f32 %v3592_v63, %v3562_v47  ;;  %v3227_v15 = vmax.f32 %v2366_v54, 0.0  ;;  %v1963_v40 = vrot.slane %v5798_v23, %v4755_v3 }
 0x239   :  { %v3307_v26 = vrot.slane %v3254_v61, %v4761_v6  ;;  %v3946_v51 = vadd.f32 %v3945_v16, %v3915_v60  ;;  %v3228_v30 = vmax.f32 %v2435_v56, 0.0  ;;  %v3463_v17 = vrot.slane %v3303_v32, %v4757_v4 }
 0x23a   :  { %v3816_v28 = vrot.slane %v3656_v8, %v4755_v3  ;;  %v3563_v62 = vmul.f32 %v3459_v19, %v3227_v15  ;;  %v3916_v44 = vmul.f32 %v3812_v24, %v3227_v15  ;;  %v2437_v37 = vadd.f32 %v5568_v52, %v1963_v40 }
 0x23b   :  { %v3467_v0 = vrot.slane %v3307_v26, %v4757_v4  ;;  %v3564_v45 = vmul.f32 %v3463_v17, %v3228_v30  ;;  %v3660_v29 = vrot.slane %v3254_v61, %v4759_v5  ;;  %v1967_v46 = vrot.slane %v5798_v23, %v4761_v6 }
 0x23c   :  { %v3917_v33 = vmul.f32 %v3816_v28, %v3228_v30  ;;  %v3594_v10 = vadd.f32 %v3593_v50, %v3563_v62  ;;  %v3947_v48 = vadd.f32 %v3946_v51, %v3916_v44  ;;  %v3229_v57 = vmax.f32 %v2437_v37, 0.0 }
 0x23d   :  { %v3311_v25 = vrot.slane %v3254_v61, %v4767_v11  ;;  %v3820_v31 = vrot.slane %v3660_v29, %v4755_v3  ;;  %v2506_v20 = vadd.f32 %v5573_v49, %v1967_v46  ;;  %v3664_v52 = vrot.slane %v3254_v61, %v4763_v7 }
 0x23e   :  { %v1971_v34 = vrot.slane %v5798_v23, %v4759_v5  ;;  %v3595_v2 = vadd.f32 %v3594_v10, %v3564_v45  ;;  %v3948_v22 = vadd.f32 %v3947_v48, %v3917_v33  ;;  %v3565_v42 = vmul.f32 %v3467_v0, %v3229_v57 }
 0x23f   :  { %v3471_v9 = vrot.slane %v3311_v25, %v4757_v4  ;;  %v3918_v53 = vmul.f32 %v3820_v31, %v3229_v57  ;;  %v3230_v1 = vmax.f32 %v2506_v20, 0.0  ;;  %v3824_v55 = vrot.slane %v3664_v52, %v4755_v3  ;;  %v5860_v31 = vld [vmem:[#allocation7 + $0x10] sm:$0xff] }
 0x240   :  { %v2508_v36 = vadd.f32 %v5576_v58, %v1971_v34  ;;  %v3596_v35 = vadd.f32 %v3595_v2, %v3565_v42  ;;  %v3315_v49 = vrot.slane %v3254_v61, %v4771_v13  ;;  %v3668_v27 = vrot.slane %v3254_v61, %v4769_v12 }
 0x241   :  { %v1975_v41 = vrot.slane %v5798_v23, %v4767_v11  ;;  %v3949_v63 = vadd.f32 %v3948_v22, %v3918_v53  ;;  %v3566_v16 = vmul.f32 %v3471_v9, %v3230_v1  ;;  %v3919_v39 = vmul.f32 %v3824_v55, %v3230_v1 }
 0x242   :  { %v3231_v18 = vmax.f32 %v2508_v36, 0.0  ;;  %v3475_v47 = vrot.slane %v3315_v49, %v4757_v4  ;;  %v3828_v54 = vrot.slane %v3668_v27, %v4755_v3  ;;  %v3319_v58 = vrot.slane %v3255_v59, %v4757_v4 }
 0x243   :  { %v2577_v19 = vadd.f32 %v5724_v38, %v1975_v41  ;;  %v3597_v24 = vadd.f32 %v3596_v35, %v3566_v16  ;;  %v3950_v60 = vadd.f32 %v3949_v63, %v3919_v39  ;;  %v3672_v56 = vrot.slane %v3255_v59, %v4755_v3 }
 0x244   :  { %v1979_v61 = vrot.slane %v5798_v23, %v4763_v7  ;;  %v3567_v32 = vmul.f32 %v3475_v47, %v3231_v18  ;;  %v3920_v8 = vmul.f32 %v3828_v54, %v3231_v18  ;;  %v3479_v15 = vrot.slane %v3319_v58, %v4757_v4 }
 0x245   :  { %v3232_v50 = vmax.f32 %v2577_v19, 0.0  ;;  %v3832_v40 = vrot.slane %v3672_v56, %v4755_v3  ;;  %v3323_v38 = vrot.slane %v3255_v59, %v4761_v6  ;;  %v3676_v51 = vrot.slane %v3255_v59, %v4759_v5 }
 0x246   :  { %v2579_v26 = vadd.f32 %v5730_v21, %v1979_v61  ;;  %v3598_v30 = vadd.f32 %v3597_v24, %v3567_v32  ;;  %v3951_v17 = vadd.f32 %v3950_v60, %v3920_v8  ;;  %v1983_v62 = vrot.slane %v5798_v23, %v4771_v13 }
 0x247   :  { %v3568_v28 = vmul.f32 %v3479_v15, %v3232_v50  ;;  %v3921_v44 = vmul.f32 %v3832_v40, %v3232_v50  ;;  %v3483_v0 = vrot.slane %v3323_v38, %v4757_v4  ;;  %v3836_v45 = vrot.slane %v3676_v51, %v4755_v3 }
 0x248   :  { %v3233_v37 = vmax.f32 %v2579_v26, 0.0  ;;  %v2648_v29 = vadd.f32 %v5740_v43, %v1983_v62  ;;  %v3327_v21 = vrot.slane %v3255_v59, %v4767_v11  ;;  %v3680_v46 = vrot.slane %v3255_v59, %v4763_v7  ;;  %v3256_v43 = vld [vmem:[#allocation9 + $0x20] sm:$0xff] }
 0x249   :  { %v3599_v33 = vadd.f32 %v3598_v30, %v3568_v28  ;;  %v3952_v10 = vadd.f32 %v3951_v17, %v3921_v44  ;;  %v1987_v25 = vrot.slane %v5798_v23, %v4769_v12  ;;  %v3331_v2 = vrot.slane %v3255_v59, %v4771_v13 }
 0x24a   :  { %v3569_v48 = vmul.f32 %v3483_v0, %v3233_v37  ;;  %v3922_v57 = vmul.f32 %v3836_v45, %v3233_v37  ;;  %v3234_v20 = vmax.f32 %v2648_v29, 0.0  ;;  %v3487_v52 = vrot.slane %v3327_v21, %v4757_v4 }
 0x24b   :  { %v3840_v34 = vrot.slane %v3680_v46, %v4755_v3  ;;  %v2650_v9 = vadd.f32 %v5746_v14, %v1987_v25  ;;  %v3684_v53 = vrot.slane %v3255_v59, %v4769_v12  ;;  %v3491_v23 = vrot.slane %v3331_v2, %v4757_v4 }
 0x24c   :  { %v3600_v22 = vadd.f32 %v3599_v33, %v3569_v48  ;;  %v3953_v42 = vadd.f32 %v3952_v10, %v3922_v57  ;;  %v3570_v1 = vmul.f32 %v3487_v52, %v3234_v20  ;;  %v1991_v36 = vrot.slane %v5860_v31, %v4757_v4 }
 0x24d   :  { %v3923_v55 = vmul.f32 %v3840_v34, %v3234_v20  ;;  %v3235_v35 = vmax.f32 %v2650_v9, 0.0  ;;  %v3844_v49 = vrot.slane %v3684_v53, %v4755_v3  ;;  %v3335_v27 = vrot.slane %v3256_v43, %v4757_v4 }
 0x24e   :  { %v3688_v41 = vrot.slane %v3256_v43, %v4755_v3  ;;  %v3601_v63 = vadd.f32 %v3600_v22, %v3570_v1  ;;  %v1995_v14 = vrot.slane %v5860_v31, %v4755_v3  ;;  %v3339_v59 = vrot.slane %v3256_v43, %v4761_v6 }
 0x24f   :  { %v3954_v16 = vadd.f32 %v3953_v42, %v3923_v55  ;;  %v3571_v39 = vmul.f32 %v3491_v23, %v3235_v35  ;;  %v3924_v18 = vmul.f32 %v3844_v49, %v3235_v35  ;;  %v3495_v54 = vrot.slane %v3335_v27, %v4757_v4  ;;  %v3257_v49 = vld [vmem:[#allocation9 + $0x28] sm:$0xff] }
 0x250   :  { %v2718_v47 = vpop.f32.mrb[8].mxu0  ;;  %v3848_v19 = vrot.slane %v3688_v41, %v4755_v3  ;;  %v3499_v60 = vrot.slane %v3339_v59, %v4757_v4  ;;  %v3692_v56 = vrot.slane %v3256_v43, %v4759_v5  ;;  %v1999_v61 = vrot.slane %v5860_v31, %v4761_v6 }
 0x251   :  { %v2719_v58 = vadd.f32 %v2718_v47, %v1991_v36  ;;  %v2720_v24 = vpop.f32.mrb[9].mxu0  ;;  %v3602_v32 = vadd.f32 %v3601_v63, %v3571_v39  ;;  %v3955_v8 = vadd.f32 %v3954_v16, %v3924_v18  ;;  %v3343_v15 = vrot.slane %v3256_v43, %v4767_v11 }
 0x252   :  { %v2721_v50 = vadd.f32 %v2720_v24, %v1995_v14  ;;  %v3852_v26 = vrot.slane %v3692_v56, %v4755_v3  ;;  %v2789_v38 = vpop.f32.mrb[8].mxu1  ;;  %v3696_v51 = vrot.slane %v3256_v43, %v4763_v7  ;;  %v2003_v30 = vrot.slane %v5860_v31, %v4759_v5 }
 0x253   :  { %v3236_v40 = vmax.f32 %v2719_v58, 0.0  ;;  %v2790_v28 = vadd.f32 %v2789_v38, %v1999_v61  ;;  %v3503_v62 = vrot.slane %v3343_v15, %v4757_v4  ;;  %v2791_v44 = vpop.f32.mrb[9].mxu1  ;;  %v3347_v37 = vrot.slane %v3256_v43, %v4771_v13 }
 0x254   :  { %v3237_v17 = vmax.f32 %v2721_v50, 0.0  ;;  %v3856_v33 = vrot.slane %v3696_v51, %v4755_v3  ;;  %v2792_v29 = vadd.f32 %v2791_v44, %v2003_v30  ;;  %v3700_v52 = vrot.slane %v3256_v43, %v4769_v12 }
 0x255   :  { %v3572_v0 = vmul.f32 %v3495_v54, %v3236_v40  ;;  %v3925_v45 = vmul.f32 %v3848_v19, %v3236_v40  ;;  %v3238_v10 = vmax.f32 %v2790_v28, 0.0  ;;  %v3507_v48 = vrot.slane %v3347_v37, %v4757_v4 }
 0x256   :  { %v3573_v21 = vmul.f32 %v3499_v60, %v3237_v17  ;;  %v3926_v46 = vmul.f32 %v3852_v26, %v3237_v17  ;;  %v3239_v20 = vmax.f32 %v2792_v29, 0.0  ;;  %v3860_v53 = vrot.slane %v3700_v52, %v4755_v3 }
 0x257   :  { %v3603_v57 = vadd.f32 %v3602_v32, %v3572_v0  ;;  %v3956_v25 = vadd.f32 %v3955_v8, %v3925_v45  ;;  %v3574_v34 = vmul.f32 %v3503_v62, %v3238_v10  ;;  %v3927_v2 = vmul.f32 %v3856_v33, %v3238_v10 }
 0x258   :  { %v3575_v9 = vmul.f32 %v3507_v48, %v3239_v20  ;;  %v3928_v23 = vmul.f32 %v3860_v53, %v3239_v20  ;;  %v3351_v27 = vrot.slane %v3257_v49, %v4757_v4  ;;  %v2007_v41 = vrot.slane %v5860_v31, %v4767_v11  ;;  %v5917_v53 = vld [vmem:[#allocation7 + $0x18] sm:$0xff] }
 0x259   :  { %v3604_v22 = vadd.f32 %v3603_v57, %v3573_v21  ;;  %v3957_v42 = vadd.f32 %v3956_v25, %v3926_v46  ;;  %v3704_v43 = vrot.slane %v3257_v49, %v4755_v3  ;;  %v2011_v63 = vrot.slane %v5860_v31, %v4763_v7 }
 0x25a   :  { %v3355_v16 = vrot.slane %v3257_v49, %v4761_v6  ;;  %v3708_v14 = vrot.slane %v3257_v49, %v4759_v5  ;;  %v3359_v59 = vrot.slane %v3257_v49, %v4767_v11  ;;  %v3511_v18 = vrot.slane %v3351_v27, %v4757_v4 }
 0x25b   :  { %v3605_v1 = vadd.f32 %v3604_v22, %v3574_v34  ;;  %v3958_v55 = vadd.f32 %v3957_v42, %v3927_v2  ;;  %v2015_v47 = vrot.slane %v5860_v31, %v4771_v13  ;;  %v3712_v54 = vrot.slane %v3257_v49, %v4763_v7 }
 0x25c   :  { %v3363_v19 = vrot.slane %v3257_v49, %v4771_v13  ;;  %v3864_v24 = vrot.slane %v3704_v43, %v4755_v3  ;;  %v2019_v56 = vrot.slane %v5860_v31, %v4769_v12  ;;  %v3716_v61 = vrot.slane %v3257_v49, %v4769_v12 }
 0x25d   :  { %v3606_v36 = vadd.f32 %v3605_v1, %v3575_v9  ;;  %v3959_v35 = vadd.f32 %v3958_v55, %v3928_v23  ;;  %v3515_v8 = vrot.slane %v3355_v16, %v4757_v4  ;;  %v3868_v50 = vrot.slane %v3708_v14, %v4755_v3  ;;  %v3258_v9 = vld [vmem:[#allocation9 + $0x30] sm:$0xff] }
 0x25e   :  { %v3519_v26 = vrot.slane %v3359_v59, %v4757_v4  ;;  %v3872_v30 = vrot.slane %v3712_v54, %v4755_v3  ;;  %v3523_v28 = vrot.slane %v3363_v19, %v4757_v4  ;;  %v3876_v37 = vrot.slane %v3716_v61, %v4755_v3 }
 0x25f   :  { %v3367_v1 = vrot.slane %v3258_v9, %v4757_v4  ;;  %v2023_v55 = vrot.slane %v5917_v53, %v4757_v4  ;;  %v3720_v23 = vrot.slane %v3258_v9, %v4755_v3  ;;  %v3724_v49 = vrot.slane %v3258_v9, %v4759_v5 }
 0x260   :  { %v3375_v27 = vrot.slane %v3258_v9, %v4767_v11  ;;  %v3728_v16 = vrot.slane %v3258_v9, %v4763_v7  ;;  %v3379_v14 = vrot.slane %v3258_v9, %v4771_v13  ;;  %v3732_v54 = vrot.slane %v3258_v9, %v4769_v12 }
 0x261   :  { %v3527_v43 = vrot.slane %v3367_v1, %v4757_v4 }
 0x262   :  { %v3535_v61 = vrot.slane %v3375_v27, %v4757_v4 }
 0x289   :  { %v2860_v39 = vpop.f32.mrb[10].mxu0 }
 0x28a   :  { %v2861_v58 = vadd.f32 %v2860_v39, %v2007_v41  ;;  %v2862_v60 = vpop.f32.mrb[11].mxu0  ;;  %v3880_v39 = vrot.slane %v3720_v23, %v4755_v3 }
 0x28b   :  { %v2863_v32 = vadd.f32 %v2862_v60, %v2011_v63  ;;  %v2931_v40 = vpop.f32.mrb[10].mxu1  ;;  %v2031_v63 = vrot.slane %v5917_v53, %v4761_v6 }
 0x28c   :  { %v3240_v15 = vmax.f32 %v2861_v58, 0.0  ;;  %v2932_v51 = vadd.f32 %v2931_v40, %v2015_v47  ;;  %v2933_v17 = vpop.f32.mrb[11].mxu1  ;;  %v2035_v47 = vrot.slane %v5917_v53, %v4759_v5  ;;  %v3539_v40 = vrot.slane %v3379_v14, %v4757_v4 }
 0x28d   :  { %v3241_v38 = vmax.f32 %v2863_v32, 0.0  ;;  %v2934_v44 = vadd.f32 %v2933_v17, %v2019_v56 }
 0x28e   :  { %v3576_v62 = vmul.f32 %v3511_v18, %v3240_v15  ;;  %v3929_v31 = vmul.f32 %v3864_v24, %v3240_v15  ;;  %v3242_v33 = vmax.f32 %v2932_v51, 0.0  ;;  %v3884_v24 = vrot.slane %v3724_v49, %v4755_v3 }
 0x28f   :  { %v3577_v0 = vmul.f32 %v3515_v8, %v3241_v38  ;;  %v3930_v45 = vmul.f32 %v3868_v50, %v3241_v38  ;;  %v3243_v46 = vmax.f32 %v2934_v44, 0.0  ;;  %v3888_v50 = vrot.slane %v3728_v16, %v4755_v3 }
 0x290   :  { %v3607_v29 = vadd.f32 %v3606_v36, %v3576_v62  ;;  %v3960_v21 = vadd.f32 %v3959_v35, %v3929_v31  ;;  %v3578_v10 = vmul.f32 %v3519_v26, %v3242_v33  ;;  %v3931_v48 = vmul.f32 %v3872_v30, %v3242_v33 }
 0x291   :  { %v3579_v20 = vmul.f32 %v3523_v28, %v3243_v46  ;;  %v3932_v52 = vmul.f32 %v3876_v37, %v3243_v46  ;;  %v2027_v36 = vrot.slane %v5917_v53, %v4755_v3  ;;  %v3371_v35 = vrot.slane %v3258_v9, %v4761_v6 }
 0x292   :  { %v3608_v57 = vadd.f32 %v3607_v29, %v3577_v0  ;;  %v3961_v25 = vadd.f32 %v3960_v21, %v3930_v45  ;;  %v3892_v30 = vrot.slane %v3732_v54, %v4755_v3 }
 0x293   :  { %v3531_v58 = vrot.slane %v3371_v35, %v4757_v4 }
 0x294   :  { %v3609_v34 = vadd.f32 %v3608_v57, %v3578_v10  ;;  %v3962_v2 = vadd.f32 %v3961_v25, %v3931_v48 }
 0x296   :  { %v3610_v22 = vadd.f32 %v3609_v34, %v3579_v20  ;;  %v3963_v42 = vadd.f32 %v3962_v2, %v3932_v52  ;;  %v3259_v20 = vld [vmem:[#allocation9 + $0x38] sm:$0xff]  ;;  %v2039_v52 = vrot.slane %v5917_v53, %v4767_v11 }
 0x297   :  { %v3383_v34 = vrot.slane %v3259_v20, %v4757_v4  ;;  %v3736_v2 = vrot.slane %v3259_v20, %v4755_v3  ;;  %v3740_v9 = vrot.slane %v3259_v20, %v4759_v5  ;;  %v3391_v23 = vrot.slane %v3259_v20, %v4767_v11 }
 0x298   :  { %v3748_v16 = vrot.slane %v3259_v20, %v4769_v12 }
 0x299   :  { %v3543_v49 = vrot.slane %v3383_v34, %v4757_v4  ;;  %v3896_v27 = vrot.slane %v3736_v2, %v4755_v3 }
 0x2c2   :  { %v3002_v41 = vpop.f32.mrb[12].mxu0 }
 0x2c3   :  { %v3003_v59 = vadd.f32 %v3002_v41, %v2023_v55  ;;  %v3004_v18 = vpop.f32.mrb[13].mxu0  ;;  %v2047_v55 = vrot.slane %v5917_v53, %v4771_v13 }
 0x2c4   :  { %v3005_v19 = vadd.f32 %v3004_v18, %v2027_v36  ;;  %v3073_v56 = vpop.f32.mrb[12].mxu1  ;;  %v3744_v36 = vrot.slane %v3259_v20, %v4763_v7  ;;  %v3551_v18 = vrot.slane %v3391_v23, %v4757_v4 }
 0x2c5   :  { %v3244_v60 = vmax.f32 %v3003_v59, 0.0  ;;  %v3074_v8 = vadd.f32 %v3073_v56, %v2031_v63  ;;  %v3075_v15 = vpop.f32.mrb[13].mxu1  ;;  %v3900_v63 = vrot.slane %v3740_v9, %v4755_v3 }
 0x2c6   :  { %v3245_v32 = vmax.f32 %v3005_v19, 0.0  ;;  %v3076_v51 = vadd.f32 %v3075_v15, %v2035_v47  ;;  %v3904_v47 = vrot.slane %v3744_v36, %v4755_v3 }
 0x2c7   :  { %v3580_v26 = vmul.f32 %v3527_v43, %v3244_v60  ;;  %v3933_v38 = vmul.f32 %v3880_v39, %v3244_v60  ;;  %v3246_v62 = vmax.f32 %v3074_v8, 0.0  ;;  %v2051_v43 = vrot.slane %v5917_v53, %v4769_v12 }
 0x2c8   :  { %v3581_v17 = vmul.f32 %v3531_v58, %v3245_v32  ;;  %v3934_v28 = vmul.f32 %v3884_v24, %v3245_v32  ;;  %v3247_v37 = vmax.f32 %v3076_v51, 0.0 }
 0x2c9   :  { %v3611_v31 = vadd.f32 %v3610_v22, %v3580_v26  ;;  %v3964_v44 = vadd.f32 %v3963_v42, %v3933_v38  ;;  %v3582_v0 = vmul.f32 %v3535_v61, %v3246_v62  ;;  %v3935_v45 = vmul.f32 %v3888_v50, %v3246_v62 }
 0x2ca   :  { %v3583_v21 = vmul.f32 %v3539_v40, %v3247_v37  ;;  %v3936_v46 = vmul.f32 %v3892_v30, %v3247_v37  ;;  %v2043_v22 = vrot.slane %v5917_v53, %v4763_v7  ;;  %v3387_v42 = vrot.slane %v3259_v20, %v4761_v6 }
 0x2cb   :  { %v3612_v33 = vadd.f32 %v3611_v31, %v3581_v17  ;;  %v3965_v29 = vadd.f32 %v3964_v44, %v3934_v28  ;;  %v3395_v7 = vrot.slane %v3259_v20, %v4771_v13  ;;  %v3908_v61 = vrot.slane %v3748_v16, %v4755_v3  ;;  %v4006_v3 = vld [vmem:[%s5981_s5] ss:$0 sm:$0xff] }
 0x2cc   :  { %v3547_v5 = vrot.slane %v3387_v42, %v4757_v4 }
 0x2cd   :  { %v3613_v10 = vadd.f32 %v3612_v33, %v3582_v0  ;;  %v3966_v48 = vadd.f32 %v3965_v29, %v3935_v45  ;;  %v3555_v13 = vrot.slane %v3395_v7, %v4757_v4 }
 0x2cf   :  { %v3614_v57 = vadd.f32 %v3613_v10, %v3583_v21  ;;  %v3967_v25 = vadd.f32 %v3966_v48, %v3936_v46 }
 0x305   :  { %v3144_v1 = vpop.f32.mrb[14].mxu0 }
 0x306   :  { %v3145_v35 = vadd.f32 %v3144_v1, %v2039_v52  ;;  %v3146_v41 = vpop.f32.mrb[15].mxu0 }
 0x307   :  { %v3147_v6 = vadd.f32 %v3146_v41, %v2043_v22 }
 0x308   :  { %v3248_v14 = vmax.f32 %v3145_v35, 0.0  ;;  %v3215_v11 = vpop.f32.mrb[14].mxu1 }
 0x309   :  { %v3249_v59 = vmax.f32 %v3147_v6, 0.0  ;;  %v3216_v39 = vadd.f32 %v3215_v11, %v2047_v55  ;;  %v3217_v54 = vpop.f32.mrb[15].mxu1 }
 0x30a   :  { %v3584_v19 = vmul.f32 %v3543_v49, %v3248_v14  ;;  %v3937_v53 = vmul.f32 %v3896_v27, %v3248_v14  ;;  %v3218_v58 = vadd.f32 %v3217_v54, %v2051_v43 }
 0x30b   :  { %v3585_v24 = vmul.f32 %v3547_v5, %v3249_v59  ;;  %v3938_v60 = vmul.f32 %v3900_v63, %v3249_v59  ;;  %v3250_v56 = vmax.f32 %v3216_v39, 0.0 }
 0x30c   :  { %v3615_v12 = vadd.f32 %v3614_v57, %v3584_v19  ;;  %v3968_v32 = vadd.f32 %v3967_v25, %v3937_v53  ;;  %v3251_v8 = vmax.f32 %v3218_v58, 0.0 }
 0x30d   :  { %v3586_v50 = vmul.f32 %v3551_v18, %v3250_v56  ;;  %v3939_v15 = vmul.f32 %v3904_v47, %v3250_v56 }
 0x30e   :  { %v3969_v40 = vadd.f32 %v3968_v32, %v3938_v60  ;;  %v3616_v26 = vadd.f32 %v3615_v12, %v3585_v24  ;;  %v3940_v38 = vmul.f32 %v3908_v61, %v3251_v8  ;;  %v3587_v51 = vmul.f32 %v3555_v13, %v3251_v8 }
 0x310   :  { %v3617_v30 = vadd.f32 %v3616_v26, %v3586_v50  ;;  %v3970_v17 = vadd.f32 %v3969_v40, %v3939_v15 }
 0x312   :  { %v3618_v28 = vadd.f32 %v3617_v30, %v3587_v51  ;;  %v3971_v62 = vadd.f32 %v3970_v17, %v3940_v38 }
 0x314   :  { %3619 = vadd.xlane.f32.xlu0 %v3618_v28 }
 0x318   :  { %3972 = vadd.xlane.f32.xlu0 %v3971_v62 }
 0x3a1   :  { %v3620_v31 = vpop.xlane.xlu0 %3619 }
 0x3a5   :  { %v3973_v44 = vpop.xlane.xlu0 %3972 }
 0x3a6   :  { %v3975_v4 = vsel %vm3974_vm0, %v3620_v31, %v3973_v44 }
 0x3a7   :  { %v3983_v37 = vadd.f32 %v4006_v3, %v3975_v4 }
 0x3a9   :  { %v3985_v0 = vsel %vm3984_vm1, %v3983_v37, -inf }
 0x3aa   :  { %3986 = vmax.xlane.f32.xlu1 %v3985_v0 }
 0x437   :  { %v3987_v45 = vpop.xlane.xlu1 %3986 }
 0x438   :  { %v3988_v33 = vsub.f32 %v3983_v37, %v3987_v45 }
 0x43a   :  { %v3989_v29 = vmul.f32 1.442695, %v3988_v33 }
 0x43c   :  { %4527 = vpow2.f32 %v3989_v29 }
 0x446   :  { %v4528_v21 = vpop.eup %4527 }
 0x447   :  { %v3991_v46 = vsel %vm3984_vm1, %v4528_v21, 0.0 }
 0x448   :  { %3992 = vadd.xlane.f32.xlu1 %v3991_v46 }
 0x4d5   :  { %v3993_v10 = vpop.xlane.xlu1 %3992 }
 0x4d6   :  { %4529 = vlog2.f32 %v3993_v10 }
 0x4e0   :  { %v4530_v48 = vpop.eup %4529 }
 0x4e1   :  { %v3995_v57 = vmul.f32 0.6931472, %v4530_v48 }
 0x4e3   :  { %v3996_v25 = vadd.f32 %v3995_v57, %v3987_v45 }
 0x4e5   :  { %v3997_v20 = vsub.f32 %v3983_v37, %v3996_v25 }
 0x4e7   :  { %3998 = vst.msk [vmem:[%s5982_s6] sm:$0xff] %vm3984_vm1, %v3997_v20 }
 0x4e8   :  { %4003 = vsyncpa [#allocation3], 1 }
 0x4e9   :  { %4004 = vsyncpa [#allocation5], 1 }
 0x4ea   :  { %4005 = vsyncpa [#allocation8], 1 }

</bundles_post_ra>
